<compile_context>
chip_gen: v7x
topology: tpu7x:2x2x1
jax: 0.10.0
libtpu: 0.0.40
codegen_flags: <defaults>
</compile_context>

<pallas_src>
import functools

import jax
import jax.numpy as jnp
from jax import lax
from jax.experimental import pallas as pl
from jax.experimental.pallas import tpu as pltpu


# ----------------------------------------------------------------------------
# Fused kernel: QKV projection + multi-head attention + output projection
# ----------------------------------------------------------------------------
def _fused_attn_kernel(x_full_ref, x_q_ref, w_qkv_ref, w_out_ref, b_out_ref,
                       y_ref, a_ref, *, heads, dim_head, scale):
    # x_full_ref: (1, c, N)        f32   full image (keys / values)
    # x_q_ref   : (1, c, tq)       f32   this query tile's columns of x
    # w_qkv_ref : (3*hidden, c)    bf16  conv weight, natural (out, in) layout
    # w_out_ref : (c, hidden)      bf16  to_out conv weight, natural layout
    # b_out_ref : (c, 1)           f32   to_out bias
    # y_ref     : (1, c, tq)       f32   output tile (lane-dense, tq % 128 == 0)
    # a_ref     : (hidden, tq)     bf16  VMEM scratch: concatenated head outputs
    hidden = heads * dim_head

    x_full = x_full_ref[0].astype(jnp.bfloat16)                       # (c, N)
    x_q = x_q_ref[0].astype(jnp.bfloat16)                             # (c, tq)

    w_qkv = w_qkv_ref[...]                                            # (3h, c)
    w_q = w_qkv[:hidden, :]                                           # sublane slice
    w_kv = w_qkv[hidden:, :]

    # Query projection for this tile only; scale applied in f32 for accuracy.
    q = (jnp.dot(w_q, x_q, preferred_element_type=jnp.float32)
         * scale).astype(jnp.bfloat16)                                # (hidden, tq)
    # Key/value projection over the full sequence (N on the lane axis).
    kv = jnp.dot(w_kv, x_full,
                 preferred_element_type=jnp.float32).astype(jnp.bfloat16)  # (2*hidden, N)

    for hh in range(heads):                                           # unrolled
        lo = hh * dim_head
        qh = q[lo:lo + dim_head, :]                                   # (dh, tq)
        kh = kv[lo:lo + dim_head, :]                                  # (dh, N)
        vh = kv[hidden + lo:hidden + lo + dim_head, :]                # (dh, N)

        # sim[i, j] = sum_d q[d, i] * k[d, j]  (no transposes materialized)
        sim = lax.dot_general(qh, kh, (((0,), (0,)), ((), ())),
                              preferred_element_type=jnp.float32)     # (tq, N)

        # Numerically stable f32 softmax over the lane axis.
        sim = sim - jnp.max(sim, axis=-1, keepdims=True)
        p = jnp.exp(sim)
        inv_l = pl.reciprocal(jnp.sum(p, axis=-1, keepdims=True), approx=False)
        attn = (p * inv_l).astype(jnp.bfloat16)                       # (tq, N)

        # out[d, i] = sum_j v[d, j] * attn[i, j]  -> full-depth (N) contraction
        oh = lax.dot_general(vh, attn, (((1,), (1,)), ((), ())),
                             preferred_element_type=jnp.float32)      # (dh, tq)
        # Sublane-aligned scratch write at this head's row offset.
        a_ref[lo:lo + dim_head, :] = oh.astype(jnp.bfloat16)

    # Fused output projection: y (c, tq) stays lane-dense, stored unmasked.
    y = jnp.dot(w_out_ref[...], a_ref[...],
                preferred_element_type=jnp.float32) + b_out_ref[...]  # (c, tq)
    y_ref[0] = y.astype(y_ref.dtype)


# ----------------------------------------------------------------------------
# One-time parameter prep (pay the casts once, not per forward step)
# ----------------------------------------------------------------------------
def prepare_attention_params(w_qkv, w_out, b_out):
    """w_qkv: (3*hidden, dim), w_out: (dim, hidden), b_out: (dim,)."""
    return {
        "w_qkv": w_qkv.astype(jnp.bfloat16),                 # (3*hidden, dim)
        "w_out": w_out.astype(jnp.bfloat16),                 # (dim, hidden)
        "b_out": b_out.reshape(-1, 1).astype(jnp.float32),   # (dim, 1)
    }


def _pick_q_tile(n, max_tile=128):
    if n % 128 != 0:
        return n                       # small / odd feature maps: single tile
    tq = min(max_tile, n)
    tq -= tq % 128
    while n % tq != 0:
        tq -= 128
    return max(tq, 128)


# ----------------------------------------------------------------------------
# Python wrapper
# ----------------------------------------------------------------------------
def attention_forward(x, params, *, heads, dim_head, max_q_tile=128):
    """x: (b, c, h, w) float32 (NCHW). Returns (b, c, h, w)."""
    b, c, h, w = x.shape
    n = h * w
    hidden = heads * dim_head
    scale = dim_head ** (-0.5)

    if n > 4096:
        # TODO(synk): add a KV-tiled online-softmax (flash) path; beyond this
        # the (tq, N) sim and (2*hidden, N) kv tiles exceed the VMEM budget.
        raise NotImplementedError("attention_forward: N = h*w > 4096 needs the flash-tiled path")

    tq = _pick_q_tile(n, max_q_tile)
    nq = n // tq

    # Channels-major: just a reshape, no NCHW<->NHWC transpose round trips.
    x_flat = x.reshape(b, c, n)

    kernel = functools.partial(_fused_attn_kernel,
                               heads=heads, dim_head=dim_head, scale=scale)

    cost = pl.CostEstimate(
        flops=int(b * (2 * n * c * 3 * hidden      # qkv projection
                       + 4 * n * n * hidden        # q.k^T and p.v (all heads)
                       + 2 * n * hidden * c)),     # output projection
        transcendentals=int(b * heads * n * n),    # softmax exp
        bytes_accessed=int(2 * 4 * b * c * n                       # x in + y out
                           + 2 * (3 * hidden * c + c * hidden)     # bf16 weights
                           + 4 * c),                               # bias
    )

    y_flat = pl.pallas_call(
        kernel,
        out_shape=jax.ShapeDtypeStruct((b, c, n), jnp.float32),
        grid_spec=pltpu.PrefetchScalarGridSpec(
            num_scalar_prefetch=0,
            grid=(b, nq),
            in_specs=[
                pl.BlockSpec((1, c, n), lambda bi, qi: (bi, 0, 0)),     # full x (K/V)
                pl.BlockSpec((1, c, tq), lambda bi, qi: (bi, 0, qi)),   # query tile of x
                pl.BlockSpec((3 * hidden, c), lambda bi, qi: (0, 0)),   # resident weights
                pl.BlockSpec((c, hidden), lambda bi, qi: (0, 0)),
                pl.BlockSpec((c, 1), lambda bi, qi: (0, 0)),
            ],
            out_specs=pl.BlockSpec((1, c, tq), lambda bi, qi: (bi, 0, qi)),
            scratch_shapes=[pltpu.VMEM((hidden, tq), jnp.bfloat16)],
        ),
        compiler_params=pltpu.CompilerParams(
            # Both axes independent: batches AND query tiles shard across the
            # two TensorCores on v7x (works even at b == 1).
            dimension_semantics=("parallel", "parallel"),
            vmem_limit_bytes=32 * 1024 * 1024,
        ),
        cost_estimate=cost,
    )(x_flat, x_flat, params["w_qkv"], params["w_out"], params["b_out"])

    return y_flat.reshape(b, c, h, w)


# ----------------------------------------------------------------------------
# Pure-JAX reference (mirrors the PyTorch forward exactly) for verification
# ----------------------------------------------------------------------------
def attention_reference(x, w_qkv, w_out, b_out, *, heads, dim_head):
    b, c, h, w = x.shape
    n = h * w
    hidden = heads * dim_head
    scale = dim_head ** (-0.5)

    x_flat = x.reshape(b, c, n)                                   # (b, c, N)
    qkv = jnp.einsum("oc,bcn->bon", w_qkv, x_flat)                # (b, 3*hidden, N)
    q, k, v = jnp.split(qkv, 3, axis=1)
    reshp = lambda t: t.reshape(b, heads, dim_head, n)
    q, k, v = reshp(q), reshp(k), reshp(v)
    q = q * scale
    sim = jnp.einsum("bhdi,bhdj->bhij", q, k)
    attn = jax.nn.softmax(sim, axis=-1)
    out = jnp.einsum("bhij,bhdj->bhid", attn, v)                  # (b, h, N, d)
    out = jnp.transpose(out, (0, 1, 3, 2)).reshape(b, hidden, h, w)
    y = jnp.einsum("oc,bchw->bohw", w_out, out) + b_out[None, :, None, None]
    return y


if __name__ == "__main__":
    # Small shapes consistent with the module (heads=4, dim_head=32).
    B, DIM, H, W = 2, 8, 16, 16
    HEADS, DIM_HEAD = 4, 32
    HIDDEN = HEADS * DIM_HEAD

    key = jax.random.PRNGKey(0)
    kx, kqkv, kwo, kbo = jax.random.split(key, 4)

    x = jax.random.normal(kx, (B, DIM, H, W), dtype=jnp.float32)
    # Conv2d(dim, hidden*3, 1, bias=False) weight -> (3*hidden, dim)
    w_qkv = jax.random.normal(kqkv, (3 * HIDDEN, DIM), dtype=jnp.float32) * 0.1
    # Conv2d(hidden, dim, 1) weight -> (dim, hidden), bias -> (dim,)
    w_out = jax.random.normal(kwo, (DIM, HIDDEN), dtype=jnp.float32) * 0.1
    b_out = jax.random.normal(kbo, (DIM,), dtype=jnp.float32) * 0.1

    params = prepare_attention_params(w_qkv, w_out, b_out)   # one-time prep

    y = attention_forward(x, params, heads=HEADS, dim_head=DIM_HEAD)
    y = jax.block_until_ready(y)

    y_ref = attention_reference(x, w_qkv, w_out, b_out, heads=HEADS, dim_head=DIM_HEAD)
    assert y.shape == (B, DIM, H, W)
    # Tolerance accounts for bf16 MXU operands (f32 accumulation, exact
    # reciprocal, scale applied in f32).
    assert jnp.allclose(y, y_ref, atol=1e-2, rtol=1e-2), "mismatch vs reference"

    print("KERNEL_OK")
</pallas_src>

<mosaic_0001>
module attributes {stable_mosaic.version = 11 : i64} {
  func.func @_fused_attn_kernel(%arg0: i32, %arg1: i32, %arg2: memref<1x8x256xf32, #tpu.memory_space<vmem>>, %arg3: memref<1x8x128xf32, #tpu.memory_space<vmem>>, %arg4: memref<384x8xbf16, #tpu.memory_space<vmem>>, %arg5: memref<8x128xbf16, #tpu.memory_space<vmem>>, %arg6: memref<8x1xf32, #tpu.memory_space<vmem>>, %arg7: memref<1x8x128xf32, #tpu.memory_space<vmem>>, %arg8: memref<128x128xbf16, #tpu.memory_space<vmem>>) attributes {dimension_semantics = [#tpu.dimension_semantics<parallel>, #tpu.dimension_semantics<parallel>], iteration_bounds = array<i64: 2, 2>, scalar_prefetch = 0 : i64, scratch_operands = 1 : i64, tpu.core_type = #tpu.core_type<tc>, window_params = [{transform_indices = @transform_0, window_bounds = array<i64: 1, 8, 256>}, {transform_indices = @transform_1, window_bounds = array<i64: 1, 8, 128>}, {pipeline_mode = #tpu.pipeline_mode<synchronous>, transform_indices = @transform_2, window_bounds = array<i64: 384, 8>}, {pipeline_mode = #tpu.pipeline_mode<synchronous>, transform_indices = @transform_3, window_bounds = array<i64: 8, 128>}, {pipeline_mode = #tpu.pipeline_mode<synchronous>, transform_indices = @transform_4, window_bounds = array<i64: 8, 1>}, {transform_indices = @transform_5, window_bounds = array<i64: 1, 8, 128>}]} {
    %c0 = arith.constant 0 : index
    %c0_0 = arith.constant 0 : index
    %c0_1 = arith.constant 0 : index
    %0 = vector.load %arg2[%c0, %c0_0, %c0_1] : memref<1x8x256xf32, #tpu.memory_space<vmem>>, vector<1x8x256xf32>
    %1 = vector.shape_cast %0 : vector<1x8x256xf32> to vector<8x256xf32>
    %2 = arith.truncf %1 : vector<8x256xf32> to vector<8x256xbf16>
    %c0_2 = arith.constant 0 : index
    %c0_3 = arith.constant 0 : index
    %c0_4 = arith.constant 0 : index
    %3 = vector.load %arg3[%c0_2, %c0_3, %c0_4] : memref<1x8x128xf32, #tpu.memory_space<vmem>>, vector<1x8x128xf32>
    %4 = vector.shape_cast %3 : vector<1x8x128xf32> to vector<8x128xf32>
    %5 = arith.truncf %4 : vector<8x128xf32> to vector<8x128xbf16>
    %c0_5 = arith.constant 0 : index
    %c0_6 = arith.constant 0 : index
    %6 = vector.load %arg4[%c0_5, %c0_6] : memref<384x8xbf16, #tpu.memory_space<vmem>>, vector<384x8xbf16>
    %7 = vector.extract_strided_slice %6 {offsets = [0, 0], sizes = [128, 8], strides = [1, 1]} : vector<384x8xbf16> to vector<128x8xbf16>
    %8 = vector.extract_strided_slice %6 {offsets = [128, 0], sizes = [256, 8], strides = [1, 1]} : vector<384x8xbf16> to vector<256x8xbf16>
    %cst = arith.constant dense<0.000000e+00> : vector<128x128xf32>
    %9 = tpu.matmul %7, %5, %cst {dimension_numbers = #tpu.dot_dimension_numbers<[1], [0], [0], [1], [0, 0, 1, 1], [], []>} : vector<128x8xbf16>, vector<8x128xbf16>, vector<128x128xf32> -> vector<128x128xf32>
    %cst_7 = arith.constant 0.176776692 : f32
    %10 = vector.broadcast %cst_7 : f32 to vector<128x128xf32>
    %11 = arith.mulf %9, %10 : vector<128x128xf32>
    %12 = arith.truncf %11 : vector<128x128xf32> to vector<128x128xbf16>
    %cst_8 = arith.constant dense<0.000000e+00> : vector<256x256xf32>
    %13 = tpu.matmul %8, %2, %cst_8 {dimension_numbers = #tpu.dot_dimension_numbers<[1], [0], [0], [1], [0, 0, 1, 1], [], []>} : vector<256x8xbf16>, vector<8x256xbf16>, vector<256x256xf32> -> vector<256x256xf32>
    %14 = arith.truncf %13 : vector<256x256xf32> to vector<256x256xbf16>
    %15 = vector.extract_strided_slice %12 {offsets = [0, 0], sizes = [32, 128], strides = [1, 1]} : vector<128x128xbf16> to vector<32x128xbf16>
    %16 = vector.extract_strided_slice %14 {offsets = [0, 0], sizes = [32, 256], strides = [1, 1]} : vector<256x256xbf16> to vector<32x256xbf16>
    %17 = vector.extract_strided_slice %14 {offsets = [128, 0], sizes = [32, 256], strides = [1, 1]} : vector<256x256xbf16> to vector<32x256xbf16>
    %cst_9 = arith.constant dense<0.000000e+00> : vector<128x256xf32>
    %18 = tpu.matmul %15, %16, %cst_9 {dimension_numbers = #tpu.dot_dimension_numbers<[0], [0], [1], [1], [0, 1, 1, 1], [], []>} : vector<32x128xbf16>, vector<32x256xbf16>, vector<128x256xf32> -> vector<128x256xf32>
    %cst_10 = arith.constant dense<0xFF800000> : vector<128xf32>
    %19 = vector.multi_reduction <maximumf>, %18, %cst_10 [1] : vector<128x256xf32> to vector<128xf32>
    %20 = vector.shape_cast %19 : vector<128xf32> to vector<128x1xf32>
    %21 = vector.broadcast %20 : vector<128x1xf32> to vector<128x256xf32>
    %22 = arith.subf %18, %21 : vector<128x256xf32>
    %23 = math.exp %22 : vector<128x256xf32>
    %cst_11 = arith.constant dense<0.000000e+00> : vector<128xf32>
    %24 = vector.multi_reduction <add>, %23, %cst_11 [1] : vector<128x256xf32> to vector<128xf32>
    %25 = vector.shape_cast %24 : vector<128xf32> to vector<128x1xf32>
    %26 = tpu.reciprocal %25 : vector<128x1xf32> -> vector<128x1xf32>
    %27 = vector.broadcast %26 : vector<128x1xf32> to vector<128x256xf32>
    %28 = arith.mulf %23, %27 : vector<128x256xf32>
    %29 = arith.truncf %28 : vector<128x256xf32> to vector<128x256xbf16>
    %cst_12 = arith.constant dense<0.000000e+00> : vector<32x128xf32>
    %30 = tpu.matmul %17, %29, %cst_12 {dimension_numbers = #tpu.dot_dimension_numbers<[1], [1], [0], [0], [0, 0, 1, 0], [], []>} : vector<32x256xbf16>, vector<128x256xbf16>, vector<32x128xf32> -> vector<32x128xf32>
    %31 = arith.truncf %30 : vector<32x128xf32> to vector<32x128xbf16>
    %c0_13 = arith.constant 0 : index
    %c0_14 = arith.constant 0 : index
    %32 = vector.load %arg8[%c0_13, %c0_14] : memref<128x128xbf16, #tpu.memory_space<vmem>>, vector<32x128xbf16>
    tpu.vector_store %arg8[%c0_13, %c0_14], %31 {strides = array<i32>} : memref<128x128xbf16, #tpu.memory_space<vmem>>, vector<32x128xbf16>,
    %33 = vector.extract_strided_slice %12 {offsets = [32, 0], sizes = [32, 128], strides = [1, 1]} : vector<128x128xbf16> to vector<32x128xbf16>
    %34 = vector.extract_strided_slice %14 {offsets = [32, 0], sizes = [32, 256], strides = [1, 1]} : vector<256x256xbf16> to vector<32x256xbf16>
    %35 = vector.extract_strided_slice %14 {offsets = [160, 0], sizes = [32, 256], strides = [1, 1]} : vector<256x256xbf16> to vector<32x256xbf16>
    %cst_15 = arith.constant dense<0.000000e+00> : vector<128x256xf32>
    %36 = tpu.matmul %33, %34, %cst_15 {dimension_numbers = #tpu.dot_dimension_numbers<[0], [0], [1], [1], [0, 1, 1, 1], [], []>} : vector<32x128xbf16>, vector<32x256xbf16>, vector<128x256xf32> -> vector<128x256xf32>
    %cst_16 = arith.constant dense<0xFF800000> : vector<128xf32>
    %37 = vector.multi_reduction <maximumf>, %36, %cst_16 [1] : vector<128x256xf32> to vector<128xf32>
    %38 = vector.shape_cast %37 : vector<128xf32> to vector<128x1xf32>
    %39 = vector.broadcast %38 : vector<128x1xf32> to vector<128x256xf32>
    %40 = arith.subf %36, %39 : vector<128x256xf32>
    %41 = math.exp %40 : vector<128x256xf32>
    %cst_17 = arith.constant dense<0.000000e+00> : vector<128xf32>
    %42 = vector.multi_reduction <add>, %41, %cst_17 [1] : vector<128x256xf32> to vector<128xf32>
    %43 = vector.shape_cast %42 : vector<128xf32> to vector<128x1xf32>
    %44 = tpu.reciprocal %43 : vector<128x1xf32> -> vector<128x1xf32>
    %45 = vector.broadcast %44 : vector<128x1xf32> to vector<128x256xf32>
    %46 = arith.mulf %41, %45 : vector<128x256xf32>
    %47 = arith.truncf %46 : vector<128x256xf32> to vector<128x256xbf16>
    %cst_18 = arith.constant dense<0.000000e+00> : vector<32x128xf32>
    %48 = tpu.matmul %35, %47, %cst_18 {dimension_numbers = #tpu.dot_dimension_numbers<[1], [1], [0], [0], [0, 0, 1, 0], [], []>} : vector<32x256xbf16>, vector<128x256xbf16>, vector<32x128xf32> -> vector<32x128xf32>
    %49 = arith.truncf %48 : vector<32x128xf32> to vector<32x128xbf16>
    %c32 = arith.constant 32 : index
    %c0_19 = arith.constant 0 : index
    %50 = vector.load %arg8[%c32, %c0_19] : memref<128x128xbf16, #tpu.memory_space<vmem>>, vector<32x128xbf16>
    tpu.vector_store %arg8[%c32, %c0_19], %49 {strides = array<i32>} : memref<128x128xbf16, #tpu.memory_space<vmem>>, vector<32x128xbf16>,
    %51 = vector.extract_strided_slice %12 {offsets = [64, 0], sizes = [32, 128], strides = [1, 1]} : vector<128x128xbf16> to vector<32x128xbf16>
    %52 = vector.extract_strided_slice %14 {offsets = [64, 0], sizes = [32, 256], strides = [1, 1]} : vector<256x256xbf16> to vector<32x256xbf16>
    %53 = vector.extract_strided_slice %14 {offsets = [192, 0], sizes = [32, 256], strides = [1, 1]} : vector<256x256xbf16> to vector<32x256xbf16>
    %cst_20 = arith.constant dense<0.000000e+00> : vector<128x256xf32>
    %54 = tpu.matmul %51, %52, %cst_20 {dimension_numbers = #tpu.dot_dimension_numbers<[0], [0], [1], [1], [0, 1, 1, 1], [], []>} : vector<32x128xbf16>, vector<32x256xbf16>, vector<128x256xf32> -> vector<128x256xf32>
    %cst_21 = arith.constant dense<0xFF800000> : vector<128xf32>
    %55 = vector.multi_reduction <maximumf>, %54, %cst_21 [1] : vector<128x256xf32> to vector<128xf32>
    %56 = vector.shape_cast %55 : vector<128xf32> to vector<128x1xf32>
    %57 = vector.broadcast %56 : vector<128x1xf32> to vector<128x256xf32>
    %58 = arith.subf %54, %57 : vector<128x256xf32>
    %59 = math.exp %58 : vector<128x256xf32>
    %cst_22 = arith.constant dense<0.000000e+00> : vector<128xf32>
    %60 = vector.multi_reduction <add>, %59, %cst_22 [1] : vector<128x256xf32> to vector<128xf32>
    %61 = vector.shape_cast %60 : vector<128xf32> to vector<128x1xf32>
    %62 = tpu.reciprocal %61 : vector<128x1xf32> -> vector<128x1xf32>
    %63 = vector.broadcast %62 : vector<128x1xf32> to vector<128x256xf32>
    %64 = arith.mulf %59, %63 : vector<128x256xf32>
    %65 = arith.truncf %64 : vector<128x256xf32> to vector<128x256xbf16>
    %cst_23 = arith.constant dense<0.000000e+00> : vector<32x128xf32>
    %66 = tpu.matmul %53, %65, %cst_23 {dimension_numbers = #tpu.dot_dimension_numbers<[1], [1], [0], [0], [0, 0, 1, 0], [], []>} : vector<32x256xbf16>, vector<128x256xbf16>, vector<32x128xf32> -> vector<32x128xf32>
    %67 = arith.truncf %66 : vector<32x128xf32> to vector<32x128xbf16>
    %c64 = arith.constant 64 : index
    %c0_24 = arith.constant 0 : index
    %68 = vector.load %arg8[%c64, %c0_24] : memref<128x128xbf16, #tpu.memory_space<vmem>>, vector<32x128xbf16>
    tpu.vector_store %arg8[%c64, %c0_24], %67 {strides = array<i32>} : memref<128x128xbf16, #tpu.memory_space<vmem>>, vector<32x128xbf16>,
    %69 = vector.extract_strided_slice %12 {offsets = [96, 0], sizes = [32, 128], strides = [1, 1]} : vector<128x128xbf16> to vector<32x128xbf16>
    %70 = vector.extract_strided_slice %14 {offsets = [96, 0], sizes = [32, 256], strides = [1, 1]} : vector<256x256xbf16> to vector<32x256xbf16>
    %71 = vector.extract_strided_slice %14 {offsets = [224, 0], sizes = [32, 256], strides = [1, 1]} : vector<256x256xbf16> to vector<32x256xbf16>
    %cst_25 = arith.constant dense<0.000000e+00> : vector<128x256xf32>
    %72 = tpu.matmul %69, %70, %cst_25 {dimension_numbers = #tpu.dot_dimension_numbers<[0], [0], [1], [1], [0, 1, 1, 1], [], []>} : vector<32x128xbf16>, vector<32x256xbf16>, vector<128x256xf32> -> vector<128x256xf32>
    %cst_26 = arith.constant dense<0xFF800000> : vector<128xf32>
    %73 = vector.multi_reduction <maximumf>, %72, %cst_26 [1] : vector<128x256xf32> to vector<128xf32>
    %74 = vector.shape_cast %73 : vector<128xf32> to vector<128x1xf32>
    %75 = vector.broadcast %74 : vector<128x1xf32> to vector<128x256xf32>
    %76 = arith.subf %72, %75 : vector<128x256xf32>
    %77 = math.exp %76 : vector<128x256xf32>
    %cst_27 = arith.constant dense<0.000000e+00> : vector<128xf32>
    %78 = vector.multi_reduction <add>, %77, %cst_27 [1] : vector<128x256xf32> to vector<128xf32>
    %79 = vector.shape_cast %78 : vector<128xf32> to vector<128x1xf32>
    %80 = tpu.reciprocal %79 : vector<128x1xf32> -> vector<128x1xf32>
    %81 = vector.broadcast %80 : vector<128x1xf32> to vector<128x256xf32>
    %82 = arith.mulf %77, %81 : vector<128x256xf32>
    %83 = arith.truncf %82 : vector<128x256xf32> to vector<128x256xbf16>
    %cst_28 = arith.constant dense<0.000000e+00> : vector<32x128xf32>
    %84 = tpu.matmul %71, %83, %cst_28 {dimension_numbers = #tpu.dot_dimension_numbers<[1], [1], [0], [0], [0, 0, 1, 0], [], []>} : vector<32x256xbf16>, vector<128x256xbf16>, vector<32x128xf32> -> vector<32x128xf32>
    %85 = arith.truncf %84 : vector<32x128xf32> to vector<32x128xbf16>
    %c96 = arith.constant 96 : index
    %c0_29 = arith.constant 0 : index
    %86 = vector.load %arg8[%c96, %c0_29] : memref<128x128xbf16, #tpu.memory_space<vmem>>, vector<32x128xbf16>
    tpu.vector_store %arg8[%c96, %c0_29], %85 {strides = array<i32>} : memref<128x128xbf16, #tpu.memory_space<vmem>>, vector<32x128xbf16>,
    %c0_30 = arith.constant 0 : index
    %c0_31 = arith.constant 0 : index
    %87 = vector.load %arg5[%c0_30, %c0_31] : memref<8x128xbf16, #tpu.memory_space<vmem>>, vector<8x128xbf16>
    %c0_32 = arith.constant 0 : index
    %c0_33 = arith.constant 0 : index
    %88 = vector.load %arg8[%c0_32, %c0_33] : memref<128x128xbf16, #tpu.memory_space<vmem>>, vector<128x128xbf16>
    %cst_34 = arith.constant dense<0.000000e+00> : vector<8x128xf32>
    %89 = tpu.matmul %87, %88, %cst_34 {dimension_numbers = #tpu.dot_dimension_numbers<[1], [0], [0], [1], [0, 0, 1, 1], [], []>} : vector<8x128xbf16>, vector<128x128xbf16>, vector<8x128xf32> -> vector<8x128xf32>
    %c0_35 = arith.constant 0 : index
    %c0_36 = arith.constant 0 : index
    %90 = vector.load %arg6[%c0_35, %c0_36] : memref<8x1xf32, #tpu.memory_space<vmem>>, vector<8x1xf32>
    %91 = vector.broadcast %90 : vector<8x1xf32> to vector<8x128xf32>
    %92 = arith.addf %89, %91 : vector<8x128xf32>
    %c0_37 = arith.constant 0 : index
    %c0_38 = arith.constant 0 : index
    %c0_39 = arith.constant 0 : index
    %93 = vector.load %arg7[%c0_37, %c0_38, %c0_39] : memref<1x8x128xf32, #tpu.memory_space<vmem>>, vector<1x8x128xf32>
    %94 = vector.shape_cast %93 : vector<1x8x128xf32> to vector<8x128xf32>
    %95 = vector.shape_cast %92 : vector<8x128xf32> to vector<1x8x128xf32>
    tpu.vector_store %arg7[%c0_37, %c0_38, %c0_39], %95 {strides = array<i32>} : memref<1x8x128xf32, #tpu.memory_space<vmem>>, vector<1x8x128xf32>,
    return
  }
  func.func @transform_0(%arg0: i32, %arg1: i32) -> (i32, i32, i32) {
    %c0_i32 = arith.constant 0 : i32
    %c0_i32_0 = arith.constant 0 : i32
    %c0_i32_1 = arith.constant 0 : i32
    return %arg0, %c0_i32, %c0_i32_0 : i32, i32, i32
  }
  func.func @transform_1(%arg0: i32, %arg1: i32) -> (i32, i32, i32) {
    %c0_i32 = arith.constant 0 : i32
    %c0_i32_0 = arith.constant 0 : i32
    return %arg0, %c0_i32, %arg1 : i32, i32, i32
  }
  func.func @transform_2(%arg0: i32, %arg1: i32) -> (i32, i32) {
    %c0_i32 = arith.constant 0 : i32
    %c0_i32_0 = arith.constant 0 : i32
    %c0_i32_1 = arith.constant 0 : i32
    return %c0_i32, %c0_i32_0 : i32, i32
  }
  func.func @transform_3(%arg0: i32, %arg1: i32) -> (i32, i32) {
    %c0_i32 = arith.constant 0 : i32
    %c0_i32_0 = arith.constant 0 : i32
    %c0_i32_1 = arith.constant 0 : i32
    return %c0_i32, %c0_i32_0 : i32, i32
  }
  func.func @transform_4(%arg0: i32, %arg1: i32) -> (i32, i32) {
    %c0_i32 = arith.constant 0 : i32
    %c0_i32_0 = arith.constant 0 : i32
    %c0_i32_1 = arith.constant 0 : i32
    return %c0_i32, %c0_i32_0 : i32, i32
  }
  func.func @transform_5(%arg0: i32, %arg1: i32) -> (i32, i32, i32) {
    %c0_i32 = arith.constant 0 : i32
    %c0_i32_0 = arith.constant 0 : i32
    return %arg0, %c0_i32, %arg1 : i32, i32, i32
  }
}

</mosaic_0001>

<bundles_post_ra>
// kernel: tpu_custom_call.1
= control target key start
LH: loop header
LB: loop body
LE: loop exit
PB: predicated region body
PF: predicated region fallthrough
CT: control target
= control target key end

     0   :  { %10 = vsyncpa [#allocation4], 0  ;;  %s5321_s0 = inlined_call_operand.vmem [shape: f32[2,8,256], index: 0, kind: input, shape index: {}]   ;;  %s5322_s1 = inlined_call_operand.vmem [shape: f32[2,8,256], index: 1, kind: input, shape index: {}]   ;;  %s5323_s2 = inlined_call_operand.vmem [shape: bf16[384,8], index: 2, kind: input, shape index: {}]   ;;  %s5324_s3 = inlined_call_operand.vmem [shape: bf16[8,128], index: 3, kind: input, shape index: {}]   ;;  %s5325_s4 = inlined_call_operand.vmem [shape: f32[8,1], index: 4, kind: input, shape index: {}]   ;;  %s5326_s5 = inlined_call_operand.hbm [shape: f32[2,8,256], index: 5, kind: output, shape index: {}]  }
   0x1   :  { %12 = vsyncpa [#allocation4 + $0x1], 0  ;;  %s3650_s18 = smov 0   ;;  %s3652_s19 = smov 0  }
   0x2   :  { %s3654_s20 = smov 0   ;;  %s3656_s21 = smov 0  }
   0x3   :  { %s3658_s22 = smov 0   ;;  %s3660_s23 = smov 0  }
   0x4   :  { %s3662_s24 = smov 0   ;;  %s3664_s25 = smov 0  }
   0x5 LB: > { %s2883_s26 = sadd.s32 4294967295, %s3614_s25   ;;  %s2884_s27 = sadd.s32 4294967294, %s3614_s25   ;;  %s3614_s25 = sphi %s3664_s25, %s18_s25   ;;  %s3610_s24 = sphi %s3662_s24, %s5441_s24   ;;  %s3606_s23 = sphi %s3660_s23, %s5440_s23   ;;  %s3602_s22 = sphi %s3658_s22, %s5439_s22   ;;  %s3598_s21 = sphi %s3656_s21, %s5438_s21   ;;  %s3594_s20 = sphi %s3654_s20, %s5437_s20   ;;  %s3590_s19 = sphi %s3652_s19, %s5436_s19   ;;  %s3586_s18 = sphi %s3650_s18, %s5435_s18  }
   0x6   : > { %s27_s28 = sadd.s32 1, %s3606_s23  ;;  %s30_s29 = sadd.s32 1, %s3610_s24 }
   0x7   : > { %p28_p0 = scmp.ge.s32.totalorder %s27_s28, 2  ;;  %p166_p1 = scmp.ne.s32.totalorder %s3594_s20, %s3590_s19 }
   0x8   : > { %p167_p2 = scmp.eq.s32.totalorder %s2883_s26, 3  ;;  %p172_p5 = scmp.ne.s32.totalorder %s3590_s19, %s3586_s18 }
   0x9   : > { %s5443_s28 = smov (%p28_p0, %s27_s28), 0  ;;  %s5445_s29 = smov (!%p28_p0, %s30_s29), %s3610_s24 }
   0xa   : > { %s152_s30 = ssub.s32 %s3606_s23, %s5443_s28  ;;  %p3701_p3 = por %p167_p2, %p166_p1 }
   0xb   : > { %p32_p4 = scmp.ge.s32.totalorder %s5445_s29, 2  ;;  %p173_p6 = scmp.eq.s32.totalorder %s2884_s27, 3 }
   0xc   : > { %p2887_p7 = scmp.ge.s32.totalorder %s3614_s25, 1  ;;  %p219_p9 = scmp.lt.s32.totalorder %s3614_s25, 5 }
   0xd   : > { %s5447_s29 = smov (%p32_p4, %s5445_s29), 0  ;;  %p3710_p8 = por %p173_p6, %p172_p5 }
   0xe   : > { %s151_s8 = ssub.s32 %s3610_s24, %s5447_s29  ;;  %s156_s9 = sadd.s32 1, %s3594_s20 }
   0xf   : > { %s153_s10 = sor.u32 %s152_s30, %s151_s8  ;;  %p220_p10 = pnand %p2887_p7, %p219_p9 }
  0x10   : > { %p154_p11 = scmp.eq.s32.totalorder %s153_s10, 0 }
  0x11   : > { %223 = sbr.rel (%p220_p10) target bundleno = 3264 (0xcc0), region = 40 }
  0x12   : > { %s3719_s11 = scalar_select %p154_p11, %s3594_s20, %s156_s9  }
  0x18   : > { %p255_p12 = scmp.lt.s32.totalorder %s3602_s22, 1  ;;  %p262_p13 = scmp.lt.s32.totalorder %s3598_s21, 1  ;;  %v3112_v0 = vld [vmem:[%s5323_s2] sm:$0xff]   ;;  %vm363_vm0 = vcmask 64512   ;;  %v5327_v1 = vmov 0   ;;  %vm388_vm1 = vcmask 1043456  }
  0x19   : > { %3000 = vmatprep.mubr.msk.bf16.mxu0 %vm363_vm0, %v3112_v0  ;;  %679 = vmatprep.mubr.bf16.mxu1 %v5327_v1  ;;  %v3114_v9 = vld [vmem:[%s5323_s2 + $0x40] sm:$0xff]   ;;  %v3113_v11 = vld [vmem:[%s5323_s2 + $0x8] sm:$0xff]   ;;  %v3116_v13 = vld [vmem:[%s5323_s2 + $0x10] sm:$0xff]   ;;  %vm888_vm2 = vcmask 261120   ;;  %vm3618_vm3 = vmmov 0  }
  0x1a   : > { %s256_s14 = scalar_select %p255_p12, %s3602_s22, 1  ;;  %v3115_v12 = vld [vmem:[%s5323_s2 + $0x48] sm:$0xff]   ;;  %v3117_v14 = vld [vmem:[%s5323_s2 + $0x18] sm:$0xff]   ;;  %v3118_v15 = vld [vmem:[%s5323_s2 + $0x20] sm:$0xff]  }
  0x1b   : > { %s263_s15 = scalar_select %p262_p13, %s3598_s21, 1  ;;  %v3119_v16 = vld [vmem:[%s5323_s2 + $0x28] sm:$0xff]   ;;  %v3120_v17 = vld [vmem:[%s5323_s2 + $0x30] sm:$0xff]   ;;  %v3121_v18 = vld [vmem:[%s5323_s2 + $0x38] sm:$0xff]  }
  0x1c   : > { %s2891_s16 = sshll.u32 %s256_s14, 1  ;;  %s2979_s17 = sshll.u32 %s256_s14, 4 }
  0x1d   : > { %s265_s26 = sadd.s32 %s2891_s16, %s263_s15  ;;  %s259_s8 = scalar_lea.vmem %s5321_s0, %s2979_s17 }
  0x1e   : > { %s2892_s9 = sshll.u32 %s265_s26, 3  ;;  %v270_v2 = vld [vmem:[%s259_s8 + $0x8] sm:$0xff]  ;;  %v269_v3 = vld [vmem:[%s259_s8] sm:$0xff]  ;;  %s252_s16 = sand.u32 1, %s3590_s19  }
  0x1f   : > { %s267_s13 = scalar_lea.vmem %s5322_s1, %s2892_s9  ;;  %v272_v4 = vpack.c.bf16 %v270_v2, %v270_v2  ;;  %v271_v5 = vpack.c.bf16 %v269_v3, %v269_v3  ;;  %s2888_s17 = sshll.u32 %s252_s16, 3 }
  0x20   : > { %v273_v6 = vld [vmem:[%s267_s13] sm:$0xff]  ;;  %s2975_s26 = sshll.u32 %s3602_s22, 1  ;;  %s254_s8 = scalar_lea.vmem [#allocation3], %s2888_s17 }
  0x21   : > { %v274_v7 = vpack.c.bf16 %v273_v6, %v273_v6  ;;  %2925 = vmatprep.subr.msk.bf16.mxu1 %vm388_vm1, %v272_v4  ;;  %v642_v8 = vsel %vm388_vm1, %v271_v5, 0  ;;  %s2789_s27 = sadd.s32 %s3598_s21, %s2975_s26  ;;  %s2793_s9 = sshll.u32 %s254_s8, 4  ;;  %s5270_s9 = int_to_ptr.vmem [resolvable:$true] %s2793_s9 }
  0x22   : > { %648 = vmatpush1.bf16.msra.mxu1 %v642_v8  ;;  %s2976_s30 = sshll.u32 %s2789_s27, 7  ;;  %s2778_s21 = scalar_lea.sflag [#allocation4], %s252_s16 }
  0x23   : > { %3036 = vmatprep.subr.msk.bf16.mxu0 %vm388_vm1, %v274_v7  ;;  %v390_v10 = vsel %vm388_vm1, %v274_v7, 0  ;;  %s5268_s13 = scalar_lea.hbm %s5326_s5, %s2976_s30  ;;  %s3520_s22 = scalar_lea.vmem %s5270_s9, 128 }
  0x24   : > { %2999 = vmatpush3.bf16.msra.mxu0 %v390_v10  ;;  %p3521_p0 = scmp.ne.s32.totalorder %s5270_s9, %s3520_s22  ;;  %s3619_s14 = smov [#allocation3]  }
  0x25   : > { %2926 = vmatmul.mubr.msk.bf16.vlgmr.msra.gmra.mrb[0].mxu1 %vm363_vm0, %v3114_v9  ;;  %s3524_s15 = sshll.u32 %s3619_s14, 4  ;;  %s3525_s15 = int_to_ptr.vmem [resolvable:$false] %s3524_s15 }
  0x26   : > { %689 = vmatprep.mubr.bf16.mxu1 %v5327_v1  ;;  %p3522_p1 = pnand %p3521_p0, %p3701_p3  ;;  %s3526_s17 = scalar_lea.vmem %s3525_s15, 256 }
  0x27   : > { %3001 = vmatmul.mubr.msk.bf16.vlgmr.msra.gmra.mrb[0].mxu0 %vm363_vm0, %v3113_v11  ;;  %p3527_p4 = scmp.lt.s32.totalorder %s5270_s9, %s3525_s15  ;;  %p3528_p5 = scmp.lt.s32.totalorder %s3526_s17, %s3520_s22 }
  0x28   : > { %3004 = vmatprep.mubr.msk.bf16.mxu0 %vm363_vm0, %v3116_v13  ;;  %p3523_p2 = pneg %p3522_p1 }
  0x29   : > { %p3529_p6 = por %p3528_p5, %p3527_p4 }
  0x2b   : > { %p3530_p7 = pnand %p3529_p6, %p3523_p2 }
  0x2d   : > { %2927 = vmatmul.mubr.msk.bf16.gmra.mrb[4].mxu1 %vm363_vm0, %v3115_v12 }
  0x2e   : > { %699 = vmatprep.mubr.bf16.mxu1 %v5327_v1 }
  0x2f   : > { %3005 = vmatmul.mubr.msk.bf16.gmra.mrb[4].mxu0 %vm363_vm0, %v3117_v14 }
  0x30   : > { %3008 = vmatprep.mubr.msk.bf16.mxu0 %vm363_vm0, %v3118_v15 }
  0x37   : > { %3009 = vmatmul.mubr.msk.bf16.gmra.mrb[8].mxu0 %vm363_vm0, %v3119_v16  ;;  %v3122_v16 = vld [vmem:[%s5323_s2 + $0x50] sm:$0xff]  }
  0x38   : > { %3012 = vmatprep.mubr.msk.bf16.mxu0 %vm363_vm0, %v3120_v17  ;;  %2928 = vmatmul.mubr.msk.bf16.gmra.mrb[8].mxu1 %vm363_vm0, %v3122_v16  ;;  %v3123_v17 = vld [vmem:[%s5323_s2 + $0x58] sm:$0xff]  }
  0x39   : > { %709 = vmatprep.mubr.bf16.mxu1 %v5327_v1 }
  0x3f   : > { %3013 = vmatmul.mubr.msk.bf16.gmra.mrb[12].mxu0 %vm363_vm0, %v3121_v18  ;;  %v3124_v18 = vld [vmem:[%s5323_s2 + $0x60] sm:$0xff]  }
  0x40   : > { %945 = vmatprep.mubr.bf16.mxu0 %v5327_v1  ;;  %2929 = vmatmul.mubr.msk.bf16.gmra.mrb[12].mxu1 %vm363_vm0, %v3123_v17 }
  0x41   : > { %719 = vmatprep.mubr.bf16.mxu1 %v5327_v1 }
  0x48   : > { %2930 = vmatmul.mubr.msk.bf16.gmra.mrb[16].mxu1 %vm363_vm0, %v3124_v18 }
  0x49   : > { %729 = vmatprep.mubr.bf16.mxu1 %v5327_v1 }
  0xf8   : > { %v681_v19 = vpop.f32.mrb[0].mxu1 }
  0xf9   : > { %v683_v20 = vpop.f32.mrb[1].mxu1 }
  0xfa   : > { %v3002_v21 = vpop.f32.mrb[0].mxu0  ;;  %v685_v22 = vpop.f32.mrb[2].mxu1 }
  0xfb   : > { %v426_v23 = vpop.f32.mrb[1].mxu0  ;;  %v840_v24 = vpack.c.bf16 %v685_v22, %v681_v19  ;;  %v687_v25 = vpop.f32.mrb[3].mxu1  ;;  %v491_v28 = vmul.f32 0.17677669, %v3002_v21  ;;  %v3125_v19 = vld [vmem:[%s5323_s2 + $0x68] sm:$0xff]  }
  0xfc   : > { %v3003_v26 = vpop.f32.mrb[2].mxu0  ;;  %v841_v27 = vpack.c.bf16 %v687_v25, %v683_v20  ;;  %v489_v31 = vmul.f32 0.17677669, %v426_v23  ;;  %2931 = vmatmul.mubr.msk.bf16.gmra.mrb[20].mxu1 %vm363_vm0, %v3125_v19 }
  0xfd   : > { %v492_v29 = vmul.f32 0.17677669, %v3003_v26  ;;  %v429_v30 = vpop.f32.mrb[3].mxu0  ;;  %739 = vmatprep.mubr.bf16.mxu1 %v5327_v1 }
  0xfe   : > { %v490_v32 = vmul.f32 0.17677669, %v429_v30  ;;  %913 = vmatprep.subr.bf16.mxu0 %v841_v27 }
  0xff   : > { %v506_v33 = vpack.c.bf16 %v492_v29, %v491_v28  ;;  %914 = vmatpush1.bf16.msra.mxu0 %v840_v24 }
 0x100   : > { %v505_v34 = vpack.c.bf16 %v490_v32, %v489_v31  ;;  %v691_v35 = vpop.f32.mrb[4].mxu1 }
 0x101   : > { %v693_v36 = vpop.f32.mrb[5].mxu1 }
 0x102   : > { %872 = vxpose.xlu0.c.b16.start [1/2] (short) %v505_v34, 128  ;;  %v695_v37 = vpop.f32.mrb[6].mxu1  ;;  %v3006_v41 = vpop.f32.mrb[4].mxu0 }
 0x103   : > { %v842_v38 = vpack.c.bf16 %v695_v37, %v691_v35  ;;  %v697_v39 = vpop.f32.mrb[7].mxu1  ;;  %v3775_v42 = vmul.f32 0.17677669, %v3006_v41  ;;  %v442_v43 = vpop.f32.mrb[5].mxu0 }
 0x104   : > { %v843_v40 = vpack.c.bf16 %v697_v39, %v693_v36  ;;  %v3007_v44 = vpop.f32.mrb[6].mxu0  ;;  %v3820_v13 = vmul.f32 0.17677669, %v442_v43 }
 0x105   : > { %v3777_v45 = vmul.f32 0.17677669, %v3007_v44  ;;  %v445_v46 = vpop.f32.mrb[7].mxu0 }
 0x106   : > { %873 = vxpose.xlu0.c.b16.end [2/2] (short) %v506_v33, 128  ;;  %915 = vmatprep.subr.bf16.mxu0 %v843_v40  ;;  %v3822_v14 = vmul.f32 0.17677669, %v445_v46 }
 0x107   : > { %916 = vmatpush1.bf16.msra.mxu0 %v842_v38  ;;  %v3126_v38 = vld [vmem:[%s5323_s2 + $0x70] sm:$0xff]  }
 0x108   : > { %2932 = vmatmul.mubr.msk.bf16.gmra.mrb[24].mxu1 %vm363_vm0, %v3126_v38 }
 0x109   : > { %749 = vmatprep.mubr.bf16.mxu1 %v5327_v1 }
 0x10a   : > { %v3010_v48 = vpop.f32.mrb[8].mxu0 }
 0x10b   : > { %v3781_v49 = vmul.f32 0.17677669, %v3010_v48  ;;  %v458_v50 = vpop.f32.mrb[9].mxu0  ;;  %v3127_v48 = vld [vmem:[%s5323_s2 + $0x78] sm:$0xff]  }
 0x10c   : > { %v3783_v51 = vmul.f32 0.17677669, %v458_v50  ;;  %v3011_v52 = vpop.f32.mrb[10].mxu0 }
 0x10d   : > { %5355 = vst [vmem:[#allocation6_spill] sm:$0xff] %v3781_v49  ;;  %v3785_v53 = vmul.f32 0.17677669, %v3011_v52  ;;  %v461_v54 = vpop.f32.mrb[11].mxu0 }
 0x10e   : > { %v3787_v56 = vmul.f32 0.17677669, %v461_v54 }
 0x110   : > { %2933 = vmatmul.mubr.msk.bf16.gmra.mrb[28].mxu1 %vm363_vm0, %v3127_v48 }
 0x111   : > { %759 = vmatprep.mubr.bf16.mxu1 %v5327_v1 }
 0x112   : > { %v3014_v59 = vpop.f32.mrb[12].mxu0 }
 0x113   : > { %v3795_v60 = vmul.f32 0.17677669, %v3014_v59  ;;  %v474_v61 = vpop.f32.mrb[13].mxu0 }
 0x114   : > { %v3797_v63 = vmul.f32 0.17677669, %v474_v61  ;;  %v3015_v0 = vpop.f32.mrb[14].mxu0 }
 0x115   : > { %5356 = vst [vmem:[#allocation7_spill] sm:$0xff] %v3795_v60  ;;  %v3799_v2 = vmul.f32 0.17677669, %v3015_v0  ;;  %v477_v3 = vpop.f32.mrb[15].mxu0 }
 0x116   : > { %5357 = vst [vmem:[#allocation8_spill] sm:$0xff] %v3797_v63  ;;  %v3801_v4 = vmul.f32 0.17677669, %v477_v3 }
 0x117   : > { %5358 = vst [vmem:[#allocation9_spill] sm:$0xff] %v3799_v2 }
 0x118   : > { %5359 = vst [vmem:[#allocation10_spill] sm:$0xff] %v3801_v4  ;;  %v5376_v4 = vpack.c.bf16 %v3822_v14, %v3820_v13 }
 0x168   : > { %v880_v55 = vpop.trf.xlu0 }
 0x169   : > { %2942 = vmatmul.mubr.msk.bf16.vlgmr.msra.gmra.mrb[16].mxu0 %vm888_vm2, %v880_v55 }
 0x16a   : > { %955 = vmatprep.mubr.bf16.mxu0 %v5327_v1 }
 0x16c   : > { %v881_v62 = vpop.trf.xlu0 }
 0x170   : > { %v882_v7 = vpop.trf.xlu0 }
 0x171   : > { %2943 = vmatmul.mubr.msk.bf16.gmra.mrb[20].mxu0 %vm888_vm2, %v881_v62  ;;  %v3128_v62 = vld [vmem:[%s5323_s2 + $0x80] sm:$0xff]  }
 0x172   : > { %965 = vmatprep.mubr.bf16.mxu0 %v5327_v1  ;;  %2934 = vmatmul.mubr.msk.bf16.gmra.mrb[32].mxu1 %vm363_vm0, %v3128_v62 }
 0x173   : > { %769 = vmatprep.mubr.bf16.mxu1 %v5327_v1 }
 0x174   : > { %v883_v8 = vpop.trf.xlu0 }
 0x178   : > { %v884_v9 = vpop.trf.xlu0 }
 0x179   : > { %2944 = vmatmul.mubr.msk.bf16.gmra.mrb[24].mxu0 %vm888_vm2, %v882_v7 }
 0x17a   : > { %975 = vmatprep.mubr.bf16.mxu0 %v5327_v1 }
 0x17c   : > { %v885_v10 = vpop.trf.xlu0 }
 0x180   : > { %v886_v11 = vpop.trf.xlu0 }
 0x181   : > { %2945 = vmatmul.mubr.msk.bf16.gmra.mrb[28].mxu0 %vm888_vm2, %v883_v8 }
 0x182   : > { %985 = vmatprep.mubr.bf16.mxu0 %v5327_v1 }
 0x184   : > { %v887_v12 = vpop.trf.xlu0 }
 0x189   : > { %2946 = vmatmul.mubr.msk.bf16.gmra.mrb[32].mxu0 %vm888_vm2, %v884_v9 }
 0x18a   : > { %995 = vmatprep.mubr.bf16.mxu0 %v5327_v1 }
 0x191   : > { %2947 = vmatmul.mubr.msk.bf16.gmra.mrb[36].mxu0 %vm888_vm2, %v885_v10 }
 0x192   : > { %1005 = vmatprep.mubr.bf16.mxu0 %v5327_v1 }
 0x199   : > { %2948 = vmatmul.mubr.msk.bf16.gmra.mrb[40].mxu0 %vm888_vm2, %v886_v11  ;;  %v3129_v11 = vld [vmem:[%s5323_s2 + $0x88] sm:$0xff]  }
 0x19a   : > { %1015 = vmatprep.mubr.bf16.mxu0 %v5327_v1  ;;  %2935 = vmatmul.mubr.msk.bf16.gmra.mrb[36].mxu1 %vm363_vm0, %v3129_v11 }
 0x19b   : > { %779 = vmatprep.mubr.bf16.mxu1 %v5327_v1 }
 0x1a1   : > { %2949 = vmatmul.mubr.msk.bf16.gmra.mrb[44].mxu0 %vm888_vm2, %v887_v12 }
 0x23c   : > { %v3846_v20 = vpop.f32.mrb[16].mxu0 }
 0x23d   : > { %v3848_v21 = vpop.f32.mrb[17].mxu0 }
 0x23e   : > { %v3850_v22 = vpop.f32.mrb[18].mxu0  ;;  %v1026_v23 = vmax.f32 %v3846_v20, %v3848_v21 }
 0x23f   : > { %v3854_v24 = vpop.f32.mrb[19].mxu0 }
 0x240   : > { %1027 = vmax.xlane.f32.xlu1 %v1026_v23  ;;  %v1029_v25 = vmax.f32 %v3850_v22, %v3854_v24 }
 0x244   : > { %1030 = vmax.xlane.f32.xlu1 %v1029_v25  ;;  %v3858_v26 = vpop.f32.mrb[20].mxu0 }
 0x245   : > { %v3860_v27 = vpop.f32.mrb[21].mxu0 }
 0x246   : > { %v3862_v28 = vpop.f32.mrb[22].mxu0  ;;  %v1032_v29 = vmax.f32 %v3858_v26, %v3860_v27 }
 0x247   : > { %v3866_v30 = vpop.f32.mrb[23].mxu0 }
 0x248   : > { %1033 = vmax.xlane.f32.xlu0 %v1032_v29  ;;  %v1035_v31 = vmax.f32 %v3862_v28, %v3866_v30 }
 0x24a   : > { %1036 = vmax.xlane.f32.xlu1 %v1035_v31 }
 0x24c   : > { %v3870_v32 = vpop.f32.mrb[24].mxu0 }
 0x24d   : > { %v3872_v33 = vpop.f32.mrb[25].mxu0 }
 0x24e   : > { %v3874_v34 = vpop.f32.mrb[26].mxu0  ;;  %v1038_v35 = vmax.f32 %v3870_v32, %v3872_v33 }
 0x24f   : > { %v3878_v36 = vpop.f32.mrb[27].mxu0 }
 0x250   : > { %1039 = vmax.xlane.f32.xlu1 %v1038_v35  ;;  %v1041_v37 = vmax.f32 %v3874_v34, %v3878_v36 }
 0x254   : > { %1042 = vmax.xlane.f32.xlu1 %v1041_v37  ;;  %v3885_v39 = vpop.f32.mrb[28].mxu0 }
 0x255   : > { %v3888_v40 = vpop.f32.mrb[29].mxu0 }
 0x256   : > { %v3891_v41 = vpop.f32.mrb[30].mxu0  ;;  %v1044_v43 = vmax.f32 %v3885_v39, %v3888_v40 }
 0x257   : > { %v3895_v44 = vpop.f32.mrb[31].mxu0 }
 0x258   : > { %1045 = vmax.xlane.f32.xlu1 %v1044_v43  ;;  %v1047_v46 = vmax.f32 %v3891_v41, %v3895_v44 }
 0x25c   : > { %1048 = vmax.xlane.f32.xlu1 %v1047_v46  ;;  %v3902_v50 = vpop.f32.mrb[32].mxu0 }
 0x25d   : > { %v3905_v52 = vpop.f32.mrb[33].mxu0 }
 0x25e   : > { %v3908_v54 = vpop.f32.mrb[34].mxu0  ;;  %v1050_v55 = vmax.f32 %v3902_v50, %v3905_v52 }
 0x25f   : > { %v3912_v59 = vpop.f32.mrb[35].mxu0 }
 0x260   : > { %1051 = vmax.xlane.f32.xlu1 %v1050_v55  ;;  %v1053_v61 = vmax.f32 %v3908_v54, %v3912_v59 }
 0x264   : > { %1054 = vmax.xlane.f32.xlu1 %v1053_v61  ;;  %v3919_v0 = vpop.f32.mrb[36].mxu0 }
 0x265   : > { %v3922_v3 = vpop.f32.mrb[37].mxu0 }
 0x266   : > { %v3925_v7 = vpop.f32.mrb[38].mxu0  ;;  %v1056_v8 = vmax.f32 %v3919_v0, %v3922_v3 }
 0x267   : > { %v3929_v9 = vpop.f32.mrb[39].mxu0 }
 0x268   : > { %1057 = vmax.xlane.f32.xlu1 %v1056_v8  ;;  %v1059_v10 = vmax.f32 %v3925_v7, %v3929_v9 }
 0x26c   : > { %1060 = vmax.xlane.f32.xlu1 %v1059_v10  ;;  %v3936_v12 = vpop.f32.mrb[40].mxu0 }
 0x26d   : > { %v3939_v16 = vpop.f32.mrb[41].mxu0 }
 0x26e   : > { %v3942_v17 = vpop.f32.mrb[42].mxu0  ;;  %v1062_v18 = vmax.f32 %v3936_v12, %v3939_v16 }
 0x26f   : > { %v3946_v19 = vpop.f32.mrb[43].mxu0 }
 0x270   : > { %1063 = vmax.xlane.f32.xlu1 %v1062_v18  ;;  %v1065_v23 = vmax.f32 %v3942_v17, %v3946_v19 }
 0x272   : > { %1066 = vmax.xlane.f32.xlu0 %v1065_v23 }
 0x274   : > { %v3950_v25 = vpop.f32.mrb[44].mxu0 }
 0x275   : > { %v3952_v29 = vpop.f32.mrb[45].mxu0 }
 0x276   : > { %v3954_v31 = vpop.f32.mrb[46].mxu0  ;;  %v1068_v35 = vmax.f32 %v3950_v25, %v3952_v29 }
 0x277   : > { %v3958_v37 = vpop.f32.mrb[47].mxu0 }
 0x278   : > { %1069 = vmax.xlane.f32.xlu1 %v1068_v35  ;;  %v1071_v38 = vmax.f32 %v3954_v31, %v3958_v37 }
 0x27a   : > { %1072 = vmax.xlane.f32.xlu0 %v1071_v38 }
 0x2cd   : > { %v1028_v43 = vpop.xlane.xlu1 %1027 }
 0x2ce   : > { %v1074_v46 = vsub.f32 %v3846_v20, %v1028_v43  ;;  %v1075_v48 = vsub.f32 %v3848_v21, %v1028_v43 }
 0x2d0   : > { %v1106_v55 = vmul.f32 1.442695, %v1074_v46  ;;  %v1108_v61 = vmul.f32 1.442695, %v1075_v48 }
 0x2d1   : > { %v1031_v62 = vpop.xlane.xlu1 %1030 }
 0x2d2   : > { %3136 = vpow2.f32 %v1106_v55  ;;  %v1076_v8 = vsub.f32 %v3850_v22, %v1031_v62  ;;  %v1077_v10 = vsub.f32 %v3854_v24, %v1031_v62 }
 0x2d3   : > { %3138 = vpow2.f32 %v1108_v61 }
 0x2d4   : > { %v1110_v11 = vmul.f32 1.442695, %v1076_v8  ;;  %v1112_v18 = vmul.f32 1.442695, %v1077_v10 }
 0x2d5   : > { %v1034_v23 = vpop.xlane.xlu0 %1033 }
 0x2d6   : > { %3140 = vpow2.f32 %v1110_v11  ;;  %v1078_v35 = vsub.f32 %v3858_v26, %v1034_v23  ;;  %v1079_v38 = vsub.f32 %v3860_v27, %v1034_v23 }
 0x2d7   : > { %3142 = vpow2.f32 %v1112_v18  ;;  %v1037_v20 = vpop.xlane.xlu1 %1036 }
 0x2d8   : > { %v1114_v21 = vmul.f32 1.442695, %v1078_v35  ;;  %v1116_v43 = vmul.f32 1.442695, %v1079_v38  ;;  %v1080_v46 = vsub.f32 %v3862_v28, %v1037_v20  ;;  %v1081_v48 = vsub.f32 %v3866_v30, %v1037_v20 }
 0x2da   : > { %3144 = vpow2.f32 %v1114_v21  ;;  %v1118_v22 = vmul.f32 1.442695, %v1080_v46  ;;  %v1120_v24 = vmul.f32 1.442695, %v1081_v48 }
 0x2db   : > { %3146 = vpow2.f32 %v1116_v43 }
 0x2dc   : > { %v3970_v55 = vpop.eup %3136  ;;  %3148 = vpow2.f32 %v1118_v22 }
 0x2dd   : > { %v3972_v61 = vpop.eup %3138  ;;  %3150 = vpow2.f32 %v1120_v24  ;;  %v1040_v26 = vpop.xlane.xlu1 %1039 }
 0x2de   : > { %v1082_v27 = vsub.f32 %v3870_v32, %v1040_v26  ;;  %v1083_v62 = vsub.f32 %v3872_v33, %v1040_v26  ;;  %v1170_v28 = vadd.f32 %v3972_v61, %v3970_v55 }
 0x2e0   : > { %v3978_v8 = vpop.eup %3140  ;;  %v1122_v30 = vmul.f32 1.442695, %v1082_v27  ;;  %v1124_v10 = vmul.f32 1.442695, %v1083_v62  ;;  %1171 = vadd.xlane.f32.xlu1 %v1170_v28 }
 0x2e1   : > { %v3980_v11 = vpop.eup %3142  ;;  %v1043_v18 = vpop.xlane.xlu1 %1042 }
 0x2e2   : > { %3152 = vpow2.f32 %v1122_v30  ;;  %v1084_v23 = vsub.f32 %v3874_v34, %v1043_v18  ;;  %v1085_v35 = vsub.f32 %v3878_v36, %v1043_v18  ;;  %v1173_v32 = vadd.f32 %v3980_v11, %v3978_v8 }
 0x2e3   : > { %3154 = vpow2.f32 %v1124_v10 }
 0x2e4   : > { %v3986_v33 = vpop.eup %3144  ;;  %v1126_v38 = vmul.f32 1.442695, %v1084_v23  ;;  %v1128_v20 = vmul.f32 1.442695, %v1085_v35  ;;  %1174 = vadd.xlane.f32.xlu0 %v1173_v32 }
 0x2e5   : > { %v3988_v21 = vpop.eup %3146  ;;  %v1046_v43 = vpop.xlane.xlu1 %1045 }
 0x2e6   : > { %v3990_v46 = vpop.eup %3148  ;;  %3156 = vpow2.f32 %v1126_v38  ;;  %v1086_v48 = vsub.f32 %v3885_v39, %v1046_v43  ;;  %v1087_v34 = vsub.f32 %v3888_v40, %v1046_v43  ;;  %v1176_v36 = vadd.f32 %v3988_v21, %v3986_v33 }
 0x2e7   : > { %v3996_v22 = vpop.eup %3150  ;;  %3158 = vpow2.f32 %v1128_v20 }
 0x2e8   : > { %v1130_v24 = vmul.f32 1.442695, %v1086_v48  ;;  %v1132_v26 = vmul.f32 1.442695, %v1087_v34  ;;  %1177 = vadd.xlane.f32.xlu1 %v1176_v36  ;;  %v1179_v27 = vadd.f32 %v3996_v22, %v3990_v46 }
 0x2e9   : > { %v1049_v62 = vpop.xlane.xlu1 %1048 }
 0x2ea   : > { %3160 = vpow2.f32 %v1130_v24  ;;  %v1088_v28 = vsub.f32 %v3891_v41, %v1049_v62  ;;  %v1089_v39 = vsub.f32 %v3895_v44, %v1049_v62  ;;  %1180 = vadd.xlane.f32.xlu0 %v1179_v27 }
 0x2eb   : > { %3162 = vpow2.f32 %v1132_v26 }
 0x2ec   : > { %v4002_v40 = vpop.eup %3152  ;;  %v1134_v30 = vmul.f32 1.442695, %v1088_v28  ;;  %v1136_v10 = vmul.f32 1.442695, %v1089_v39 }
 0x2ed   : > { %v4004_v18 = vpop.eup %3154  ;;  %v1052_v23 = vpop.xlane.xlu1 %1051 }
 0x2ee   : > { %3164 = vpow2.f32 %v1134_v30  ;;  %v1090_v35 = vsub.f32 %v3902_v50, %v1052_v23  ;;  %v1091_v32 = vsub.f32 %v3905_v52, %v1052_v23  ;;  %v1182_v38 = vadd.f32 %v4004_v18, %v4002_v40 }
 0x2ef   : > { %3166 = vpow2.f32 %v1136_v10 }
 0x2f0   : > { %v4010_v41 = vpop.eup %3156  ;;  %v1138_v44 = vmul.f32 1.442695, %v1090_v35  ;;  %v1140_v20 = vmul.f32 1.442695, %v1091_v32  ;;  %1183 = vadd.xlane.f32.xlu1 %v1182_v38 }
 0x2f1   : > { %v4012_v43 = vpop.eup %3158  ;;  %v1055_v48 = vpop.xlane.xlu1 %1054 }
 0x2f2   : > { %3168 = vpow2.f32 %v1138_v44  ;;  %v1092_v34 = vsub.f32 %v3908_v54, %v1055_v48  ;;  %v1093_v36 = vsub.f32 %v3912_v59, %v1055_v48  ;;  %v1185_v50 = vadd.f32 %v4012_v43, %v4010_v41 }
 0x2f3   : > { %3170 = vpow2.f32 %v1140_v20 }
 0x2f4   : > { %v4018_v52 = vpop.eup %3160  ;;  %v1142_v24 = vmul.f32 1.442695, %v1092_v34  ;;  %v1144_v26 = vmul.f32 1.442695, %v1093_v36  ;;  %1186 = vadd.xlane.f32.xlu0 %v1185_v50 }
 0x2f5   : > { %v4020_v27 = vpop.eup %3162  ;;  %v1058_v62 = vpop.xlane.xlu1 %1057 }
 0x2f6   : > { %3172 = vpow2.f32 %v1142_v24  ;;  %v1094_v28 = vsub.f32 %v3919_v0, %v1058_v62  ;;  %v1095_v39 = vsub.f32 %v3922_v3, %v1058_v62  ;;  %v1188_v54 = vadd.f32 %v4020_v27, %v4018_v52 }
 0x2f7   : > { %3174 = vpow2.f32 %v1144_v26 }
 0x2f8   : > { %v4026_v59 = vpop.eup %3164  ;;  %v1146_v30 = vmul.f32 1.442695, %v1094_v28  ;;  %v1148_v10 = vmul.f32 1.442695, %v1095_v39  ;;  %1189 = vadd.xlane.f32.xlu1 %v1188_v54 }
 0x2f9   : > { %v4028_v23 = vpop.eup %3166  ;;  %v1061_v35 = vpop.xlane.xlu1 %1060 }
 0x2fa   : > { %3176 = vpow2.f32 %v1146_v30  ;;  %v1096_v32 = vsub.f32 %v3925_v7, %v1061_v35  ;;  %v1097_v38 = vsub.f32 %v3929_v9, %v1061_v35  ;;  %v1191_v0 = vadd.f32 %v4028_v23, %v4026_v59 }
 0x2fb   : > { %3178 = vpow2.f32 %v1148_v10 }
 0x2fc   : > { %v4034_v3 = vpop.eup %3168  ;;  %v1150_v44 = vmul.f32 1.442695, %v1096_v32  ;;  %v1152_v20 = vmul.f32 1.442695, %v1097_v38  ;;  %1192 = vadd.xlane.f32.xlu0 %v1191_v0  ;;  %v4058_v0 = vpop.f32.mrb[8].mxu1 }
 0x2fd   : > { %v4036_v48 = vpop.eup %3170  ;;  %v1064_v34 = vpop.xlane.xlu1 %1063 }
 0x2fe   : > { %3180 = vpow2.f32 %v1150_v44  ;;  %v1098_v36 = vsub.f32 %v3936_v12, %v1064_v34  ;;  %v1099_v50 = vsub.f32 %v3939_v16, %v1064_v34  ;;  %v1194_v7 = vadd.f32 %v4036_v48, %v4034_v3 }
 0x2ff   : > { %3182 = vpow2.f32 %v1152_v20  ;;  %v1067_v9 = vpop.xlane.xlu0 %1066  ;;  %v4060_v20 = vpop.f32.mrb[9].mxu1 }
 0x300   : > { %v4042_v24 = vpop.eup %3172  ;;  %v1154_v26 = vmul.f32 1.442695, %v1098_v36  ;;  %v1156_v62 = vmul.f32 1.442695, %v1099_v50  ;;  %v1100_v28 = vsub.f32 %v3942_v17, %v1067_v9  ;;  %v1101_v39 = vsub.f32 %v3946_v19, %v1067_v9  ;;  %1195 = vadd.xlane.f32.xlu1 %v1194_v7 }
 0x301   : > { %v4046_v54 = vpop.eup %3174 }
 0x302   : > { %3184 = vpow2.f32 %v1154_v26  ;;  %v1158_v12 = vmul.f32 1.442695, %v1100_v28  ;;  %v1160_v30 = vmul.f32 1.442695, %v1101_v39  ;;  %v1197_v16 = vadd.f32 %v4046_v54, %v4042_v24 }
 0x303   : > { %3186 = vpow2.f32 %v1156_v62 }
 0x304   : > { %v4050_v10 = vpop.eup %3176  ;;  %3188 = vpow2.f32 %v1158_v12  ;;  %1198 = vadd.xlane.f32.xlu0 %v1197_v16 }
 0x305   : > { %v4052_v35 = vpop.eup %3178  ;;  %3190 = vpow2.f32 %v1160_v30  ;;  %v1070_v17 = vpop.xlane.xlu1 %1069 }
 0x306   : > { %v1102_v19 = vsub.f32 %v3950_v25, %v1070_v17  ;;  %v1103_v32 = vsub.f32 %v3952_v29, %v1070_v17  ;;  %v1200_v38 = vadd.f32 %v4052_v35, %v4050_v10  ;;  %v4068_v29 = vpop.f32.mrb[10].mxu1 }
 0x307   : > { %v1073_v44 = vpop.xlane.xlu0 %1072  ;;  %v4072_v39 = vpop.f32.mrb[11].mxu1 }
 0x308   : > { %v4062_v34 = vpop.eup %3180  ;;  %v1162_v36 = vmul.f32 1.442695, %v1102_v19  ;;  %v1164_v50 = vmul.f32 1.442695, %v1103_v32  ;;  %1201 = vadd.xlane.f32.xlu1 %v1200_v38  ;;  %v1104_v7 = vsub.f32 %v3954_v31, %v1073_v44  ;;  %v1105_v9 = vsub.f32 %v3958_v37, %v1073_v44  ;;  %v4086_v19 = vpop.f32.mrb[12].mxu1 }
 0x309   : > { %v4066_v25 = vpop.eup %3182  ;;  %v4090_v38 = vpop.f32.mrb[13].mxu1 }
 0x30a   : > { %3192 = vpow2.f32 %v1162_v36  ;;  %v1166_v26 = vmul.f32 1.442695, %v1104_v7  ;;  %v1168_v62 = vmul.f32 1.442695, %v1105_v9  ;;  %v1203_v28 = vadd.f32 %v4066_v25, %v4062_v34  ;;  %v4094_v36 = vpop.f32.mrb[14].mxu1 }
 0x30b   : > { %3194 = vpow2.f32 %v1164_v50  ;;  %v4098_v7 = vpop.f32.mrb[15].mxu1 }
 0x30c   : > { %v4078_v37 = vpop.eup %3184  ;;  %3196 = vpow2.f32 %v1166_v26  ;;  %1204 = vadd.xlane.f32.xlu0 %v1203_v28  ;;  %v4110_v5 = vpop.f32.mrb[16].mxu1 }
 0x30d   : > { %v4080_v30 = vpop.eup %3186  ;;  %3198 = vpow2.f32 %v1168_v62  ;;  %5360 = vst [vmem:[#allocation11_spill] sm:$0xff] %v4110_v5  ;;  %v4114_v6 = vpop.f32.mrb[17].mxu1 }
 0x30e   : > { %v4082_v16 = vpop.eup %3188  ;;  %v1206_v17 = vadd.f32 %v4080_v30, %v4078_v37  ;;  %5361 = vst [vmem:[#allocation12_spill] sm:$0xff] %v4114_v6  ;;  %v4118_v58 = vpop.f32.mrb[18].mxu1 }
 0x30f   : > { %v4088_v32 = vpop.eup %3190  ;;  %5362 = vst [vmem:[#allocation13_spill] sm:$0xff] %v4118_v58  ;;  %v4122_v50 = vpop.f32.mrb[19].mxu1 }
 0x310   : > { %1207 = vadd.xlane.f32.xlu1 %v1206_v17  ;;  %v1209_v44 = vadd.f32 %v4088_v32, %v4082_v16  ;;  %5363 = vst [vmem:[#allocation14_spill] sm:$0xff] %v4122_v50  ;;  %v4126_v12 = vpop.f32.mrb[20].mxu1 }
 0x311   : > { %5364 = vst [vmem:[#allocation15_spill] sm:$0xff] %v4126_v12  ;;  %v4128_v31 = vpop.f32.mrb[21].mxu1 }
 0x312   : > { %1210 = vadd.xlane.f32.xlu0 %v1209_v44  ;;  %5365 = vst [vmem:[#allocation16_spill] sm:$0xff] %v4128_v31  ;;  %v4130_v47 = vpop.f32.mrb[22].mxu1 }
 0x313   : > { %5366 = vst [vmem:[#allocation17_spill] sm:$0xff] %v4130_v47  ;;  %v4134_v15 = vpop.f32.mrb[23].mxu1 }
 0x314   : > { %v4102_v26 = vpop.eup %3192  ;;  %5367 = vst [vmem:[#allocation18_spill] sm:$0xff] %v4134_v15  ;;  %v4138_v1 = vpop.f32.mrb[24].mxu1 }
 0x315   : > { %v4104_v62 = vpop.eup %3194  ;;  %5368 = vst [vmem:[#allocation19_spill] sm:$0xff] %v4138_v1  ;;  %v4140_v60 = vpop.f32.mrb[25].mxu1 }
 0x316   : > { %v4106_v28 = vpop.eup %3196  ;;  %v1212_v17 = vadd.f32 %v4104_v62, %v4102_v26  ;;  %5369 = vst [vmem:[#allocation20_spill] sm:$0xff] %v4140_v60  ;;  %v4142_v2 = vpop.f32.mrb[26].mxu1 }
 0x317   : > { %v4112_v44 = vpop.eup %3198  ;;  %5370 = vst [vmem:[#allocation21_spill] sm:$0xff] %v4142_v2  ;;  %v4146_v63 = vpop.f32.mrb[27].mxu1 }
 0x318   : > { %1213 = vadd.xlane.f32.xlu1 %v1212_v17  ;;  %v1215_v57 = vadd.f32 %v4112_v44, %v4106_v28  ;;  %5371 = vst [vmem:[#allocation22_spill] sm:$0xff] %v4146_v63  ;;  %v4150_v17 = vpop.f32.mrb[28].mxu1 }
 0x319   : > { %5372 = vst [vmem:[#allocation23_spill] sm:$0xff] %v4150_v17  ;;  %v4152_v12 = vpop.f32.mrb[29].mxu1 }
 0x31a   : > { %1216 = vadd.xlane.f32.xlu0 %v1215_v57  ;;  %5373 = vst [vmem:[#allocation24_spill] sm:$0xff] %v4152_v12  ;;  %v4154_v47 = vpop.f32.mrb[30].mxu1 }
 0x31b   : > { %5374 = vst [vmem:[#allocation25_spill] sm:$0xff] %v4154_v47  ;;  %v4158_v31 = vpop.f32.mrb[31].mxu1 }
 0x31c   : > { %5375 = vst [vmem:[#allocation26_spill] sm:$0xff] %v4158_v31  ;;  %v4162_v9 = vpop.f32.mrb[32].mxu1 }
 0x31d   : > { %v763_v1 = vpop.f32.mrb[33].mxu1 }
 0x31e   : > { %v4164_v2 = vpop.f32.mrb[34].mxu1 }
 0x31f   : > { %v767_v60 = vpop.f32.mrb[35].mxu1 }
 0x320   : > { %v857_v63 = vpack.c.bf16 %v767_v60, %v763_v1  ;;  %v4168_v5 = vpop.f32.mrb[36].mxu1  ;;  %v5377_v1 = vpack.c.bf16 %v3777_v45, %v3775_v42 }
 0x321   : > { %v4170_v58 = vpop.f32.mrb[37].mxu1 }
 0x322   : > { %1314 = vmatprep.mubr.bf16.mxu0 %v857_v63  ;;  %v4172_v57 = vpop.f32.mrb[38].mxu1 }
 0x323   : > { %v4176_v17 = vpop.f32.mrb[39].mxu1 }
 0x345   : > { %1335 = vxpose.xlu1.c.b16.start [1/2] (short) %v5376_v4, 128 }
 0x349   : > { %1336 = vxpose.xlu1.c.b16.end [2/2] (short) %v5377_v1, 128 }
 0x36d   : > { %v1172_v60 = vpop.xlane.xlu1 %1171 }
 0x36e   : > { %3200 = vrcp.f32 %v1172_v60 }
 0x371   : > { %v1175_v63 = vpop.xlane.xlu0 %1174 }
 0x372   : > { %3202 = vrcp.f32 %v1175_v63 }
 0x375   : > { %v1178_v12 = vpop.xlane.xlu1 %1177 }
 0x376   : > { %3204 = vrcp.f32 %v1178_v12 }
 0x377   : > { %v1181_v15 = vpop.xlane.xlu0 %1180 }
 0x378   : > { %3206 = vrcp.f32 %v1181_v15  ;;  %v3201_v31 = vpop.eup %3200 }
 0x379   : > { %v1235_v47 = vmul.f32 %v3201_v31, %v3972_v61  ;;  %v1234_v4 = vmul.f32 %v3201_v31, %v3970_v55 }
 0x37c   : > { %v3203_v6 = vpop.eup %3202 }
 0x37d   : > { %v1184_v50 = vpop.xlane.xlu1 %1183  ;;  %v1237_v13 = vmul.f32 %v3203_v6, %v3980_v11  ;;  %v1236_v42 = vmul.f32 %v3203_v6, %v3978_v8 }
 0x37e   : > { %3208 = vrcp.f32 %v1184_v50 }
 0x37f   : > { %v1267_v45 = vpack.c.bf16 %v1237_v13, %v1235_v47  ;;  %v1266_v14 = vpack.c.bf16 %v1236_v42, %v1234_v4 }
 0x380   : > { %v3205_v1 = vpop.eup %3204 }
 0x381   : > { %1282 = vmatprep.subr.bf16.mxu0 %v1267_v45  ;;  %v1187_v60 = vpop.xlane.xlu0 %1186  ;;  %v1239_v15 = vmul.f32 %v3205_v1, %v3988_v21  ;;  %v1238_v55 = vmul.f32 %v3205_v1, %v3986_v33 }
 0x382   : > { %v3207_v12 = vpop.eup %3206  ;;  %3210 = vrcp.f32 %v1187_v60  ;;  %1283 = vmatpush1.bf16.xpose.msra.mxu0 %v1266_v14 }
 0x383   : > { %v1241_v63 = vmul.f32 %v3207_v12, %v3996_v22  ;;  %v1240_v61 = vmul.f32 %v3207_v12, %v3990_v46 }
 0x385   : > { %v1190_v11 = vpop.xlane.xlu1 %1189  ;;  %v1269_v49 = vpack.c.bf16 %v1241_v63, %v1239_v15  ;;  %v1268_v47 = vpack.c.bf16 %v1240_v61, %v1238_v55 }
 0x386   : > { %3212 = vrcp.f32 %v1190_v11 }
 0x387   : > { %1284 = vmatprep.subr.bf16.mxu0 %v1269_v49 }
 0x388   : > { %v3209_v8 = vpop.eup %3208 }
 0x389   : > { %v1193_v6 = vpop.xlane.xlu0 %1192  ;;  %v1243_v13 = vmul.f32 %v3209_v8, %v4004_v18  ;;  %v1242_v22 = vmul.f32 %v3209_v8, %v4002_v40 }
 0x38a   : > { %3214 = vrcp.f32 %v1193_v6  ;;  %1285 = vmatpush1.bf16.xpose.msra.mxu0 %v1268_v47 }
 0x38c   : > { %v3211_v31 = vpop.eup %3210 }
 0x38d   : > { %v1196_v50 = vpop.xlane.xlu1 %1195  ;;  %v1245_v21 = vmul.f32 %v3211_v31, %v4012_v43  ;;  %v1244_v46 = vmul.f32 %v3211_v31, %v4010_v41 }
 0x38e   : > { %3216 = vrcp.f32 %v1196_v50 }
 0x38f   : > { %v1271_v4 = vpack.c.bf16 %v1245_v21, %v1243_v13  ;;  %v1270_v42 = vpack.c.bf16 %v1244_v46, %v1242_v22 }
 0x390   : > { %v3213_v33 = vpop.eup %3212 }
 0x391   : > { %1286 = vmatprep.subr.bf16.mxu0 %v1271_v4  ;;  %v1199_v49 = vpop.xlane.xlu0 %1198  ;;  %v1247_v1 = vmul.f32 %v3213_v33, %v4020_v27  ;;  %v1246_v43 = vmul.f32 %v3213_v33, %v4018_v52 }
 0x392   : > { %3218 = vrcp.f32 %v1199_v49  ;;  %1287 = vmatpush1.bf16.xpose.msra.mxu0 %v1270_v42 }
 0x394   : > { %v3215_v45 = vpop.eup %3214 }
 0x395   : > { %v1202_v14 = vpop.xlane.xlu1 %1201  ;;  %v1249_v18 = vmul.f32 %v3215_v45, %v4028_v23  ;;  %v1248_v40 = vmul.f32 %v3215_v45, %v4026_v59 }
 0x396   : > { %3220 = vrcp.f32 %v1202_v14 }
 0x397   : > { %v1273_v60 = vpack.c.bf16 %v1249_v18, %v1247_v1  ;;  %v1272_v41 = vpack.c.bf16 %v1248_v40, %v1246_v43 }
 0x398   : > { %v3217_v15 = vpop.eup %3216 }
 0x399   : > { %1288 = vmatprep.subr.bf16.mxu0 %v1273_v60  ;;  %v1205_v12 = vpop.xlane.xlu0 %1204  ;;  %v1251_v11 = vmul.f32 %v3217_v15, %v4036_v48  ;;  %v1250_v23 = vmul.f32 %v3217_v15, %v4034_v3 }
 0x39a   : > { %3222 = vrcp.f32 %v1205_v12  ;;  %1289 = vmatpush1.bf16.xpose.msra.mxu0 %v1272_v41 }
 0x39c   : > { %v3219_v63 = vpop.eup %3218 }
 0x39d   : > { %v1208_v61 = vpop.xlane.xlu1 %1207  ;;  %v1253_v27 = vmul.f32 %v3219_v63, %v4046_v54  ;;  %v1252_v52 = vmul.f32 %v3219_v63, %v4042_v24 }
 0x39e   : > { %3224 = vrcp.f32 %v1208_v61 }
 0x39f   : > { %v1211_v59 = vpop.xlane.xlu0 %1210  ;;  %v1275_v55 = vpack.c.bf16 %v1253_v27, %v1251_v11  ;;  %v1274_v47 = vpack.c.bf16 %v1252_v52, %v1250_v23 }
 0x3a0   : > { %3226 = vrcp.f32 %v1211_v59  ;;  %v3221_v6 = vpop.eup %3220 }
 0x3a1   : > { %1290 = vmatprep.subr.bf16.mxu0 %v1275_v55  ;;  %v1255_v50 = vmul.f32 %v3221_v6, %v4052_v35  ;;  %v1254_v54 = vmul.f32 %v3221_v6, %v4050_v10 }
 0x3a2   : > { %1291 = vmatpush1.bf16.xpose.msra.mxu0 %v1274_v47 }
 0x3a4   : > { %v3223_v8 = vpop.eup %3222 }
 0x3a5   : > { %v1214_v31 = vpop.xlane.xlu1 %1213  ;;  %v1257_v48 = vmul.f32 %v3223_v8, %v4066_v25  ;;  %v1256_v3 = vmul.f32 %v3223_v8, %v4062_v34 }
 0x3a6   : > { %3228 = vrcp.f32 %v1214_v31 }
 0x3a7   : > { %v1217_v24 = vpop.xlane.xlu0 %1216  ;;  %v1277_v13 = vpack.c.bf16 %v1257_v48, %v1255_v50  ;;  %v1276_v21 = vpack.c.bf16 %v1256_v3, %v1254_v54 }
 0x3a8   : > { %v3225_v22 = vpop.eup %3224  ;;  %3230 = vrcp.f32 %v1217_v24 }
 0x3a9   : > { %1292 = vmatprep.subr.bf16.mxu0 %v1277_v13  ;;  %v1259_v4 = vmul.f32 %v3225_v22, %v4080_v30  ;;  %v1258_v10 = vmul.f32 %v3225_v22, %v4078_v37  ;;  %v5378_v37 = vpack.c.bf16 %v4072_v39, %v4060_v20  ;;  %v5383_v20 = vpack.c.bf16 %v4094_v36, %v4086_v19 }
 0x3aa   : > { %v3227_v46 = vpop.eup %3226  ;;  %1293 = vmatpush1.bf16.xpose.msra.mxu0 %v1276_v21  ;;  %v5385_v39 = vmov 0  }
 0x3ab   : > { %v1261_v42 = vmul.f32 %v3227_v46, %v4088_v32  ;;  %v1260_v35 = vmul.f32 %v3227_v46, %v4082_v16  ;;  %v5379_v16 = vpack.c.bf16 %v4164_v2, %v4162_v9  ;;  %v5384_v2 = vpack.c.bf16 %v4172_v57, %v4168_v5 }
 0x3ad   : > { %v1279_v25 = vpack.c.bf16 %v1261_v42, %v1259_v4  ;;  %v1278_v49 = vpack.c.bf16 %v1260_v35, %v1258_v10 }
 0x3af   : > { %1294 = vmatprep.subr.bf16.mxu0 %v1279_v25 }
 0x3b0   : > { %v3229_v34 = vpop.eup %3228 }
 0x3b1   : > { %v1263_v45 = vmul.f32 %v3229_v34, %v4104_v62  ;;  %v1262_v30 = vmul.f32 %v3229_v34, %v4102_v26  ;;  %v5380_v62 = vpack.c.bf16 %v4068_v29, %v4058_v0  ;;  %v5382_v26 = vpack.c.bf16 %v4098_v7, %v4090_v38  ;;  %v1343_v0 = vpop.trf.xlu1 }
 0x3b2   : > { %v3231_v33 = vpop.eup %3230  ;;  %1295 = vmatpush1.bf16.xpose.msra.mxu0 %v1278_v49 }
 0x3b3   : > { %v1265_v14 = vmul.f32 %v3231_v33, %v4112_v44  ;;  %v1264_v1 = vmul.f32 %v3231_v33, %v4106_v28  ;;  %v5381_v28 = vpack.c.bf16 %v4176_v17, %v4170_v58 }
 0x3b5   : > { %v1281_v18 = vpack.c.bf16 %v1265_v14, %v1263_v45  ;;  %v1280_v32 = vpack.c.bf16 %v1264_v1, %v1262_v30  ;;  %v1344_v58 = vpop.trf.xlu1  ;;  %v3130_v14 = vld [vmem:[%s5323_s2 + $0x90] sm:$0xff]  }
 0x3b6   : > { %2936 = vmatmul.mubr.msk.bf16.gmra.mrb[40].mxu1 %vm363_vm0, %v3130_v14 }
 0x3b7   : > { %1296 = vmatprep.subr.bf16.mxu0 %v1281_v18  ;;  %789 = vmatprep.mubr.bf16.mxu1 %v5385_v39 }
 0x3b9   : > { %v1345_v29 = vpop.trf.xlu1 }
 0x3ba   : > { %1297 = vmatpush1.bf16.xpose.msra.mxu0 %v1280_v32 }
 0x3bb   : > { %1375 = vmatprep.subr.bf16.mxu0 %v5378_v37 }
 0x3bd   : > { %v1346_v19 = vpop.trf.xlu1 }
 0x3c1   : > { %1315 = vmatmul.mubr.bf16.vlgmr.msra.gmra.mrb[48].mxu0 %v5379_v16  ;;  %v1347_v5 = vpop.trf.xlu1 }
 0x3c2   : > { %1376 = vmatpush1.bf16.msra.mxu0 %v5380_v62  ;;  %1322 = vmatprep.mubr.bf16.mxu0 %v5381_v28  ;;  %v3131_v62 = vld [vmem:[%s5323_s2 + $0x98] sm:$0xff]  }
 0x3c3   : > { %1377 = vmatprep.subr.bf16.mxu0 %v5382_v26  ;;  %2937 = vmatmul.mubr.msk.bf16.gmra.mrb[44].mxu1 %vm363_vm0, %v3131_v62 }
 0x3c4   : > { %799 = vmatprep.mubr.bf16.mxu1 %v5385_v39 }
 0x3c5   : > { %v1348_v38 = vpop.trf.xlu1 }
 0x3c6   : > { %1378 = vmatpush1.bf16.msra.mxu0 %v5383_v20 }
 0x3c9   : > { %1323 = vmatmul.mubr.bf16.gmra.mrb[52].mxu0 %v5384_v2  ;;  %v1349_v36 = vpop.trf.xlu1 }
 0x3ca   : > { %1407 = vmatprep.mubr.bf16.mxu0 %v5385_v39 }
 0x3cd   : > { %v1350_v7 = vpop.trf.xlu1 }
 0x3d1   : > { %2950 = vmatmul.mubr.msk.bf16.vlgmr.msra.gmra.mrb[56].mxu0 %vm888_vm2, %v1343_v0 }
 0x3d2   : > { %1417 = vmatprep.mubr.bf16.mxu0 %v5385_v39 }
 0x3d9   : > { %2951 = vmatmul.mubr.msk.bf16.gmra.mrb[60].mxu0 %vm888_vm2, %v1344_v58 }
 0x3da   : > { %1427 = vmatprep.mubr.bf16.mxu0 %v5385_v39 }
 0x3e1   : > { %2952 = vmatmul.mubr.msk.bf16.gmra.mrb[64].mxu0 %vm888_vm2, %v1345_v29 }
 0x3e2   : > { %1437 = vmatprep.mubr.bf16.mxu0 %v5385_v39 }
 0x3e9   : > { %2953 = vmatmul.mubr.msk.bf16.gmra.mrb[68].mxu0 %vm888_vm2, %v1346_v19 }
 0x3ea   : > { %1447 = vmatprep.mubr.bf16.mxu0 %v5385_v39 }
 0x3f1   : > { %2954 = vmatmul.mubr.msk.bf16.gmra.mrb[72].mxu0 %vm888_vm2, %v1347_v5 }
 0x3f2   : > { %1457 = vmatprep.mubr.bf16.mxu0 %v5385_v39 }
 0x3f9   : > { %2955 = vmatmul.mubr.msk.bf16.gmra.mrb[76].mxu0 %vm888_vm2, %v1348_v38 }
 0x3fa   : > { %1467 = vmatprep.mubr.bf16.mxu0 %v5385_v39 }
 0x401   : > { %2956 = vmatmul.mubr.msk.bf16.gmra.mrb[80].mxu0 %vm888_vm2, %v1349_v36 }
 0x402   : > { %1477 = vmatprep.mubr.bf16.mxu0 %v5385_v39 }
 0x409   : > { %2957 = vmatmul.mubr.msk.bf16.gmra.mrb[84].mxu0 %vm888_vm2, %v1350_v7 }
 0x494   : > { %v4255_v9 = vpop.f32.mrb[48].mxu0 }
 0x495   : > { %v1318_v44 = vpop.f32.mrb[49].mxu0 }
 0x496   : > { %v4257_v17 = vpop.f32.mrb[50].mxu0 }
 0x497   : > { %v1321_v43 = vpop.f32.mrb[51].mxu0 }
 0x49c   : > { %v4261_v40 = vpop.f32.mrb[52].mxu0 }
 0x49d   : > { %v1326_v60 = vpop.f32.mrb[53].mxu0 }
 0x49e   : > { %v4263_v41 = vpop.f32.mrb[54].mxu0 }
 0x49f   : > { %v1329_v15 = vpop.f32.mrb[55].mxu0 }
 0x4a4   : > { %v4267_v63 = vpop.f32.mrb[56].mxu0 }
 0x4a5   : > { %v4269_v61 = vpop.f32.mrb[57].mxu0 }
 0x4a6   : > { %v4271_v11 = vpop.f32.mrb[58].mxu0  ;;  %v1488_v27 = vmax.f32 %v4267_v63, %v4269_v61 }
 0x4a7   : > { %v4275_v23 = vpop.f32.mrb[59].mxu0 }
 0x4a8   : > { %1489 = vmax.xlane.f32.xlu0 %v1488_v27  ;;  %v1491_v52 = vmax.f32 %v4271_v11, %v4275_v23 }
 0x4ac   : > { %1492 = vmax.xlane.f32.xlu0 %v1491_v52  ;;  %v4279_v59 = vpop.f32.mrb[60].mxu0 }
 0x4ad   : > { %v4281_v55 = vpop.f32.mrb[61].mxu0 }
 0x4ae   : > { %v1494_v47 = vmax.f32 %v4279_v59, %v4281_v55  ;;  %v4285_v6 = vpop.f32.mrb[62].mxu0 }
 0x4af   : > { %v4287_v8 = vpop.f32.mrb[63].mxu0 }
 0x4b0   : > { %1495 = vmax.xlane.f32.xlu0 %v1494_v47  ;;  %v1497_v31 = vmax.f32 %v4285_v6, %v4287_v8 }
 0x4b4   : > { %1498 = vmax.xlane.f32.xlu0 %v1497_v31  ;;  %v4291_v50 = vpop.f32.mrb[64].mxu0 }
 0x4b5   : > { %v4293_v48 = vpop.f32.mrb[65].mxu0 }
 0x4b6   : > { %v1500_v54 = vmax.f32 %v4291_v50, %v4293_v48  ;;  %v4297_v3 = vpop.f32.mrb[66].mxu0 }
 0x4b7   : > { %v4299_v24 = vpop.f32.mrb[67].mxu0 }
 0x4b8   : > { %1501 = vmax.xlane.f32.xlu0 %v1500_v54  ;;  %v1503_v13 = vmax.f32 %v4297_v3, %v4299_v24 }
 0x4bc   : > { %1504 = vmax.xlane.f32.xlu0 %v1503_v13  ;;  %v4303_v21 = vpop.f32.mrb[68].mxu0 }
 0x4bd   : > { %v4305_v22 = vpop.f32.mrb[69].mxu0 }
 0x4be   : > { %v1506_v46 = vmax.f32 %v4303_v21, %v4305_v22  ;;  %v4309_v4 = vpop.f32.mrb[70].mxu0 }
 0x4bf   : > { %v4311_v42 = vpop.f32.mrb[71].mxu0 }
 0x4c0   : > { %1507 = vmax.xlane.f32.xlu0 %v1506_v46  ;;  %v1509_v35 = vmax.f32 %v4309_v4, %v4311_v42 }
 0x4c4   : > { %1510 = vmax.xlane.f32.xlu0 %v1509_v35  ;;  %v4315_v25 = vpop.f32.mrb[72].mxu0 }
 0x4c5   : > { %v4317_v10 = vpop.f32.mrb[73].mxu0 }
 0x4c6   : > { %v1512_v34 = vmax.f32 %v4315_v25, %v4317_v10  ;;  %v4321_v49 = vpop.f32.mrb[74].mxu0 }
 0x4c7   : > { %v4323_v33 = vpop.f32.mrb[75].mxu0 }
 0x4c8   : > { %1513 = vmax.xlane.f32.xlu0 %v1512_v34  ;;  %v1515_v45 = vmax.f32 %v4321_v49, %v4323_v33 }
 0x4cc   : > { %1516 = vmax.xlane.f32.xlu0 %v1515_v45  ;;  %v4330_v1 = vpop.f32.mrb[76].mxu0 }
 0x4cd   : > { %v4333_v18 = vpop.f32.mrb[77].mxu0 }
 0x4ce   : > { %v1518_v30 = vmax.f32 %v4330_v1, %v4333_v18  ;;  %v4338_v32 = vpop.f32.mrb[78].mxu0 }
 0x4cf   : > { %v4340_v37 = vpop.f32.mrb[79].mxu0 }
 0x4d0   : > { %1519 = vmax.xlane.f32.xlu0 %v1518_v30  ;;  %v1521_v16 = vmax.f32 %v4338_v32, %v4340_v37 }
 0x4d4   : > { %1522 = vmax.xlane.f32.xlu0 %v1521_v16  ;;  %v4347_v28 = vpop.f32.mrb[80].mxu0 }
 0x4d5   : > { %v4350_v26 = vpop.f32.mrb[81].mxu0 }
 0x4d6   : > { %v4353_v20 = vpop.f32.mrb[82].mxu0  ;;  %v1524_v2 = vmax.f32 %v4347_v28, %v4350_v26 }
 0x4d7   : > { %v4357_v0 = vpop.f32.mrb[83].mxu0 }
 0x4d8   : > { %1525 = vmax.xlane.f32.xlu0 %v1524_v2  ;;  %v1527_v58 = vmax.f32 %v4353_v20, %v4357_v0 }
 0x4da   : > { %1528 = vmax.xlane.f32.xlu1 %v1527_v58 }
 0x4dc   : > { %v4361_v29 = vpop.f32.mrb[84].mxu0 }
 0x4dd   : > { %v4363_v19 = vpop.f32.mrb[85].mxu0 }
 0x4de   : > { %v1530_v5 = vmax.f32 %v4361_v29, %v4363_v19  ;;  %v4367_v38 = vpop.f32.mrb[86].mxu0 }
 0x4df   : > { %v4369_v36 = vpop.f32.mrb[87].mxu0 }
 0x4e0   : > { %1531 = vmax.xlane.f32.xlu0 %v1530_v5  ;;  %v1533_v7 = vmax.f32 %v4367_v38, %v4369_v36 }
 0x4e4   : > { %1534 = vmax.xlane.f32.xlu0 %v1533_v7 }
 0x535   : > { %v1490_v44 = vpop.xlane.xlu0 %1489 }
 0x536   : > { %v1536_v43 = vsub.f32 %v4267_v63, %v1490_v44  ;;  %v1537_v60 = vsub.f32 %v4269_v61, %v1490_v44 }
 0x538   : > { %v1568_v15 = vmul.f32 1.442695, %v1536_v43  ;;  %v1570_v27 = vmul.f32 1.442695, %v1537_v60 }
 0x539   : > { %v1493_v52 = vpop.xlane.xlu0 %1492 }
 0x53a   : > { %3232 = vpow2.f32 %v1568_v15  ;;  %v1538_v47 = vsub.f32 %v4271_v11, %v1493_v52  ;;  %v1539_v31 = vsub.f32 %v4275_v23, %v1493_v52 }
 0x53b   : > { %3234 = vpow2.f32 %v1570_v27 }
 0x53c   : > { %v1572_v54 = vmul.f32 1.442695, %v1538_v47  ;;  %v1574_v13 = vmul.f32 1.442695, %v1539_v31 }
 0x53d   : > { %v1496_v46 = vpop.xlane.xlu0 %1495 }
 0x53e   : > { %3236 = vpow2.f32 %v1572_v54  ;;  %v1540_v35 = vsub.f32 %v4279_v59, %v1496_v46  ;;  %v1541_v34 = vsub.f32 %v4281_v55, %v1496_v46 }
 0x53f   : > { %3238 = vpow2.f32 %v1574_v13 }
 0x540   : > { %v1576_v63 = vmul.f32 1.442695, %v1540_v35  ;;  %v1578_v61 = vmul.f32 1.442695, %v1541_v34 }
 0x541   : > { %v1499_v45 = vpop.xlane.xlu0 %1498 }
 0x542   : > { %3240 = vpow2.f32 %v1576_v63  ;;  %v1542_v14 = vsub.f32 %v4285_v6, %v1499_v45  ;;  %v1543_v11 = vsub.f32 %v4287_v8, %v1499_v45 }
 0x543   : > { %3242 = vpow2.f32 %v1578_v61 }
 0x544   : > { %v4381_v23 = vpop.eup %3232  ;;  %v1580_v30 = vmul.f32 1.442695, %v1542_v14  ;;  %v1582_v16 = vmul.f32 1.442695, %v1543_v11 }
 0x545   : > { %v4383_v62 = vpop.eup %3234  ;;  %v1502_v2 = vpop.xlane.xlu0 %1501 }
 0x546   : > { %3244 = vpow2.f32 %v1580_v30  ;;  %v1544_v59 = vsub.f32 %v4291_v50, %v1502_v2  ;;  %v1545_v55 = vsub.f32 %v4293_v48, %v1502_v2  ;;  %v1632_v58 = vadd.f32 %v4383_v62, %v4381_v23 }
 0x547   : > { %3246 = vpow2.f32 %v1582_v16 }
 0x548   : > { %v4389_v6 = vpop.eup %3236  ;;  %v1584_v8 = vmul.f32 1.442695, %v1544_v59  ;;  %v1586_v5 = vmul.f32 1.442695, %v1545_v55  ;;  %1633 = vadd.xlane.f32.xlu0 %v1632_v58 }
 0x549   : > { %v4391_v7 = vpop.eup %3238  ;;  %v1505_v44 = vpop.xlane.xlu0 %1504 }
 0x54a   : > { %3248 = vpow2.f32 %v1584_v8  ;;  %v1546_v43 = vsub.f32 %v4297_v3, %v1505_v44  ;;  %v1547_v60 = vsub.f32 %v4299_v24, %v1505_v44  ;;  %v1635_v50 = vadd.f32 %v4391_v7, %v4389_v6 }
 0x54b   : > { %3250 = vpow2.f32 %v1586_v5 }
 0x54c   : > { %v4397_v48 = vpop.eup %3240  ;;  %v1588_v15 = vmul.f32 1.442695, %v1546_v43  ;;  %v1590_v27 = vmul.f32 1.442695, %v1547_v60  ;;  %1636 = vadd.xlane.f32.xlu0 %v1635_v50 }
 0x54d   : > { %v4399_v52 = vpop.eup %3242  ;;  %v1508_v47 = vpop.xlane.xlu0 %1507 }
 0x54e   : > { %3252 = vpow2.f32 %v1588_v15  ;;  %v1548_v31 = vsub.f32 %v4303_v21, %v1508_v47  ;;  %v1549_v54 = vsub.f32 %v4305_v22, %v1508_v47  ;;  %v1638_v3 = vadd.f32 %v4399_v52, %v4397_v48 }
 0x54f   : > { %3254 = vpow2.f32 %v1590_v27 }
 0x550   : > { %v4405_v24 = vpop.eup %3244  ;;  %v1592_v13 = vmul.f32 1.442695, %v1548_v31  ;;  %v1594_v46 = vmul.f32 1.442695, %v1549_v54  ;;  %1639 = vadd.xlane.f32.xlu0 %v1638_v3 }
 0x551   : > { %v4407_v35 = vpop.eup %3246  ;;  %v1511_v34 = vpop.xlane.xlu0 %1510 }
 0x552   : > { %3256 = vpow2.f32 %v1592_v13  ;;  %v1550_v63 = vsub.f32 %v4309_v4, %v1511_v34  ;;  %v1551_v61 = vsub.f32 %v4311_v42, %v1511_v34  ;;  %v1641_v21 = vadd.f32 %v4407_v35, %v4405_v24 }
 0x553   : > { %3258 = vpow2.f32 %v1594_v46 }
 0x554   : > { %v4413_v22 = vpop.eup %3248  ;;  %v1596_v45 = vmul.f32 1.442695, %v1550_v63  ;;  %v1598_v14 = vmul.f32 1.442695, %v1551_v61  ;;  %1642 = vadd.xlane.f32.xlu0 %v1641_v21 }
 0x555   : > { %v4415_v11 = vpop.eup %3250  ;;  %v1514_v30 = vpop.xlane.xlu0 %1513 }
 0x556   : > { %3260 = vpow2.f32 %v1596_v45  ;;  %v1552_v16 = vsub.f32 %v4315_v25, %v1514_v30  ;;  %v1553_v2 = vsub.f32 %v4317_v10, %v1514_v30  ;;  %v1644_v4 = vadd.f32 %v4415_v11, %v4413_v22 }
 0x557   : > { %3262 = vpow2.f32 %v1598_v14 }
 0x558   : > { %v4421_v42 = vpop.eup %3252  ;;  %v1600_v59 = vmul.f32 1.442695, %v1552_v16  ;;  %v1602_v55 = vmul.f32 1.442695, %v1553_v2  ;;  %1645 = vadd.xlane.f32.xlu0 %v1644_v4 }
 0x559   : > { %v4423_v58 = vpop.eup %3254  ;;  %v1517_v8 = vpop.xlane.xlu0 %1516 }
 0x55a   : > { %3264 = vpow2.f32 %v1600_v59  ;;  %v1554_v5 = vsub.f32 %v4321_v49, %v1517_v8  ;;  %v1555_v44 = vsub.f32 %v4323_v33, %v1517_v8  ;;  %v1647_v25 = vadd.f32 %v4423_v58, %v4421_v42 }
 0x55b   : > { %3266 = vpow2.f32 %v1602_v55 }
 0x55c   : > { %v4429_v10 = vpop.eup %3256  ;;  %v1604_v43 = vmul.f32 1.442695, %v1554_v5  ;;  %v1606_v60 = vmul.f32 1.442695, %v1555_v44  ;;  %1648 = vadd.xlane.f32.xlu0 %v1647_v25 }
 0x55d   : > { %v4431_v50 = vpop.eup %3258  ;;  %v1520_v15 = vpop.xlane.xlu0 %1519 }
 0x55e   : > { %3268 = vpow2.f32 %v1604_v43  ;;  %v1556_v27 = vsub.f32 %v4330_v1, %v1520_v15  ;;  %v1557_v47 = vsub.f32 %v4333_v18, %v1520_v15  ;;  %v1650_v49 = vadd.f32 %v4431_v50, %v4429_v10 }
 0x55f   : > { %3270 = vpow2.f32 %v1606_v60 }
 0x560   : > { %v4437_v33 = vpop.eup %3260  ;;  %v1608_v31 = vmul.f32 1.442695, %v1556_v27  ;;  %v1610_v54 = vmul.f32 1.442695, %v1557_v47  ;;  %1651 = vadd.xlane.f32.xlu0 %v1650_v49 }
 0x561   : > { %v4439_v3 = vpop.eup %3262  ;;  %v1523_v13 = vpop.xlane.xlu0 %1522 }
 0x562   : > { %3272 = vpow2.f32 %v1608_v31  ;;  %v1558_v46 = vsub.f32 %v4338_v32, %v1523_v13  ;;  %v1559_v34 = vsub.f32 %v4340_v37, %v1523_v13  ;;  %v1653_v1 = vadd.f32 %v4439_v3, %v4437_v33 }
 0x563   : > { %3274 = vpow2.f32 %v1610_v54 }
 0x564   : > { %v4445_v18 = vpop.eup %3264  ;;  %v1612_v63 = vmul.f32 1.442695, %v1558_v46  ;;  %v1614_v61 = vmul.f32 1.442695, %v1559_v34  ;;  %1654 = vadd.xlane.f32.xlu1 %v1653_v1 }
 0x565   : > { %v4447_v21 = vpop.eup %3266  ;;  %v1526_v45 = vpop.xlane.xlu0 %1525 }
 0x566   : > { %3276 = vpow2.f32 %v1612_v63  ;;  %v1560_v14 = vsub.f32 %v4347_v28, %v1526_v45  ;;  %v1561_v30 = vsub.f32 %v4350_v26, %v1526_v45  ;;  %v1656_v32 = vadd.f32 %v4447_v21, %v4445_v18 }
 0x567   : > { %3278 = vpow2.f32 %v1614_v61  ;;  %v1529_v37 = vpop.xlane.xlu1 %1528 }
 0x568   : > { %v4453_v16 = vpop.eup %3268  ;;  %v1616_v2 = vmul.f32 1.442695, %v1560_v14  ;;  %v1618_v4 = vmul.f32 1.442695, %v1561_v30  ;;  %v1562_v59 = vsub.f32 %v4353_v20, %v1529_v37  ;;  %v1563_v55 = vsub.f32 %v4357_v0, %v1529_v37  ;;  %1657 = vadd.xlane.f32.xlu0 %v1656_v32 }
 0x569   : > { %v4457_v8 = vpop.eup %3270 }
 0x56a   : > { %3280 = vpow2.f32 %v1616_v2  ;;  %v1620_v28 = vmul.f32 1.442695, %v1562_v59  ;;  %v1622_v5 = vmul.f32 1.442695, %v1563_v55  ;;  %v1659_v26 = vadd.f32 %v4457_v8, %v4453_v16  ;;  %v3133_v59 = vld [vmem:[%s5323_s2 + $0xa8] sm:$0xff]   ;;  %v3134_v55 = vld [vmem:[%s5323_s2 + $0xb0] sm:$0xff]  }
 0x56b   : > { %3282 = vpow2.f32 %v1618_v4  ;;  %v3132_v4 = vld [vmem:[%s5323_s2 + $0xa0] sm:$0xff]  }
 0x56c   : > { %v4461_v44 = vpop.eup %3272  ;;  %3284 = vpow2.f32 %v1620_v28  ;;  %1660 = vadd.xlane.f32.xlu1 %v1659_v26  ;;  %2938 = vmatmul.mubr.msk.bf16.gmra.mrb[48].mxu1 %vm363_vm0, %v3132_v4  ;;  %v3135_v28 = vld [vmem:[%s5323_s2 + $0xb8] sm:$0xff]  }
 0x56d   : > { %v4463_v25 = vpop.eup %3274  ;;  %3286 = vpow2.f32 %v1622_v5  ;;  %v1532_v20 = vpop.xlane.xlu0 %1531  ;;  %809 = vmatprep.mubr.bf16.mxu1 %v5385_v39 }
 0x56e   : > { %v1564_v0 = vsub.f32 %v4361_v29, %v1532_v20  ;;  %v1565_v43 = vsub.f32 %v4363_v19, %v1532_v20  ;;  %v1662_v60 = vadd.f32 %v4463_v25, %v4461_v44  ;;  %v4520_v5 = vpop.f32.mrb[40].mxu1 }
 0x56f   : > { %v783_v26 = vpop.f32.mrb[41].mxu1 }
 0x570   : > { %v4469_v15 = vpop.eup %3276  ;;  %v1624_v27 = vmul.f32 1.442695, %v1564_v0  ;;  %v1626_v47 = vmul.f32 1.442695, %v1565_v43  ;;  %1663 = vadd.xlane.f32.xlu0 %v1662_v60  ;;  %v4522_v20 = vpop.f32.mrb[42].mxu1 }
 0x571   : > { %v4471_v49 = vpop.eup %3278  ;;  %v1535_v31 = vpop.xlane.xlu0 %1534  ;;  %v860_v43 = vpack.c.bf16 %v4522_v20, %v4520_v5 }
 0x572   : > { %3288 = vpow2.f32 %v1624_v27  ;;  %v1566_v54 = vsub.f32 %v4367_v38, %v1535_v31  ;;  %v1567_v13 = vsub.f32 %v4369_v36, %v1535_v31  ;;  %v1665_v29 = vadd.f32 %v4471_v49, %v4469_v15  ;;  %v787_v0 = vpop.f32.mrb[43].mxu1 }
 0x573   : > { %3290 = vpow2.f32 %v1626_v47  ;;  %v861_v60 = vpack.c.bf16 %v787_v0, %v783_v26  ;;  %v4526_v27 = vpop.f32.mrb[44].mxu1 }
 0x574   : > { %v4477_v19 = vpop.eup %3280  ;;  %v1628_v46 = vmul.f32 1.442695, %v1566_v54  ;;  %v1630_v34 = vmul.f32 1.442695, %v1567_v13  ;;  %1666 = vadd.xlane.f32.xlu1 %v1665_v29  ;;  %2939 = vmatmul.mubr.msk.bf16.gmra.mrb[52].mxu1 %vm363_vm0, %v3133_v59  ;;  %v4528_v47 = vpop.f32.mrb[45].mxu1 }
 0x575   : > { %v4479_v1 = vpop.eup %3282  ;;  %819 = vmatprep.mubr.bf16.mxu1 %v5385_v39  ;;  %v4530_v31 = vpop.f32.mrb[46].mxu1 }
 0x576   : > { %v4481_v63 = vpop.eup %3284  ;;  %3292 = vpow2.f32 %v1628_v46  ;;  %v1668_v61 = vadd.f32 %v4479_v1, %v4477_v19  ;;  %v4532_v54 = vpop.f32.mrb[47].mxu1  ;;  %v862_v13 = vpack.c.bf16 %v4530_v31, %v4526_v27  ;;  %v5386_v46 = vpack.c.bf16 %v3787_v56, %v3783_v51 }
 0x577   : > { %v4485_v38 = vpop.eup %3286  ;;  %3294 = vpow2.f32 %v1630_v34  ;;  %v863_v29 = vpack.c.bf16 %v4532_v54, %v4528_v47  ;;  %v5387_v34 = vld [vmem:[#allocation6_spill] sm:$0xff] }
 0x578   : > { %1669 = vadd.xlane.f32.xlu0 %v1668_v61  ;;  %v1671_v36 = vadd.f32 %v4485_v38, %v4481_v63  ;;  %v5388_v61 = vpack.c.bf16 %v3785_v53, %v5387_v34 }
 0x57a   : > { %1672 = vadd.xlane.f32.xlu1 %v1671_v36 }
 0x57c   : > { %v4489_v45 = vpop.eup %3288  ;;  %2940 = vmatmul.mubr.msk.bf16.gmra.mrb[56].mxu1 %vm363_vm0, %v3134_v55 }
 0x57d   : > { %v4491_v14 = vpop.eup %3290  ;;  %829 = vmatprep.mubr.bf16.mxu1 %v5385_v39 }
 0x57e   : > { %v1674_v30 = vadd.f32 %v4491_v14, %v4489_v45 }
 0x580   : > { %v4495_v32 = vpop.eup %3292  ;;  %1675 = vadd.xlane.f32.xlu0 %v1674_v30 }
 0x581   : > { %v4497_v37 = vpop.eup %3294 }
 0x582   : > { %v1677_v2 = vadd.f32 %v4497_v37, %v4495_v32 }
 0x584   : > { %1678 = vadd.xlane.f32.xlu1 %v1677_v2  ;;  %2941 = vmatmul.mubr.msk.bf16.gmra.mrb[60].mxu1 %vm363_vm0, %v3135_v28 }
 0x585   : > { %1776 = vmatprep.mubr.bf16.mxu1 %v861_v60 }
 0x5ad   : > { %1797 = vxpose.xlu0.c.b16.start [1/2] (short) %v5386_v46, 128 }
 0x5b1   : > { %1798 = vxpose.xlu0.c.b16.end [2/2] (short) %v5388_v61, 128 }
 0x5ba   : > { %3111 = vset.pattern.permute.xlu0 %v5385_v39 }
 0x5d5   : > { %v1634_v36 = vpop.xlane.xlu0 %1633 }
 0x5d6   : > { %3296 = vrcp.f32 %v1634_v36 }
 0x5d9   : > { %v1637_v30 = vpop.xlane.xlu0 %1636 }
 0x5da   : > { %3298 = vrcp.f32 %v1637_v30 }
 0x5dd   : > { %v1640_v2 = vpop.xlane.xlu0 %1639 }
 0x5de   : > { %3300 = vrcp.f32 %v1640_v2 }
 0x5e0   : > { %v3297_v59 = vpop.eup %3296 }
 0x5e1   : > { %v1643_v4 = vpop.xlane.xlu0 %1642  ;;  %v1697_v51 = vmul.f32 %v3297_v59, %v4383_v62  ;;  %v1696_v53 = vmul.f32 %v3297_v59, %v4381_v23 }
 0x5e2   : > { %3302 = vrcp.f32 %v1643_v4 }
 0x5e4   : > { %v3299_v55 = vpop.eup %3298 }
 0x5e5   : > { %v1646_v28 = vpop.xlane.xlu0 %1645  ;;  %v1699_v56 = vmul.f32 %v3299_v55, %v4391_v7  ;;  %v1698_v26 = vmul.f32 %v3299_v55, %v4389_v6 }
 0x5e6   : > { %3304 = vrcp.f32 %v1646_v28 }
 0x5e7   : > { %v1729_v0 = vpack.c.bf16 %v1699_v56, %v1697_v51  ;;  %v1728_v60 = vpack.c.bf16 %v1698_v26, %v1696_v53 }
 0x5e8   : > { %v3301_v34 = vpop.eup %3300 }
 0x5e9   : > { %1744 = vmatprep.subr.bf16.mxu1 %v1729_v0  ;;  %v1649_v46 = vpop.xlane.xlu0 %1648  ;;  %v1701_v30 = vmul.f32 %v3301_v34, %v4399_v52  ;;  %v1700_v7 = vmul.f32 %v3301_v34, %v4397_v48 }
 0x5ea   : > { %3306 = vrcp.f32 %v1649_v46  ;;  %1745 = vmatpush1.bf16.xpose.msra.mxu1 %v1728_v60 }
 0x5ec   : > { %v3303_v61 = vpop.eup %3302 }
 0x5ed   : > { %v1652_v36 = vpop.xlane.xlu0 %1651  ;;  %v1703_v62 = vmul.f32 %v3303_v61, %v4407_v35  ;;  %v1702_v23 = vmul.f32 %v3303_v61, %v4405_v24 }
 0x5ee   : > { %3308 = vrcp.f32 %v1652_v36 }
 0x5ef   : > { %v1731_v2 = vpack.c.bf16 %v1703_v62, %v1701_v30  ;;  %v1730_v6 = vpack.c.bf16 %v1702_v23, %v1700_v7 }
 0x5f0   : > { %v3305_v59 = vpop.eup %3304 }
 0x5f1   : > { %v1655_v4 = vpop.xlane.xlu1 %1654  ;;  %1746 = vmatprep.subr.bf16.mxu1 %v1731_v2  ;;  %v1705_v51 = vmul.f32 %v3305_v59, %v4415_v11  ;;  %v1704_v35 = vmul.f32 %v3305_v59, %v4413_v22 }
 0x5f2   : > { %3310 = vrcp.f32 %v1655_v4  ;;  %1747 = vmatpush1.bf16.xpose.msra.mxu1 %v1730_v6 }
 0x5f4   : > { %v3307_v55 = vpop.eup %3306 }
 0x5f5   : > { %v1658_v28 = vpop.xlane.xlu0 %1657  ;;  %v1707_v52 = vmul.f32 %v3307_v55, %v4423_v58  ;;  %v1706_v48 = vmul.f32 %v3307_v55, %v4421_v42 }
 0x5f6   : > { %3312 = vrcp.f32 %v1658_v28 }
 0x5f7   : > { %v1733_v56 = vpack.c.bf16 %v1707_v52, %v1705_v51  ;;  %v1732_v24 = vpack.c.bf16 %v1706_v48, %v1704_v35 }
 0x5f8   : > { %v3309_v26 = vpop.eup %3308 }
 0x5f9   : > { %v1661_v53 = vpop.xlane.xlu1 %1660  ;;  %1748 = vmatprep.subr.bf16.mxu1 %v1733_v56  ;;  %v1709_v46 = vmul.f32 %v3309_v26, %v4431_v50  ;;  %v1708_v58 = vmul.f32 %v3309_v26, %v4429_v10 }
 0x5fa   : > { %3314 = vrcp.f32 %v1661_v53  ;;  %1749 = vmatpush1.bf16.xpose.msra.mxu1 %v1732_v24 }
 0x5fc   : > { %v3311_v0 = vpop.eup %3310 }
 0x5fd   : > { %v1664_v60 = vpop.xlane.xlu0 %1663  ;;  %v1711_v11 = vmul.f32 %v3311_v0, %v4439_v3  ;;  %v1710_v22 = vmul.f32 %v3311_v0, %v4437_v33 }
 0x5fe   : > { %3316 = vrcp.f32 %v1664_v60 }
 0x5ff   : > { %v1735_v34 = vpack.c.bf16 %v1711_v11, %v1709_v46  ;;  %v1734_v42 = vpack.c.bf16 %v1710_v22, %v1708_v58  ;;  %v5390_v11 = vld [vmem:[#allocation12_spill] sm:$0xff]  ;;  %v5392_v58 = vld [vmem:[#allocation13_spill] sm:$0xff] }
 0x600   : > { %v3313_v36 = vpop.eup %3312 }
 0x601   : > { %v1667_v61 = vpop.xlane.xlu1 %1666  ;;  %1750 = vmatprep.subr.bf16.mxu1 %v1735_v34  ;;  %v1713_v7 = vmul.f32 %v3313_v36, %v4447_v21  ;;  %v1712_v3 = vmul.f32 %v3313_v36, %v4445_v18  ;;  %v5398_v34 = vld [vmem:[#allocation17_spill] sm:$0xff] }
 0x602   : > { %3318 = vrcp.f32 %v1667_v61  ;;  %1751 = vmatpush1.bf16.xpose.msra.mxu1 %v1734_v42  ;;  %v5399_v42 = vld [vmem:[#allocation15_spill] sm:$0xff] }
 0x603   : > { %v5400_v61 = vpack.c.bf16 %v5398_v34, %v5399_v42 }
 0x604   : > { %v3315_v30 = vpop.eup %3314 }
 0x605   : > { %v1670_v62 = vpop.xlane.xlu0 %1669  ;;  %v1715_v50 = vmul.f32 %v3315_v30, %v4457_v8  ;;  %v1714_v10 = vmul.f32 %v3315_v30, %v4453_v16 }
 0x606   : > { %3320 = vrcp.f32 %v1670_v62 }
 0x607   : > { %v1673_v33 = vpop.xlane.xlu1 %1672  ;;  %v1737_v23 = vpack.c.bf16 %v1715_v50, %v1713_v7  ;;  %v1736_v2 = vpack.c.bf16 %v1714_v10, %v1712_v3 }
 0x608   : > { %3322 = vrcp.f32 %v1673_v33  ;;  %v3317_v6 = vpop.eup %3316 }
 0x609   : > { %1752 = vmatprep.subr.bf16.mxu1 %v1737_v23  ;;  %v1717_v55 = vmul.f32 %v3317_v6, %v4463_v25  ;;  %v1716_v8 = vmul.f32 %v3317_v6, %v4461_v44 }
 0x60a   : > { %1753 = vmatpush1.bf16.xpose.msra.mxu1 %v1736_v2 }
 0x60c   : > { %v3319_v4 = vpop.eup %3318 }
 0x60d   : > { %v1676_v59 = vpop.xlane.xlu0 %1675  ;;  %v1719_v21 = vmul.f32 %v3319_v4, %v4471_v49  ;;  %v1718_v18 = vmul.f32 %v3319_v4, %v4469_v15 }
 0x60e   : > { %3324 = vrcp.f32 %v1676_v59 }
 0x60f   : > { %v1739_v28 = vpack.c.bf16 %v1719_v21, %v1717_v55  ;;  %v1738_v16 = vpack.c.bf16 %v1718_v18, %v1716_v8 }
 0x610   : > { %v3321_v51 = vpop.eup %3320 }
 0x611   : > { %v1679_v52 = vpop.xlane.xlu1 %1678  ;;  %1754 = vmatprep.subr.bf16.mxu1 %v1739_v28  ;;  %v1721_v48 = vmul.f32 %v3321_v51, %v4479_v1  ;;  %v1720_v44 = vmul.f32 %v3321_v51, %v4477_v19 }
 0x612   : > { %v3323_v35 = vpop.eup %3322  ;;  %3326 = vrcp.f32 %v1679_v52  ;;  %1755 = vmatpush1.bf16.xpose.msra.mxu1 %v1738_v16 }
 0x613   : > { %v1723_v56 = vmul.f32 %v3323_v35, %v4485_v38  ;;  %v1722_v25 = vmul.f32 %v3323_v35, %v4481_v63  ;;  %v5389_v63 = vld [vmem:[#allocation14_spill] sm:$0xff]  ;;  %v1805_v5 = vpop.trf.xlu0 }
 0x614   : > { %v5391_v19 = vpack.c.bf16 %v5389_v63, %v5390_v11 }
 0x615   : > { %v1741_v49 = vpack.c.bf16 %v1723_v56, %v1721_v48  ;;  %v1740_v15 = vpack.c.bf16 %v1722_v25, %v1720_v44 }
 0x617   : > { %1756 = vmatprep.subr.bf16.mxu1 %v1741_v49  ;;  %v1806_v20 = vpop.trf.xlu0 }
 0x618   : > { %v3325_v24 = vpop.eup %3324 }
 0x619   : > { %v1725_v26 = vmul.f32 %v3325_v24, %v4491_v14  ;;  %v1724_v60 = vmul.f32 %v3325_v24, %v4489_v45  ;;  %v5393_v14 = vld [vmem:[#allocation11_spill] sm:$0xff]  ;;  %v5395_v45 = vld [vmem:[#allocation18_spill] sm:$0xff] }
 0x61a   : > { %1757 = vmatpush1.bf16.xpose.msra.mxu1 %v1740_v15  ;;  %v5394_v22 = vpack.c.bf16 %v5392_v58, %v5393_v14 }
 0x61c   : > { %v3327_v53 = vpop.eup %3326 }
 0x61d   : > { %v1727_v0 = vmul.f32 %v3327_v53, %v4497_v37  ;;  %v1726_v1 = vmul.f32 %v3327_v53, %v4495_v32  ;;  %v5396_v32 = vld [vmem:[#allocation16_spill] sm:$0xff] }
 0x61e   : > { %v5397_v37 = vpack.c.bf16 %v5395_v45, %v5396_v32 }
 0x61f   : > { %v1743_v46 = vpack.c.bf16 %v1727_v0, %v1725_v26  ;;  %v1742_v38 = vpack.c.bf16 %v1726_v1, %v1724_v60 }
 0x621   : > { %1758 = vmatprep.subr.bf16.mxu1 %v1743_v46 }
 0x622   : > { %1759 = vmatpush1.bf16.xpose.msra.mxu1 %v1742_v38 }
 0x623   : > { %1837 = vmatprep.subr.bf16.mxu1 %v5391_v19 }
 0x629   : > { %1777 = vmatmul.mubr.bf16.vlgmr.msra.gmra.mrb[64].mxu1 %v860_v43  ;;  %v1807_v43 = vpop.trf.xlu0 }
 0x62a   : > { %1838 = vmatpush1.bf16.msra.mxu1 %v5394_v22  ;;  %1784 = vmatprep.mubr.bf16.mxu1 %v863_v29 }
 0x62b   : > { %1839 = vmatprep.subr.bf16.mxu1 %v5397_v37 }
 0x62d   : > { %v1808_v47 = vpop.trf.xlu0 }
 0x62e   : > { %1840 = vmatpush1.bf16.msra.mxu1 %v5400_v61 }
 0x631   : > { %1785 = vmatmul.mubr.bf16.gmra.mrb[68].mxu1 %v862_v13  ;;  %v1809_v27 = vpop.trf.xlu0 }
 0x632   : > { %1869 = vmatprep.mubr.bf16.mxu1 %v5385_v39 }
 0x635   : > { %v1810_v62 = vpop.trf.xlu0 }
 0x639   : > { %2958 = vmatmul.mubr.msk.bf16.vlgmr.msra.gmra.mrb[72].mxu1 %vm888_vm2, %v1805_v5  ;;  %v1811_v2 = vpop.trf.xlu0 }
 0x63a   : > { %1879 = vmatprep.mubr.bf16.mxu1 %v5385_v39 }
 0x63d   : > { %v1812_v18 = vpop.trf.xlu0 }
 0x63f   : > { %v4608_v31 = vpop.f32.mrb[48].mxu1 }
 0x640   : > { %v803_v54 = vpop.f32.mrb[49].mxu1 }
 0x641   : > { %2959 = vmatmul.mubr.msk.bf16.gmra.mrb[76].mxu1 %vm888_vm2, %v1806_v20  ;;  %v4611_v13 = vpop.f32.mrb[50].mxu1 }
 0x642   : > { %1889 = vmatprep.mubr.bf16.mxu1 %v5385_v39  ;;  %v807_v36 = vpop.f32.mrb[51].mxu1 }
 0x643   : > { %v865_v30 = vpack.c.bf16 %v807_v36, %v803_v54 }
 0x645   : > { %2238 = vmatprep.mubr.bf16.mxu0 %v865_v30 }
 0x647   : > { %v4616_v7 = vpop.f32.mrb[52].mxu1 }
 0x648   : > { %v4619_v50 = vpop.f32.mrb[53].mxu1 }
 0x649   : > { %2960 = vmatmul.mubr.msk.bf16.gmra.mrb[80].mxu1 %vm888_vm2, %v1807_v43  ;;  %v4621_v3 = vpop.f32.mrb[54].mxu1 }
 0x64a   : > { %1899 = vmatprep.mubr.bf16.mxu1 %v5385_v39  ;;  %v4625_v33 = vpop.f32.mrb[55].mxu1 }
 0x64f   : > { %v4630_v6 = vpop.f32.mrb[56].mxu1 }
 0x650   : > { %v823_v4 = vpop.f32.mrb[57].mxu1 }
 0x651   : > { %2961 = vmatmul.mubr.msk.bf16.gmra.mrb[84].mxu1 %vm888_vm2, %v1808_v47  ;;  %v4633_v59 = vpop.f32.mrb[58].mxu1 }
 0x652   : > { %1909 = vmatprep.mubr.bf16.mxu1 %v5385_v39  ;;  %v827_v21 = vpop.f32.mrb[59].mxu1 }
 0x653   : > { %v869_v8 = vpack.c.bf16 %v827_v21, %v823_v4 }
 0x657   : > { %v4638_v28 = vpop.f32.mrb[60].mxu1 }
 0x658   : > { %v4640_v16 = vpop.f32.mrb[61].mxu1 }
 0x659   : > { %2962 = vmatmul.mubr.msk.bf16.gmra.mrb[88].mxu1 %vm888_vm2, %v1809_v27  ;;  %v4642_v51 = vpop.f32.mrb[62].mxu1 }
 0x65a   : > { %1919 = vmatprep.mubr.bf16.mxu1 %v5385_v39  ;;  %v4646_v35 = vpop.f32.mrb[63].mxu1 }
 0x661   : > { %2963 = vmatmul.mubr.msk.bf16.gmra.mrb[92].mxu1 %vm888_vm2, %v1810_v62 }
 0x662   : > { %1929 = vmatprep.mubr.bf16.mxu1 %v5385_v39 }
 0x669   : > { %2964 = vmatmul.mubr.msk.bf16.gmra.mrb[96].mxu1 %vm888_vm2, %v1811_v2 }
 0x66a   : > { %1939 = vmatprep.mubr.bf16.mxu1 %v5385_v39 }
 0x671   : > { %2965 = vmatmul.mubr.msk.bf16.gmra.mrb[100].mxu1 %vm888_vm2, %v1812_v18 }
 0x672   : > { %2700 = vmatprep.mubr.bf16.mxu1 %v869_v8 }
 0x6fc   : > { %v4650_v56 = vpop.f32.mrb[64].mxu1 }
 0x6fd   : > { %5401 = vst [vmem:[#allocation6_spill] sm:$0xff] %v4650_v56  ;;  %v1780_v25 = vpop.f32.mrb[65].mxu1 }
 0x6fe   : > { %v4652_v49 = vpop.f32.mrb[66].mxu1 }
 0x6ff   : > { %v1783_v15 = vpop.f32.mrb[67].mxu1 }
 0x704   : > { %v4656_v24 = vpop.f32.mrb[68].mxu1 }
 0x705   : > { %5402 = vst [vmem:[#allocation14_spill] sm:$0xff] %v4656_v24  ;;  %v1788_v53 = vpop.f32.mrb[69].mxu1 }
 0x706   : > { %v4658_v26 = vpop.f32.mrb[70].mxu1 }
 0x707   : > { %5403 = vst [vmem:[#allocation12_spill] sm:$0xff] %v4658_v26  ;;  %v1791_v60 = vpop.f32.mrb[71].mxu1 }
 0x70c   : > { %v4662_v1 = vpop.f32.mrb[72].mxu1 }
 0x70d   : > { %v4664_v46 = vpop.f32.mrb[73].mxu1 }
 0x70e   : > { %v1950_v38 = vmax.f32 %v4662_v1, %v4664_v46  ;;  %v4668_v63 = vpop.f32.mrb[74].mxu1 }
 0x70f   : > { %v4670_v11 = vpop.f32.mrb[75].mxu1 }
 0x710   : > { %1951 = vmax.xlane.f32.xlu1 %v1950_v38  ;;  %v1953_v19 = vmax.f32 %v4668_v63, %v4670_v11 }
 0x714   : > { %1954 = vmax.xlane.f32.xlu1 %v1953_v19  ;;  %v4674_v58 = vpop.f32.mrb[76].mxu1 }
 0x715   : > { %v4676_v14 = vpop.f32.mrb[77].mxu1 }
 0x716   : > { %v1956_v22 = vmax.f32 %v4674_v58, %v4676_v14  ;;  %v4680_v45 = vpop.f32.mrb[78].mxu1 }
 0x717   : > { %v4682_v32 = vpop.f32.mrb[79].mxu1 }
 0x718   : > { %1957 = vmax.xlane.f32.xlu1 %v1956_v22  ;;  %v1959_v37 = vmax.f32 %v4680_v45, %v4682_v32 }
 0x71c   : > { %1960 = vmax.xlane.f32.xlu1 %v1959_v37  ;;  %v4686_v34 = vpop.f32.mrb[80].mxu1 }
 0x71d   : > { %v4688_v42 = vpop.f32.mrb[81].mxu1 }
 0x71e   : > { %v1962_v61 = vmax.f32 %v4686_v34, %v4688_v42  ;;  %v4692_v5 = vpop.f32.mrb[82].mxu1 }
 0x71f   : > { %v4694_v20 = vpop.f32.mrb[83].mxu1 }
 0x720   : > { %1963 = vmax.xlane.f32.xlu1 %v1962_v61  ;;  %v1965_v43 = vmax.f32 %v4692_v5, %v4694_v20 }
 0x724   : > { %1966 = vmax.xlane.f32.xlu1 %v1965_v43  ;;  %v4698_v47 = vpop.f32.mrb[84].mxu1 }
 0x725   : > { %v4700_v27 = vpop.f32.mrb[85].mxu1 }
 0x726   : > { %v1968_v54 = vmax.f32 %v4698_v47, %v4700_v27  ;;  %v4704_v36 = vpop.f32.mrb[86].mxu1 }
 0x727   : > { %v4706_v30 = vpop.f32.mrb[87].mxu1 }
 0x728   : > { %1969 = vmax.xlane.f32.xlu1 %v1968_v54  ;;  %v1971_v62 = vmax.f32 %v4704_v36, %v4706_v30 }
 0x72c   : > { %1972 = vmax.xlane.f32.xlu1 %v1971_v62  ;;  %v4710_v2 = vpop.f32.mrb[88].mxu1 }
 0x72d   : > { %v4712_v4 = vpop.f32.mrb[89].mxu1 }
 0x72e   : > { %v1974_v21 = vmax.f32 %v4710_v2, %v4712_v4  ;;  %v4716_v8 = vpop.f32.mrb[90].mxu1 }
 0x72f   : > { %v4718_v18 = vpop.f32.mrb[91].mxu1 }
 0x730   : > { %1975 = vmax.xlane.f32.xlu1 %v1974_v21  ;;  %v1977_v25 = vmax.f32 %v4716_v8, %v4718_v18 }
 0x734   : > { %1978 = vmax.xlane.f32.xlu1 %v1977_v25  ;;  %v4722_v15 = vpop.f32.mrb[92].mxu1 }
 0x735   : > { %v4724_v53 = vpop.f32.mrb[93].mxu1 }
 0x736   : > { %v1980_v60 = vmax.f32 %v4722_v15, %v4724_v53  ;;  %v4728_v38 = vpop.f32.mrb[94].mxu1 }
 0x737   : > { %v4730_v19 = vpop.f32.mrb[95].mxu1 }
 0x738   : > { %1981 = vmax.xlane.f32.xlu1 %v1980_v60  ;;  %v1983_v22 = vmax.f32 %v4728_v38, %v4730_v19 }
 0x73c   : > { %1984 = vmax.xlane.f32.xlu1 %v1983_v22  ;;  %v4734_v37 = vpop.f32.mrb[96].mxu1 }
 0x73d   : > { %v4736_v61 = vpop.f32.mrb[97].mxu1 }
 0x73e   : > { %v1986_v43 = vmax.f32 %v4734_v37, %v4736_v61  ;;  %v4740_v54 = vpop.f32.mrb[98].mxu1 }
 0x73f   : > { %v4742_v62 = vpop.f32.mrb[99].mxu1 }
 0x740   : > { %1987 = vmax.xlane.f32.xlu0 %v1986_v43  ;;  %v1989_v21 = vmax.f32 %v4740_v54, %v4742_v62 }
 0x742   : > { %1990 = vmax.xlane.f32.xlu1 %v1989_v21 }
 0x744   : > { %v4746_v25 = vpop.f32.mrb[100].mxu1 }
 0x745   : > { %v4748_v60 = vpop.f32.mrb[101].mxu1 }
 0x746   : > { %v1992_v22 = vmax.f32 %v4746_v25, %v4748_v60  ;;  %v4752_v0 = vpop.f32.mrb[102].mxu1 }
 0x747   : > { %v4754_v44 = vpop.f32.mrb[103].mxu1 }
 0x748   : > { %1993 = vmax.xlane.f32.xlu1 %v1992_v22  ;;  %v1995_v52 = vmax.f32 %v4752_v0, %v4754_v44 }
 0x74c   : > { %1996 = vmax.xlane.f32.xlu1 %v1995_v52 }
 0x79d   : > { %v1952_v43 = vpop.xlane.xlu1 %1951 }
 0x79e   : > { %v1998_v12 = vsub.f32 %v4662_v1, %v1952_v43  ;;  %v1999_v21 = vsub.f32 %v4664_v46, %v1952_v43 }
 0x7a0   : > { %v2030_v57 = vmul.f32 1.442695, %v1998_v12  ;;  %v2032_v48 = vmul.f32 1.442695, %v1999_v21 }
 0x7a1   : > { %v1955_v55 = vpop.xlane.xlu1 %1954 }
 0x7a2   : > { %3328 = vpow2.f32 %v2030_v57  ;;  %v2000_v10 = vsub.f32 %v4668_v63, %v1955_v55  ;;  %v2001_v23 = vsub.f32 %v4670_v11, %v1955_v55 }
 0x7a3   : > { %3330 = vpow2.f32 %v2032_v48 }
 0x7a4   : > { %v2034_v29 = vmul.f32 1.442695, %v2000_v10  ;;  %v2036_v22 = vmul.f32 1.442695, %v2001_v23 }
 0x7a5   : > { %v1958_v24 = vpop.xlane.xlu1 %1957 }
 0x7a6   : > { %3332 = vpow2.f32 %v2034_v29  ;;  %v2002_v52 = vsub.f32 %v4674_v58, %v1958_v24  ;;  %v2003_v26 = vsub.f32 %v4676_v14, %v1958_v24 }
 0x7a7   : > { %3334 = vpow2.f32 %v2036_v22 }
 0x7a8   : > { %v2038_v1 = vmul.f32 1.442695, %v2002_v52  ;;  %v2040_v46 = vmul.f32 1.442695, %v2003_v26 }
 0x7a9   : > { %v1961_v12 = vpop.xlane.xlu1 %1960 }
 0x7aa   : > { %3336 = vpow2.f32 %v2038_v1  ;;  %v2004_v57 = vsub.f32 %v4680_v45, %v1961_v12  ;;  %v2005_v63 = vsub.f32 %v4682_v32, %v1961_v12 }
 0x7ab   : > { %3338 = vpow2.f32 %v2040_v46 }
 0x7ac   : > { %v4766_v55 = vpop.eup %3328  ;;  %v2042_v10 = vmul.f32 1.442695, %v2004_v57  ;;  %v2044_v23 = vmul.f32 1.442695, %v2005_v63 }
 0x7ad   : > { %v4768_v48 = vpop.eup %3330  ;;  %v1964_v29 = vpop.xlane.xlu1 %1963 }
 0x7ae   : > { %3340 = vpow2.f32 %v2042_v10  ;;  %v2006_v24 = vsub.f32 %v4686_v34, %v1964_v29  ;;  %v2007_v11 = vsub.f32 %v4688_v42, %v1964_v29  ;;  %v2094_v26 = vadd.f32 %v4768_v48, %v4766_v55 }
 0x7af   : > { %3342 = vpow2.f32 %v2044_v23 }
 0x7b0   : > { %v4774_v58 = vpop.eup %3332  ;;  %v2046_v14 = vmul.f32 1.442695, %v2006_v24  ;;  %v2048_v45 = vmul.f32 1.442695, %v2007_v11  ;;  %2095 = vadd.xlane.f32.xlu1 %v2094_v26 }
 0x7b1   : > { %v4776_v32 = vpop.eup %3334  ;;  %v1967_v43 = vpop.xlane.xlu1 %1966 }
 0x7b2   : > { %3344 = vpow2.f32 %v2046_v14  ;;  %v2008_v21 = vsub.f32 %v4692_v5, %v1967_v43  ;;  %v2009_v22 = vsub.f32 %v4694_v20, %v1967_v43  ;;  %v2097_v34 = vadd.f32 %v4776_v32, %v4774_v58 }
 0x7b3   : > { %3346 = vpow2.f32 %v2048_v45 }
 0x7b4   : > { %v4782_v42 = vpop.eup %3336  ;;  %v2050_v52 = vmul.f32 1.442695, %v2008_v21  ;;  %v2052_v1 = vmul.f32 1.442695, %v2009_v22  ;;  %2098 = vadd.xlane.f32.xlu1 %v2097_v34 }
 0x7b5   : > { %v4784_v46 = vpop.eup %3338  ;;  %v1970_v12 = vpop.xlane.xlu1 %1969 }
 0x7b6   : > { %3348 = vpow2.f32 %v2050_v52  ;;  %v2010_v57 = vsub.f32 %v4698_v47, %v1970_v12  ;;  %v2011_v63 = vsub.f32 %v4700_v27, %v1970_v12  ;;  %v2100_v5 = vadd.f32 %v4784_v46, %v4782_v42 }
 0x7b7   : > { %3350 = vpow2.f32 %v2052_v1 }
 0x7b8   : > { %v4790_v20 = vpop.eup %3340  ;;  %v2054_v10 = vmul.f32 1.442695, %v2010_v57  ;;  %v2056_v23 = vmul.f32 1.442695, %v2011_v63  ;;  %2101 = vadd.xlane.f32.xlu1 %v2100_v5 }
 0x7b9   : > { %v4792_v29 = vpop.eup %3342  ;;  %v1973_v24 = vpop.xlane.xlu1 %1972 }
 0x7ba   : > { %3352 = vpow2.f32 %v2054_v10  ;;  %v2012_v11 = vsub.f32 %v4704_v36, %v1973_v24  ;;  %v2013_v26 = vsub.f32 %v4706_v30, %v1973_v24  ;;  %v2103_v47 = vadd.f32 %v4792_v29, %v4790_v20 }
 0x7bb   : > { %3354 = vpow2.f32 %v2056_v23 }
 0x7bc   : > { %v4798_v27 = vpop.eup %3344  ;;  %v2058_v14 = vmul.f32 1.442695, %v2012_v11  ;;  %v2060_v45 = vmul.f32 1.442695, %v2013_v26  ;;  %2104 = vadd.xlane.f32.xlu1 %v2103_v47 }
 0x7bd   : > { %v4800_v43 = vpop.eup %3346  ;;  %v1976_v21 = vpop.xlane.xlu1 %1975 }
 0x7be   : > { %3356 = vpow2.f32 %v2058_v14  ;;  %v2014_v22 = vsub.f32 %v4710_v2, %v1976_v21  ;;  %v2015_v34 = vsub.f32 %v4712_v4, %v1976_v21  ;;  %v2106_v36 = vadd.f32 %v4800_v43, %v4798_v27 }
 0x7bf   : > { %3358 = vpow2.f32 %v2060_v45 }
 0x7c0   : > { %v4806_v30 = vpop.eup %3348  ;;  %v2062_v52 = vmul.f32 1.442695, %v2014_v22  ;;  %v2064_v1 = vmul.f32 1.442695, %v2015_v34  ;;  %2107 = vadd.xlane.f32.xlu1 %v2106_v36 }
 0x7c1   : > { %v4808_v12 = vpop.eup %3350  ;;  %v1979_v57 = vpop.xlane.xlu1 %1978 }
 0x7c2   : > { %3360 = vpow2.f32 %v2062_v52  ;;  %v2016_v63 = vsub.f32 %v4716_v8, %v1979_v57  ;;  %v2017_v5 = vsub.f32 %v4718_v18, %v1979_v57  ;;  %v2109_v2 = vadd.f32 %v4808_v12, %v4806_v30 }
 0x7c3   : > { %3362 = vpow2.f32 %v2064_v1 }
 0x7c4   : > { %v4814_v4 = vpop.eup %3352  ;;  %v2066_v10 = vmul.f32 1.442695, %v2016_v63  ;;  %v2068_v23 = vmul.f32 1.442695, %v2017_v5  ;;  %2110 = vadd.xlane.f32.xlu1 %v2109_v2 }
 0x7c5   : > { %v4816_v24 = vpop.eup %3354  ;;  %v1982_v11 = vpop.xlane.xlu1 %1981 }
 0x7c6   : > { %3364 = vpow2.f32 %v2066_v10  ;;  %v2018_v26 = vsub.f32 %v4722_v15, %v1982_v11  ;;  %v2019_v47 = vsub.f32 %v4724_v53, %v1982_v11  ;;  %v2112_v8 = vadd.f32 %v4816_v24, %v4814_v4 }
 0x7c7   : > { %3366 = vpow2.f32 %v2068_v23 }
 0x7c8   : > { %v4822_v18 = vpop.eup %3356  ;;  %v2070_v14 = vmul.f32 1.442695, %v2018_v26  ;;  %v2072_v45 = vmul.f32 1.442695, %v2019_v47  ;;  %2113 = vadd.xlane.f32.xlu1 %v2112_v8 }
 0x7c9   : > { %v4824_v21 = vpop.eup %3358  ;;  %v1985_v22 = vpop.xlane.xlu1 %1984 }
 0x7ca   : > { %3368 = vpow2.f32 %v2070_v14  ;;  %v2020_v34 = vsub.f32 %v4728_v38, %v1985_v22  ;;  %v2021_v36 = vsub.f32 %v4730_v19, %v1985_v22  ;;  %v2115_v15 = vadd.f32 %v4824_v21, %v4822_v18 }
 0x7cb   : > { %3370 = vpow2.f32 %v2072_v45 }
 0x7cc   : > { %v4830_v53 = vpop.eup %3360  ;;  %v2074_v52 = vmul.f32 1.442695, %v2020_v34  ;;  %v2076_v1 = vmul.f32 1.442695, %v2021_v36  ;;  %2116 = vadd.xlane.f32.xlu0 %v2115_v15 }
 0x7cd   : > { %v4832_v57 = vpop.eup %3362  ;;  %v1988_v63 = vpop.xlane.xlu0 %1987 }
 0x7ce   : > { %3372 = vpow2.f32 %v2074_v52  ;;  %v2022_v5 = vsub.f32 %v4734_v37, %v1988_v63  ;;  %v2023_v2 = vsub.f32 %v4736_v61, %v1988_v63  ;;  %v2118_v38 = vadd.f32 %v4832_v57, %v4830_v53 }
 0x7cf   : > { %3374 = vpow2.f32 %v2076_v1  ;;  %v1991_v19 = vpop.xlane.xlu1 %1990 }
 0x7d0   : > { %v4838_v10 = vpop.eup %3364  ;;  %v2078_v23 = vmul.f32 1.442695, %v2022_v5  ;;  %v2080_v11 = vmul.f32 1.442695, %v2023_v2  ;;  %v2024_v26 = vsub.f32 %v4740_v54, %v1991_v19  ;;  %v2025_v47 = vsub.f32 %v4742_v62, %v1991_v19  ;;  %2119 = vadd.xlane.f32.xlu1 %v2118_v38 }
 0x7d1   : > { %v4842_v8 = vpop.eup %3366 }
 0x7d2   : > { %3376 = vpow2.f32 %v2078_v23  ;;  %v2082_v37 = vmul.f32 1.442695, %v2024_v26  ;;  %v2084_v14 = vmul.f32 1.442695, %v2025_v47  ;;  %v2121_v61 = vadd.f32 %v4842_v8, %v4838_v10 }
 0x7d3   : > { %3378 = vpow2.f32 %v2080_v11 }
 0x7d4   : > { %v4846_v45 = vpop.eup %3368  ;;  %3380 = vpow2.f32 %v2082_v37  ;;  %2122 = vadd.xlane.f32.xlu0 %v2121_v61 }
 0x7d5   : > { %v4848_v22 = vpop.eup %3370  ;;  %3382 = vpow2.f32 %v2084_v14  ;;  %v1994_v54 = vpop.xlane.xlu1 %1993 }
 0x7d6   : > { %v2026_v62 = vsub.f32 %v4746_v25, %v1994_v54  ;;  %v2027_v34 = vsub.f32 %v4748_v60, %v1994_v54  ;;  %v2124_v36 = vadd.f32 %v4848_v22, %v4846_v45 }
 0x7d8   : > { %v4854_v15 = vpop.eup %3372  ;;  %v2086_v52 = vmul.f32 1.442695, %v2026_v62  ;;  %v2088_v1 = vmul.f32 1.442695, %v2027_v34  ;;  %2125 = vadd.xlane.f32.xlu1 %v2124_v36  ;;  %v5404_v36 = vld [vmem:[#allocation10_spill] sm:$0xff] }
 0x7d9   : > { %v4856_v63 = vpop.eup %3374  ;;  %v1997_v5 = vpop.xlane.xlu1 %1996 }
 0x7da   : > { %3384 = vpow2.f32 %v2086_v52  ;;  %v2028_v2 = vsub.f32 %v4752_v0, %v1997_v5  ;;  %v2029_v38 = vsub.f32 %v4754_v44, %v1997_v5  ;;  %v2127_v25 = vadd.f32 %v4856_v63, %v4854_v15  ;;  %v5405_v52 = vld [vmem:[#allocation8_spill] sm:$0xff]  ;;  %v5407_v5 = vld [vmem:[#allocation9_spill] sm:$0xff] }
 0x7db   : > { %3386 = vpow2.f32 %v2088_v1  ;;  %v5406_v1 = vpack.c.bf16 %v5404_v36, %v5405_v52 }
 0x7dc   : > { %v4862_v60 = vpop.eup %3376  ;;  %v2090_v19 = vmul.f32 1.442695, %v2028_v2  ;;  %v2092_v23 = vmul.f32 1.442695, %v2029_v38  ;;  %2128 = vadd.xlane.f32.xlu0 %v2127_v25  ;;  %v5408_v2 = vld [vmem:[#allocation7_spill] sm:$0xff] }
 0x7dd   : > { %v4864_v11 = vpop.eup %3378  ;;  %v5409_v38 = vpack.c.bf16 %v5407_v5, %v5408_v2 }
 0x7de   : > { %v4866_v26 = vpop.eup %3380  ;;  %3388 = vpow2.f32 %v2090_v19  ;;  %v2130_v47 = vadd.f32 %v4864_v11, %v4862_v60 }
 0x7df   : > { %v4870_v0 = vpop.eup %3382  ;;  %3390 = vpow2.f32 %v2092_v23 }
 0x7e0   : > { %2131 = vadd.xlane.f32.xlu1 %v2130_v47  ;;  %v2133_v44 = vadd.f32 %v4870_v0, %v4866_v26 }
 0x7e2   : > { %2134 = vadd.xlane.f32.xlu0 %v2133_v44 }
 0x7e4   : > { %v4874_v37 = vpop.eup %3384 }
 0x7e5   : > { %v4876_v14 = vpop.eup %3386 }
 0x7e6   : > { %v2136_v61 = vadd.f32 %v4876_v14, %v4874_v37 }
 0x7e8   : > { %v4880_v54 = vpop.eup %3388  ;;  %2137 = vadd.xlane.f32.xlu1 %v2136_v61 }
 0x7e9   : > { %v4882_v62 = vpop.eup %3390 }
 0x7ea   : > { %v2139_v34 = vadd.f32 %v4882_v62, %v4880_v54 }
 0x7ec   : > { %2140 = vadd.xlane.f32.xlu0 %v2139_v34 }
 0x815   : > { %2259 = vxpose.xlu1.c.b16.start [1/2] (short) %v5406_v1, 128 }
 0x819   : > { %2260 = vxpose.xlu1.c.b16.end [2/2] (short) %v5409_v38, 128 }
 0x83d   : > { %v2096_v25 = vpop.xlane.xlu1 %2095 }
 0x83e   : > { %3392 = vrcp.f32 %v2096_v25 }
 0x841   : > { %v2099_v19 = vpop.xlane.xlu1 %2098 }
 0x842   : > { %3394 = vrcp.f32 %v2099_v19 }
 0x845   : > { %v2102_v23 = vpop.xlane.xlu1 %2101 }
 0x846   : > { %3396 = vrcp.f32 %v2102_v23 }
 0x848   : > { %v3393_v44 = vpop.eup %3392 }
 0x849   : > { %v2105_v47 = vpop.xlane.xlu1 %2104  ;;  %v2159_v34 = vmul.f32 %v3393_v44, %v4768_v48  ;;  %v2158_v52 = vmul.f32 %v3393_v44, %v4766_v55 }
 0x84a   : > { %3398 = vrcp.f32 %v2105_v47 }
 0x84c   : > { %v3395_v61 = vpop.eup %3394 }
 0x84d   : > { %v2108_v56 = vpop.xlane.xlu1 %2107  ;;  %v2161_v36 = vmul.f32 %v3395_v61, %v4776_v32  ;;  %v2160_v1 = vmul.f32 %v3395_v61, %v4774_v58 }
 0x84e   : > { %3400 = vrcp.f32 %v2108_v56 }
 0x84f   : > { %v2191_v5 = vpack.c.bf16 %v2161_v36, %v2159_v34  ;;  %v2190_v2 = vpack.c.bf16 %v2160_v1, %v2158_v52 }
 0x850   : > { %v3397_v25 = vpop.eup %3396 }
 0x851   : > { %2206 = vmatprep.subr.bf16.mxu0 %v2191_v5  ;;  %v2111_v38 = vpop.xlane.xlu1 %2110  ;;  %v2163_v47 = vmul.f32 %v3397_v25, %v4784_v46  ;;  %v2162_v32 = vmul.f32 %v3397_v25, %v4782_v42 }
 0x852   : > { %3402 = vrcp.f32 %v2111_v38  ;;  %2207 = vmatpush1.bf16.xpose.msra.mxu0 %v2190_v2 }
 0x854   : > { %v3399_v19 = vpop.eup %3398 }
 0x855   : > { %v2114_v23 = vpop.xlane.xlu1 %2113  ;;  %v2165_v48 = vmul.f32 %v3399_v19, %v4792_v29  ;;  %v2164_v55 = vmul.f32 %v3399_v19, %v4790_v20 }
 0x856   : > { %3404 = vrcp.f32 %v2114_v23 }
 0x857   : > { %v2193_v44 = vpack.c.bf16 %v2165_v48, %v2163_v47  ;;  %v2192_v58 = vpack.c.bf16 %v2164_v55, %v2162_v32 }
 0x858   : > { %v3401_v56 = vpop.eup %3400 }
 0x859   : > { %v2117_v61 = vpop.xlane.xlu0 %2116  ;;  %2208 = vmatprep.subr.bf16.mxu0 %v2193_v44  ;;  %v2167_v52 = vmul.f32 %v3401_v56, %v4800_v43  ;;  %v2166_v29 = vmul.f32 %v3401_v56, %v4798_v27 }
 0x85a   : > { %3406 = vrcp.f32 %v2117_v61  ;;  %2209 = vmatpush1.bf16.xpose.msra.mxu0 %v2192_v58 }
 0x85c   : > { %v3403_v34 = vpop.eup %3402 }
 0x85d   : > { %v2120_v36 = vpop.xlane.xlu1 %2119  ;;  %v2169_v46 = vmul.f32 %v3403_v34, %v4808_v12  ;;  %v2168_v42 = vmul.f32 %v3403_v34, %v4806_v30 }
 0x85e   : > { %3408 = vrcp.f32 %v2120_v36 }
 0x85f   : > { %v2195_v1 = vpack.c.bf16 %v2169_v46, %v2167_v52  ;;  %v2194_v20 = vpack.c.bf16 %v2168_v42, %v2166_v29 }
 0x860   : > { %v3405_v2 = vpop.eup %3404 }
 0x861   : > { %v2123_v5 = vpop.xlane.xlu0 %2122  ;;  %2210 = vmatprep.subr.bf16.mxu0 %v2195_v1  ;;  %v2171_v19 = vmul.f32 %v3405_v2, %v4816_v24  ;;  %v2170_v12 = vmul.f32 %v3405_v2, %v4814_v4 }
 0x862   : > { %3410 = vrcp.f32 %v2123_v5  ;;  %2211 = vmatpush1.bf16.xpose.msra.mxu0 %v2194_v20 }
 0x864   : > { %v3407_v38 = vpop.eup %3406 }
 0x865   : > { %v2126_v25 = vpop.xlane.xlu1 %2125  ;;  %v2173_v43 = vmul.f32 %v3407_v38, %v4824_v21  ;;  %v2172_v27 = vmul.f32 %v3407_v38, %v4822_v18 }
 0x866   : > { %3412 = vrcp.f32 %v2126_v25 }
 0x867   : > { %v2197_v23 = vpack.c.bf16 %v2173_v43, %v2171_v19  ;;  %v2196_v30 = vpack.c.bf16 %v2172_v27, %v2170_v12  ;;  %v5411_v27 = vld [vmem:[#allocation20_spill] sm:$0xff] }
 0x868   : > { %v3409_v48 = vpop.eup %3408 }
 0x869   : > { %v2129_v47 = vpop.xlane.xlu0 %2128  ;;  %2212 = vmatprep.subr.bf16.mxu0 %v2197_v23  ;;  %v2175_v44 = vmul.f32 %v3409_v48, %v4832_v57  ;;  %v2174_v21 = vmul.f32 %v3409_v48, %v4830_v53  ;;  %v5413_v23 = vpack.c.bf16 %v4611_v13, %v4608_v31  ;;  %v5424_v31 = vpack.c.bf16 %v4621_v3, %v4616_v7 }
 0x86a   : > { %3414 = vrcp.f32 %v2129_v47  ;;  %2213 = vmatpush1.bf16.xpose.msra.mxu0 %v2196_v30  ;;  %v5419_v47 = vld [vmem:[#allocation24_spill] sm:$0xff] }
 0x86c   : > { %v3411_v32 = vpop.eup %3410 }
 0x86d   : > { %v2132_v55 = vpop.xlane.xlu1 %2131  ;;  %v2177_v24 = vmul.f32 %v3411_v32, %v4842_v8  ;;  %v2176_v4 = vmul.f32 %v3411_v32, %v4838_v10  ;;  %v5421_v32 = vld [vmem:[#allocation25_spill] sm:$0xff] }
 0x86e   : > { %3416 = vrcp.f32 %v2132_v55  ;;  %v5422_v55 = vld [vmem:[#allocation23_spill] sm:$0xff] }
 0x86f   : > { %v2135_v18 = vpop.xlane.xlu0 %2134  ;;  %v2199_v58 = vpack.c.bf16 %v2177_v24, %v2175_v44  ;;  %v2198_v61 = vpack.c.bf16 %v2176_v4, %v2174_v21  ;;  %v5423_v44 = vpack.c.bf16 %v5421_v32, %v5422_v55 }
 0x870   : > { %3418 = vrcp.f32 %v2135_v18  ;;  %v3413_v56 = vpop.eup %3412 }
 0x871   : > { %2214 = vmatprep.subr.bf16.mxu0 %v2199_v58  ;;  %v2179_v52 = vmul.f32 %v3413_v56, %v4848_v22  ;;  %v2178_v8 = vmul.f32 %v3413_v56, %v4846_v45 }
 0x872   : > { %2215 = vmatpush1.bf16.xpose.msra.mxu0 %v2198_v61 }
 0x874   : > { %v3415_v34 = vpop.eup %3414 }
 0x875   : > { %v2138_v36 = vpop.xlane.xlu1 %2137  ;;  %v2181_v57 = vmul.f32 %v3415_v34, %v4856_v63  ;;  %v2180_v53 = vmul.f32 %v3415_v34, %v4854_v15 }
 0x876   : > { %3420 = vrcp.f32 %v2138_v36 }
 0x877   : > { %v2201_v46 = vpack.c.bf16 %v2181_v57, %v2179_v52  ;;  %v2200_v10 = vpack.c.bf16 %v2180_v53, %v2178_v8 }
 0x878   : > { %v3417_v29 = vpop.eup %3416 }
 0x879   : > { %v2141_v42 = vpop.xlane.xlu0 %2140  ;;  %2216 = vmatprep.subr.bf16.mxu0 %v2201_v46  ;;  %v2183_v20 = vmul.f32 %v3417_v29, %v4864_v11  ;;  %v2182_v45 = vmul.f32 %v3417_v29, %v4862_v60 }
 0x87a   : > { %v3419_v1 = vpop.eup %3418  ;;  %3422 = vrcp.f32 %v2141_v42  ;;  %2217 = vmatpush1.bf16.xpose.msra.mxu0 %v2200_v10 }
 0x87b   : > { %v2185_v5 = vmul.f32 %v3419_v1, %v4870_v0  ;;  %v2184_v22 = vmul.f32 %v3419_v1, %v4866_v26  ;;  %v5410_v26 = vld [vmem:[#allocation22_spill] sm:$0xff]  ;;  %v2267_v13 = vpop.trf.xlu1 }
 0x87c   : > { %v5412_v60 = vpack.c.bf16 %v5410_v26, %v5411_v27 }
 0x87d   : > { %v2203_v63 = vpack.c.bf16 %v2185_v5, %v2183_v20  ;;  %v2202_v15 = vpack.c.bf16 %v2184_v22, %v2182_v45 }
 0x87f   : > { %2218 = vmatprep.subr.bf16.mxu0 %v2203_v63 }
 0x880   : > { %v3421_v2 = vpop.eup %3420 }
 0x881   : > { %v2187_v25 = vmul.f32 %v3421_v2, %v4876_v14  ;;  %v2186_v43 = vmul.f32 %v3421_v2, %v4874_v37  ;;  %v5414_v14 = vpack.c.bf16 %v4625_v33, %v4619_v50  ;;  %v5416_v37 = vld [vmem:[#allocation19_spill] sm:$0xff]  ;;  %v2268_v50 = vpop.trf.xlu1 }
 0x882   : > { %2219 = vmatpush1.bf16.xpose.msra.mxu0 %v2202_v15 }
 0x884   : > { %v3423_v38 = vpop.eup %3422 }
 0x885   : > { %v2189_v19 = vmul.f32 %v3423_v38, %v4882_v62  ;;  %v2188_v11 = vmul.f32 %v3423_v38, %v4880_v54  ;;  %v5415_v62 = vld [vmem:[#allocation21_spill] sm:$0xff]  ;;  %v5418_v54 = vld [vmem:[#allocation26_spill] sm:$0xff]  ;;  %v2269_v33 = vpop.trf.xlu1 }
 0x886   : > { %v5417_v30 = vpack.c.bf16 %v5415_v62, %v5416_v37  ;;  %v5420_v48 = vpack.c.bf16 %v5418_v54, %v5419_v47 }
 0x887   : > { %v2205_v12 = vpack.c.bf16 %v2189_v19, %v2187_v25  ;;  %v2204_v0 = vpack.c.bf16 %v2188_v11, %v2186_v43 }
 0x889   : > { %2220 = vmatprep.subr.bf16.mxu0 %v2205_v12  ;;  %v2270_v24 = vpop.trf.xlu1 }
 0x88a   : > { %2221 = vmatpush1.bf16.xpose.msra.mxu0 %v2204_v0 }
 0x88b   : > { %2299 = vmatprep.subr.bf16.mxu0 %v5412_v60 }
 0x88d   : > { %v2271_v7 = vpop.trf.xlu1 }
 0x891   : > { %2239 = vmatmul.mubr.bf16.vlgmr.msra.gmra.mrb[88].mxu0 %v5413_v23  ;;  %v2272_v3 = vpop.trf.xlu1 }
 0x892   : > { %2246 = vmatprep.mubr.bf16.mxu0 %v5414_v14  ;;  %2300 = vmatpush1.bf16.msra.mxu0 %v5417_v30 }
 0x893   : > { %2301 = vmatprep.subr.bf16.mxu0 %v5420_v48 }
 0x895   : > { %v2273_v21 = vpop.trf.xlu1 }
 0x896   : > { %2302 = vmatpush1.bf16.msra.mxu0 %v5423_v44 }
 0x899   : > { %2247 = vmatmul.mubr.bf16.gmra.mrb[92].mxu0 %v5424_v31  ;;  %v2274_v4 = vpop.trf.xlu1 }
 0x89a   : > { %2331 = vmatprep.mubr.bf16.mxu0 %v5385_v39 }
 0x8a1   : > { %2966 = vmatmul.mubr.msk.bf16.vlgmr.msra.gmra.mrb[96].mxu0 %vm888_vm2, %v2267_v13 }
 0x8a2   : > { %2341 = vmatprep.mubr.bf16.mxu0 %v5385_v39 }
 0x8a9   : > { %2967 = vmatmul.mubr.msk.bf16.gmra.mrb[100].mxu0 %vm888_vm2, %v2268_v50 }
 0x8aa   : > { %2351 = vmatprep.mubr.bf16.mxu0 %v5385_v39 }
 0x8b1   : > { %2968 = vmatmul.mubr.msk.bf16.gmra.mrb[104].mxu0 %vm888_vm2, %v2269_v33 }
 0x8b2   : > { %2361 = vmatprep.mubr.bf16.mxu0 %v5385_v39 }
 0x8b9   : > { %2969 = vmatmul.mubr.msk.bf16.gmra.mrb[108].mxu0 %vm888_vm2, %v2270_v24 }
 0x8ba   : > { %2371 = vmatprep.mubr.bf16.mxu0 %v5385_v39 }
 0x8c1   : > { %2970 = vmatmul.mubr.msk.bf16.gmra.mrb[112].mxu0 %vm888_vm2, %v2271_v7 }
 0x8c2   : > { %2381 = vmatprep.mubr.bf16.mxu0 %v5385_v39 }
 0x8c9   : > { %2971 = vmatmul.mubr.msk.bf16.gmra.mrb[116].mxu0 %vm888_vm2, %v2272_v3 }
 0x8ca   : > { %2391 = vmatprep.mubr.bf16.mxu0 %v5385_v39 }
 0x8d1   : > { %2972 = vmatmul.mubr.msk.bf16.gmra.mrb[120].mxu0 %vm888_vm2, %v2273_v21 }
 0x8d2   : > { %2401 = vmatprep.mubr.bf16.mxu0 %v5385_v39 }
 0x8d9   : > { %2973 = vmatmul.mubr.msk.bf16.gmra.mrb[124].mxu0 %vm888_vm2, %v2274_v4 }
 0x964   : > { %v4961_v18 = vpop.f32.mrb[88].mxu0 }
 0x965   : > { %v2242_v58 = vpop.f32.mrb[89].mxu0 }
 0x966   : > { %v4963_v61 = vpop.f32.mrb[90].mxu0 }
 0x967   : > { %v2255_v56 = vpack.c.bf16 %v4963_v61, %v4961_v18  ;;  %v2245_v34 = vpop.f32.mrb[91].mxu0 }
 0x96c   : > { %v4967_v36 = vpop.f32.mrb[92].mxu0 }
 0x96d   : > { %v2250_v52 = vpop.f32.mrb[93].mxu0 }
 0x96e   : > { %v4969_v57 = vpop.f32.mrb[94].mxu0 }
 0x96f   : > { %v2256_v39 = vpack.c.bf16 %v4969_v57, %v4967_v36  ;;  %v2253_v8 = vpop.f32.mrb[95].mxu0  ;;  %v2721_v57 = vld [vmem:[%s5324_s3] sm:$0xf] }
 0x974   : > { %v4973_v53 = vpop.f32.mrb[96].mxu0 }
 0x975   : > { %v4975_v46 = vpop.f32.mrb[97].mxu0 }
 0x976   : > { %v2412_v10 = vmax.f32 %v4973_v53, %v4975_v46  ;;  %v4979_v29 = vpop.f32.mrb[98].mxu0 }
 0x977   : > { %v4981_v42 = vpop.f32.mrb[99].mxu0 }
 0x978   : > { %2413 = vmax.xlane.f32.xlu0 %v2412_v10  ;;  %v2415_v1 = vmax.f32 %v4979_v29, %v4981_v42 }
 0x97c   : > { %2416 = vmax.xlane.f32.xlu0 %v2415_v1  ;;  %v4985_v20 = vpop.f32.mrb[100].mxu0 }
 0x97d   : > { %v4987_v5 = vpop.f32.mrb[101].mxu0 }
 0x97e   : > { %v2418_v22 = vmax.f32 %v4985_v20, %v4987_v5  ;;  %v4991_v63 = vpop.f32.mrb[102].mxu0 }
 0x97f   : > { %v4993_v45 = vpop.f32.mrb[103].mxu0 }
 0x980   : > { %2419 = vmax.xlane.f32.xlu0 %v2418_v22  ;;  %v2421_v15 = vmax.f32 %v4991_v63, %v4993_v45 }
 0x984   : > { %2422 = vmax.xlane.f32.xlu0 %v2421_v15  ;;  %v4997_v2 = vpop.f32.mrb[104].mxu0 }
 0x985   : > { %v4999_v38 = vpop.f32.mrb[105].mxu0 }
 0x986   : > { %v2424_v25 = vmax.f32 %v4997_v2, %v4999_v38  ;;  %v5003_v19 = vpop.f32.mrb[106].mxu0 }
 0x987   : > { %v5005_v43 = vpop.f32.mrb[107].mxu0 }
 0x988   : > { %2425 = vmax.xlane.f32.xlu0 %v2424_v25  ;;  %v2427_v11 = vmax.f32 %v5003_v19, %v5005_v43 }
 0x98c   : > { %2428 = vmax.xlane.f32.xlu0 %v2427_v11  ;;  %v5009_v12 = vpop.f32.mrb[108].mxu0 }
 0x98d   : > { %v5011_v0 = vpop.f32.mrb[109].mxu0 }
 0x98e   : > { %v2430_v26 = vmax.f32 %v5009_v12, %v5011_v0  ;;  %v5015_v27 = vpop.f32.mrb[110].mxu0 }
 0x98f   : > { %v5017_v60 = vpop.f32.mrb[111].mxu0 }
 0x990   : > { %2431 = vmax.xlane.f32.xlu0 %v2430_v26  ;;  %v2433_v23 = vmax.f32 %v5015_v27, %v5017_v60 }
 0x994   : > { %2434 = vmax.xlane.f32.xlu0 %v2433_v23  ;;  %v5021_v14 = vpop.f32.mrb[112].mxu0 }
 0x995   : > { %v5023_v62 = vpop.f32.mrb[113].mxu0 }
 0x996   : > { %v2436_v37 = vmax.f32 %v5021_v14, %v5023_v62  ;;  %v5027_v30 = vpop.f32.mrb[114].mxu0 }
 0x997   : > { %v5029_v54 = vpop.f32.mrb[115].mxu0 }
 0x998   : > { %2437 = vmax.xlane.f32.xlu0 %v2436_v37  ;;  %v2439_v47 = vmax.f32 %v5027_v30, %v5029_v54 }
 0x99c   : > { %2440 = vmax.xlane.f32.xlu0 %v2439_v47  ;;  %v5033_v48 = vpop.f32.mrb[116].mxu0 }
 0x99d   : > { %v5035_v32 = vpop.f32.mrb[117].mxu0 }
 0x99e   : > { %v2442_v55 = vmax.f32 %v5033_v48, %v5035_v32  ;;  %v5039_v44 = vpop.f32.mrb[118].mxu0 }
 0x99f   : > { %v5041_v31 = vpop.f32.mrb[119].mxu0 }
 0x9a0   : > { %2443 = vmax.xlane.f32.xlu0 %v2442_v55  ;;  %v2445_v13 = vmax.f32 %v5039_v44, %v5041_v31 }
 0x9a4   : > { %2446 = vmax.xlane.f32.xlu0 %v2445_v13  ;;  %v5045_v50 = vpop.f32.mrb[120].mxu0 }
 0x9a5   : > { %v5047_v33 = vpop.f32.mrb[121].mxu0 }
 0x9a6   : > { %v2448_v24 = vmax.f32 %v5045_v50, %v5047_v33  ;;  %v5051_v7 = vpop.f32.mrb[122].mxu0 }
 0x9a7   : > { %v5053_v3 = vpop.f32.mrb[123].mxu0 }
 0x9a8   : > { %v2451_v21 = vmax.f32 %v5051_v7, %v5053_v3  ;;  %2449 = vmax.xlane.f32.xlu0 %v2448_v24 }
 0x9aa   : > { %2452 = vmax.xlane.f32.xlu1 %v2451_v21 }
 0x9ac   : > { %v5057_v4 = vpop.f32.mrb[124].mxu0 }
 0x9ad   : > { %v5059_v58 = vpop.f32.mrb[125].mxu0 }
 0x9ae   : > { %v2454_v34 = vmax.f32 %v5057_v4, %v5059_v58  ;;  %v5063_v52 = vpop.f32.mrb[126].mxu0 }
 0x9af   : > { %v5065_v8 = vpop.f32.mrb[127].mxu0 }
 0x9b0   : > { %2455 = vmax.xlane.f32.xlu0 %v2454_v34  ;;  %v2457_v10 = vmax.f32 %v5063_v52, %v5065_v8 }
 0x9b4   : > { %2458 = vmax.xlane.f32.xlu0 %v2457_v10 }
 0xa05   : > { %v2414_v1 = vpop.xlane.xlu0 %2413 }
 0xa06   : > { %v2460_v22 = vsub.f32 %v4973_v53, %v2414_v1  ;;  %v2461_v15 = vsub.f32 %v4975_v46, %v2414_v1 }
 0xa08   : > { %v2492_v25 = vmul.f32 1.442695, %v2460_v22  ;;  %v2494_v11 = vmul.f32 1.442695, %v2461_v15 }
 0xa09   : > { %v2417_v26 = vpop.xlane.xlu0 %2416 }
 0xa0a   : > { %3424 = vpow2.f32 %v2492_v25  ;;  %v2462_v23 = vsub.f32 %v4979_v29, %v2417_v26  ;;  %v2463_v37 = vsub.f32 %v4981_v42, %v2417_v26 }
 0xa0b   : > { %3426 = vpow2.f32 %v2494_v11 }
 0xa0c   : > { %v2496_v47 = vmul.f32 1.442695, %v2462_v23  ;;  %v2498_v55 = vmul.f32 1.442695, %v2463_v37 }
 0xa0d   : > { %v2420_v13 = vpop.xlane.xlu0 %2419 }
 0xa0e   : > { %3428 = vpow2.f32 %v2496_v47  ;;  %v2464_v24 = vsub.f32 %v4985_v20, %v2420_v13  ;;  %v2465_v21 = vsub.f32 %v4987_v5, %v2420_v13 }
 0xa0f   : > { %3430 = vpow2.f32 %v2498_v55 }
 0xa10   : > { %v2500_v53 = vmul.f32 1.442695, %v2464_v24  ;;  %v2502_v46 = vmul.f32 1.442695, %v2465_v21 }
 0xa11   : > { %v2423_v34 = vpop.xlane.xlu0 %2422 }
 0xa12   : > { %3432 = vpow2.f32 %v2500_v53  ;;  %v2466_v10 = vsub.f32 %v4991_v63, %v2423_v34  ;;  %v2467_v29 = vsub.f32 %v4993_v45, %v2423_v34 }
 0xa13   : > { %3434 = vpow2.f32 %v2502_v46 }
 0xa14   : > { %v5077_v42 = vpop.eup %3424  ;;  %v2504_v1 = vmul.f32 1.442695, %v2466_v10  ;;  %v2506_v22 = vmul.f32 1.442695, %v2467_v29 }
 0xa15   : > { %v5079_v15 = vpop.eup %3426  ;;  %v2426_v25 = vpop.xlane.xlu0 %2425 }
 0xa16   : > { %3436 = vpow2.f32 %v2504_v1  ;;  %v2468_v20 = vsub.f32 %v4997_v2, %v2426_v25  ;;  %v2469_v5 = vsub.f32 %v4999_v38, %v2426_v25  ;;  %v2556_v11 = vadd.f32 %v5079_v15, %v5077_v42 }
 0xa17   : > { %3438 = vpow2.f32 %v2506_v22 }
 0xa18   : > { %v5085_v63 = vpop.eup %3428  ;;  %v2508_v45 = vmul.f32 1.442695, %v2468_v20  ;;  %v2510_v26 = vmul.f32 1.442695, %v2469_v5  ;;  %2557 = vadd.xlane.f32.xlu0 %v2556_v11 }
 0xa19   : > { %v5087_v23 = vpop.eup %3430  ;;  %v2429_v37 = vpop.xlane.xlu0 %2428 }
 0xa1a   : > { %3440 = vpow2.f32 %v2508_v45  ;;  %v2470_v47 = vsub.f32 %v5003_v19, %v2429_v37  ;;  %v2471_v55 = vsub.f32 %v5005_v43, %v2429_v37  ;;  %v2559_v2 = vadd.f32 %v5087_v23, %v5085_v63 }
 0xa1b   : > { %3442 = vpow2.f32 %v2510_v26 }
 0xa1c   : > { %v5093_v38 = vpop.eup %3432  ;;  %v2512_v13 = vmul.f32 1.442695, %v2470_v47  ;;  %v2514_v24 = vmul.f32 1.442695, %v2471_v55  ;;  %2560 = vadd.xlane.f32.xlu0 %v2559_v2 }
 0xa1d   : > { %v5095_v21 = vpop.eup %3434  ;;  %v2432_v53 = vpop.xlane.xlu0 %2431 }
 0xa1e   : > { %3444 = vpow2.f32 %v2512_v13  ;;  %v2472_v46 = vsub.f32 %v5009_v12, %v2432_v53  ;;  %v2473_v34 = vsub.f32 %v5011_v0, %v2432_v53  ;;  %v2562_v19 = vadd.f32 %v5095_v21, %v5093_v38 }
 0xa1f   : > { %3446 = vpow2.f32 %v2514_v24 }
 0xa20   : > { %v5101_v43 = vpop.eup %3436  ;;  %v2516_v10 = vmul.f32 1.442695, %v2472_v46  ;;  %v2518_v29 = vmul.f32 1.442695, %v2473_v34  ;;  %2563 = vadd.xlane.f32.xlu0 %v2562_v19 }
 0xa21   : > { %v5103_v1 = vpop.eup %3438  ;;  %v2435_v22 = vpop.xlane.xlu0 %2434 }
 0xa22   : > { %3448 = vpow2.f32 %v2516_v10  ;;  %v2474_v25 = vsub.f32 %v5015_v27, %v2435_v22  ;;  %v2475_v20 = vsub.f32 %v5017_v60, %v2435_v22  ;;  %v2565_v12 = vadd.f32 %v5103_v1, %v5101_v43 }
 0xa23   : > { %3450 = vpow2.f32 %v2518_v29 }
 0xa24   : > { %v5109_v0 = vpop.eup %3440  ;;  %v2520_v5 = vmul.f32 1.442695, %v2474_v25  ;;  %v2522_v11 = vmul.f32 1.442695, %v2475_v20  ;;  %2566 = vadd.xlane.f32.xlu0 %v2565_v12 }
 0xa25   : > { %v5111_v45 = vpop.eup %3442  ;;  %v2438_v26 = vpop.xlane.xlu0 %2437 }
 0xa26   : > { %3452 = vpow2.f32 %v2520_v5  ;;  %v2476_v37 = vsub.f32 %v5021_v14, %v2438_v26  ;;  %v2477_v47 = vsub.f32 %v5023_v62, %v2438_v26  ;;  %v2568_v27 = vadd.f32 %v5111_v45, %v5109_v0 }
 0xa27   : > { %3454 = vpow2.f32 %v2522_v11 }
 0xa28   : > { %v5117_v60 = vpop.eup %3444  ;;  %v2524_v55 = vmul.f32 1.442695, %v2476_v37  ;;  %v2526_v2 = vmul.f32 1.442695, %v2477_v47  ;;  %2569 = vadd.xlane.f32.xlu0 %v2568_v27 }
 0xa29   : > { %v5119_v13 = vpop.eup %3446  ;;  %v2441_v24 = vpop.xlane.xlu0 %2440 }
 0xa2a   : > { %3456 = vpow2.f32 %v2524_v55  ;;  %v2478_v53 = vsub.f32 %v5027_v30, %v2441_v24  ;;  %v2479_v46 = vsub.f32 %v5029_v54, %v2441_v24  ;;  %v2571_v14 = vadd.f32 %v5119_v13, %v5117_v60 }
 0xa2b   : > { %3458 = vpow2.f32 %v2526_v2 }
 0xa2c   : > { %v5125_v62 = vpop.eup %3448  ;;  %v2528_v34 = vmul.f32 1.442695, %v2478_v53  ;;  %v2530_v19 = vmul.f32 1.442695, %v2479_v46  ;;  %2572 = vadd.xlane.f32.xlu0 %v2571_v14 }
 0xa2d   : > { %v5127_v10 = vpop.eup %3450  ;;  %v2444_v29 = vpop.xlane.xlu0 %2443 }
 0xa2e   : > { %3460 = vpow2.f32 %v2528_v34  ;;  %v2480_v22 = vsub.f32 %v5033_v48, %v2444_v29  ;;  %v2481_v25 = vsub.f32 %v5035_v32, %v2444_v29  ;;  %v2574_v30 = vadd.f32 %v5127_v10, %v5125_v62 }
 0xa2f   : > { %3462 = vpow2.f32 %v2530_v19 }
 0xa30   : > { %v5133_v54 = vpop.eup %3452  ;;  %v2532_v20 = vmul.f32 1.442695, %v2480_v22  ;;  %v2534_v12 = vmul.f32 1.442695, %v2481_v25  ;;  %2575 = vadd.xlane.f32.xlu0 %v2574_v30 }
 0xa31   : > { %v5135_v5 = vpop.eup %3454  ;;  %v2447_v11 = vpop.xlane.xlu0 %2446 }
 0xa32   : > { %3464 = vpow2.f32 %v2532_v20  ;;  %v2482_v26 = vsub.f32 %v5039_v44, %v2447_v11  ;;  %v2483_v37 = vsub.f32 %v5041_v31, %v2447_v11  ;;  %v2577_v48 = vadd.f32 %v5135_v5, %v5133_v54 }
 0xa33   : > { %3466 = vpow2.f32 %v2534_v12 }
 0xa34   : > { %v5141_v32 = vpop.eup %3456  ;;  %v2536_v47 = vmul.f32 1.442695, %v2482_v26  ;;  %v2538_v27 = vmul.f32 1.442695, %v2483_v37  ;;  %2578 = vadd.xlane.f32.xlu1 %v2577_v48 }
 0xa35   : > { %v5143_v55 = vpop.eup %3458  ;;  %v2450_v2 = vpop.xlane.xlu0 %2449 }
 0xa36   : > { %3468 = vpow2.f32 %v2536_v47  ;;  %v2484_v24 = vsub.f32 %v5045_v50, %v2450_v2  ;;  %v2485_v53 = vsub.f32 %v5047_v33, %v2450_v2  ;;  %v2580_v44 = vadd.f32 %v5143_v55, %v5141_v32 }
 0xa37   : > { %3470 = vpow2.f32 %v2538_v27  ;;  %v2453_v31 = vpop.xlane.xlu1 %2452 }
 0xa38   : > { %v5149_v46 = vpop.eup %3460  ;;  %v2540_v14 = vmul.f32 1.442695, %v2484_v24  ;;  %v2542_v34 = vmul.f32 1.442695, %v2485_v53  ;;  %2581 = vadd.xlane.f32.xlu0 %v2580_v44  ;;  %v2486_v19 = vsub.f32 %v5051_v7, %v2453_v31  ;;  %v2487_v29 = vsub.f32 %v5053_v3, %v2453_v31 }
 0xa39   : > { %v5153_v22 = vpop.eup %3462 }
 0xa3a   : > { %3472 = vpow2.f32 %v2540_v14  ;;  %v2544_v50 = vmul.f32 1.442695, %v2486_v19  ;;  %v2546_v25 = vmul.f32 1.442695, %v2487_v29  ;;  %v2583_v33 = vadd.f32 %v5153_v22, %v5149_v46 }
 0xa3b   : > { %3474 = vpow2.f32 %v2542_v34 }
 0xa3c   : > { %v5157_v30 = vpop.eup %3464  ;;  %3476 = vpow2.f32 %v2544_v50  ;;  %2584 = vadd.xlane.f32.xlu1 %v2583_v33 }
 0xa3d   : > { %v5159_v20 = vpop.eup %3466  ;;  %3478 = vpow2.f32 %v2546_v25  ;;  %v2456_v12 = vpop.xlane.xlu0 %2455 }
 0xa3e   : > { %v2488_v7 = vsub.f32 %v5057_v4, %v2456_v12  ;;  %v2489_v3 = vsub.f32 %v5059_v58, %v2456_v12  ;;  %v2586_v11 = vadd.f32 %v5159_v20, %v5157_v30 }
 0xa40   : > { %v5165_v26 = vpop.eup %3468  ;;  %v2548_v37 = vmul.f32 1.442695, %v2488_v7  ;;  %v2550_v48 = vmul.f32 1.442695, %v2489_v3  ;;  %2587 = vadd.xlane.f32.xlu0 %v2586_v11 }
 0xa41   : > { %v5167_v47 = vpop.eup %3470  ;;  %v2459_v27 = vpop.xlane.xlu0 %2458 }
 0xa42   : > { %3480 = vpow2.f32 %v2548_v37  ;;  %v2490_v2 = vsub.f32 %v5063_v52, %v2459_v27  ;;  %v2491_v24 = vsub.f32 %v5065_v8, %v2459_v27  ;;  %v2589_v4 = vadd.f32 %v5167_v47, %v5165_v26 }
 0xa43   : > { %3482 = vpow2.f32 %v2550_v48 }
 0xa44   : > { %v5173_v58 = vpop.eup %3472  ;;  %v2552_v53 = vmul.f32 1.442695, %v2490_v2  ;;  %v2554_v44 = vmul.f32 1.442695, %v2491_v24  ;;  %2590 = vadd.xlane.f32.xlu1 %v2589_v4 }
 0xa45   : > { %v5175_v31 = vpop.eup %3474 }
 0xa46   : > { %v5177_v14 = vpop.eup %3476  ;;  %3484 = vpow2.f32 %v2552_v53  ;;  %v2592_v34 = vadd.f32 %v5175_v31, %v5173_v58 }
 0xa47   : > { %v5181_v52 = vpop.eup %3478  ;;  %3486 = vpow2.f32 %v2554_v44 }
 0xa48   : > { %2593 = vadd.xlane.f32.xlu0 %v2592_v34  ;;  %v2595_v8 = vadd.f32 %v5181_v52, %v5177_v14 }
 0xa4a   : > { %2596 = vadd.xlane.f32.xlu1 %v2595_v8 }
 0xa4c   : > { %v5185_v19 = vpop.eup %3480 }
 0xa4d   : > { %v5187_v29 = vpop.eup %3482 }
 0xa4e   : > { %v2598_v50 = vadd.f32 %v5187_v29, %v5185_v19 }
 0xa50   : > { %v5191_v25 = vpop.eup %3484  ;;  %2599 = vadd.xlane.f32.xlu0 %v2598_v50 }
 0xa51   : > { %v5193_v33 = vpop.eup %3486 }
 0xa52   : > { %v2601_v12 = vadd.f32 %v5193_v33, %v5191_v25 }
 0xa54   : > { %2602 = vadd.xlane.f32.xlu1 %v2601_v12 }
 0xaa5   : > { %v2558_v7 = vpop.xlane.xlu0 %2557 }
 0xaa6   : > { %3488 = vrcp.f32 %v2558_v7 }
 0xaa9   : > { %v2561_v3 = vpop.xlane.xlu0 %2560 }
 0xaaa   : > { %3490 = vrcp.f32 %v2561_v3 }
 0xaad   : > { %v2564_v11 = vpop.xlane.xlu0 %2563 }
 0xaae   : > { %3492 = vrcp.f32 %v2564_v11 }
 0xab0   : > { %v3489_v48 = vpop.eup %3488 }
 0xab1   : > { %v2567_v37 = vpop.xlane.xlu0 %2566  ;;  %v2621_v24 = vmul.f32 %v3489_v48, %v5079_v15  ;;  %v2620_v53 = vmul.f32 %v3489_v48, %v5077_v42 }
 0xab2   : > { %3494 = vrcp.f32 %v2567_v37 }
 0xab4   : > { %v3491_v27 = vpop.eup %3490 }
 0xab5   : > { %v2570_v2 = vpop.xlane.xlu0 %2569  ;;  %v2623_v4 = vmul.f32 %v3491_v27, %v5087_v23  ;;  %v2622_v44 = vmul.f32 %v3491_v27, %v5085_v63 }
 0xab6   : > { %3496 = vrcp.f32 %v2570_v2 }
 0xab7   : > { %v2653_v34 = vpack.c.bf16 %v2623_v4, %v2621_v24  ;;  %v2652_v8 = vpack.c.bf16 %v2622_v44, %v2620_v53 }
 0xab8   : > { %v3493_v12 = vpop.eup %3492 }
 0xab9   : > { %2668 = vmatprep.subr.bf16.mxu1 %v2653_v34  ;;  %v2573_v50 = vpop.xlane.xlu0 %2572  ;;  %v2625_v11 = vmul.f32 %v3493_v12, %v5095_v21  ;;  %v2624_v23 = vmul.f32 %v3493_v12, %v5093_v38 }
 0xaba   : > { %3498 = vrcp.f32 %v2573_v50  ;;  %2669 = vmatpush1.bf16.xpose.msra.mxu1 %v2652_v8 }
 0xabc   : > { %v3495_v7 = vpop.eup %3494 }
 0xabd   : > { %v2576_v3 = vpop.xlane.xlu0 %2575  ;;  %v2627_v15 = vmul.f32 %v3495_v7, %v5103_v1  ;;  %v2626_v42 = vmul.f32 %v3495_v7, %v5101_v43 }
 0xabe   : > { %3500 = vrcp.f32 %v2576_v3 }
 0xabf   : > { %v2655_v37 = vpack.c.bf16 %v2627_v15, %v2625_v11  ;;  %v2654_v63 = vpack.c.bf16 %v2626_v42, %v2624_v23 }
 0xac0   : > { %v3497_v27 = vpop.eup %3496 }
 0xac1   : > { %2670 = vmatprep.subr.bf16.mxu1 %v2655_v37  ;;  %v2579_v48 = vpop.xlane.xlu1 %2578  ;;  %v2629_v4 = vmul.f32 %v3497_v27, %v5111_v45  ;;  %v2628_v1 = vmul.f32 %v3497_v27, %v5109_v0 }
 0xac2   : > { %3502 = vrcp.f32 %v2579_v48  ;;  %2671 = vmatpush1.bf16.xpose.msra.mxu1 %v2654_v63 }
 0xac4   : > { %v3499_v2 = vpop.eup %3498 }
 0xac5   : > { %v2582_v24 = vpop.xlane.xlu0 %2581  ;;  %v2631_v21 = vmul.f32 %v3499_v2, %v5119_v13  ;;  %v2630_v38 = vmul.f32 %v3499_v2, %v5117_v60 }
 0xac6   : > { %3504 = vrcp.f32 %v2582_v24 }
 0xac7   : > { %v2657_v53 = vpack.c.bf16 %v2631_v21, %v2629_v4  ;;  %v2656_v43 = vpack.c.bf16 %v2630_v38, %v2628_v1 }
 0xac8   : > { %v3501_v34 = vpop.eup %3500 }
 0xac9   : > { %2672 = vmatprep.subr.bf16.mxu1 %v2657_v53  ;;  %v2585_v44 = vpop.xlane.xlu1 %2584  ;;  %v2633_v12 = vmul.f32 %v3501_v34, %v5127_v10  ;;  %v2632_v13 = vmul.f32 %v3501_v34, %v5125_v62 }
 0xaca   : > { %3506 = vrcp.f32 %v2585_v44  ;;  %2673 = vmatpush1.bf16.xpose.msra.mxu1 %v2656_v43 }
 0xacc   : > { %v3503_v8 = vpop.eup %3502 }
 0xacd   : > { %v2588_v50 = vpop.xlane.xlu0 %2587  ;;  %v2635_v45 = vmul.f32 %v3503_v8, %v5135_v5  ;;  %v2634_v0 = vmul.f32 %v3503_v8, %v5133_v54 }
 0xace   : > { %3508 = vrcp.f32 %v2588_v50 }
 0xacf   : > { %v2659_v7 = vpack.c.bf16 %v2635_v45, %v2633_v12  ;;  %v2658_v60 = vpack.c.bf16 %v2634_v0, %v2632_v13  ;;  %v5426_v13 = vpack.c.bf16 %v4646_v35, %v4640_v16  ;;  %v5432_v16 = vld [vmem:[#allocation12_spill] sm:$0xff]  ;;  %v5433_v35 = vld [vmem:[#allocation14_spill] sm:$0xff] }
 0xad0   : > { %v3505_v11 = vpop.eup %3504 }
 0xad1   : > { %2674 = vmatprep.subr.bf16.mxu1 %v2659_v7  ;;  %v2591_v3 = vpop.xlane.xlu1 %2590  ;;  %v2637_v42 = vmul.f32 %v3505_v11, %v5143_v55  ;;  %v2636_v5 = vmul.f32 %v3505_v11, %v5141_v32 }
 0xad2   : > { %3510 = vrcp.f32 %v2591_v3  ;;  %2675 = vmatpush1.bf16.xpose.msra.mxu1 %v2658_v60 }
 0xad4   : > { %v3507_v15 = vpop.eup %3506 }
 0xad5   : > { %v2594_v23 = vpop.xlane.xlu0 %2593  ;;  %v2639_v10 = vmul.f32 %v3507_v15, %v5153_v22  ;;  %v2638_v62 = vmul.f32 %v3507_v15, %v5149_v46 }
 0xad6   : > { %3512 = vrcp.f32 %v2594_v23 }
 0xad7   : > { %v2597_v54 = vpop.xlane.xlu1 %2596  ;;  %v2661_v37 = vpack.c.bf16 %v2639_v10, %v2637_v42  ;;  %v2660_v63 = vpack.c.bf16 %v2638_v62, %v2636_v5 }
 0xad8   : > { %3514 = vrcp.f32 %v2597_v54  ;;  %v3509_v48 = vpop.eup %3508 }
 0xad9   : > { %2676 = vmatprep.subr.bf16.mxu1 %v2661_v37  ;;  %v2641_v24 = vmul.f32 %v3509_v48, %v5159_v20  ;;  %v2640_v22 = vmul.f32 %v3509_v48, %v5157_v30 }
 0xada   : > { %2677 = vmatpush1.bf16.xpose.msra.mxu1 %v2660_v63 }
 0xadc   : > { %v3511_v27 = vpop.eup %3510 }
 0xadd   : > { %v2600_v2 = vpop.xlane.xlu0 %2599  ;;  %v2643_v55 = vmul.f32 %v3511_v27, %v5167_v47  ;;  %v2642_v32 = vmul.f32 %v3511_v27, %v5165_v26 }
 0xade   : > { %3516 = vrcp.f32 %v2600_v2 }
 0xadf   : > { %v2663_v4 = vpack.c.bf16 %v2643_v55, %v2641_v24  ;;  %v2662_v46 = vpack.c.bf16 %v2642_v32, %v2640_v22 }
 0xae0   : > { %v3513_v21 = vpop.eup %3512 }
 0xae1   : > { %2678 = vmatprep.subr.bf16.mxu1 %v2663_v4  ;;  %v2603_v1 = vpop.xlane.xlu1 %2602  ;;  %v2645_v53 = vmul.f32 %v3513_v21, %v5175_v31  ;;  %v2644_v30 = vmul.f32 %v3513_v21, %v5173_v58  ;;  %v5425_v58 = vpack.c.bf16 %v4633_v59, %v4630_v6  ;;  %v5430_v6 = vld [vmem:[#allocation6_spill] sm:$0xff] }
 0xae2   : > { %v3515_v38 = vpop.eup %3514  ;;  %3518 = vrcp.f32 %v2603_v1  ;;  %2679 = vmatpush1.bf16.xpose.msra.mxu1 %v2662_v46  ;;  %v5431_v59 = vpack.c.bf16 %v4652_v49, %v5430_v6 }
 0xae3   : > { %v2647_v43 = vmul.f32 %v3515_v38, %v5181_v52  ;;  %v2646_v20 = vmul.f32 %v3515_v38, %v5177_v14  ;;  %v3617_v14 = vmov 0.0  }
 0xae5   : > { %v2665_v47 = vpack.c.bf16 %v2647_v43, %v2645_v53  ;;  %v2664_v26 = vpack.c.bf16 %v2646_v20, %v2644_v30 }
 0xae7   : > { %2680 = vmatprep.subr.bf16.mxu1 %v2665_v47 }
 0xae8   : > { %v3517_v44 = vpop.eup %3516 }
 0xae9   : > { %v2649_v8 = vmul.f32 %v3517_v44, %v5187_v29  ;;  %v2648_v12 = vmul.f32 %v3517_v44, %v5185_v19  ;;  %v5427_v29 = vpack.c.bf16 %v4257_v17, %v4255_v9  ;;  %v5428_v19 = vpack.c.bf16 %v4263_v41, %v4261_v40  ;;  %v2730_v9 = vld [vmem:[%s5325_s4] sm:$0xff] }
 0xaea   : > { %2681 = vmatpush1.bf16.xpose.msra.mxu1 %v2664_v26  ;;  %2733 = vperm.xlu0 %3111, %v2730_v9  }
 0xaec   : > { %v3519_v34 = vpop.eup %3518 }
 0xaed   : > { %v2651_v50 = vmul.f32 %v3519_v34, %v5193_v33  ;;  %v2650_v31 = vmul.f32 %v3519_v34, %v5191_v25  ;;  %v5429_v25 = vpack.c.bf16 %v4642_v51, %v4638_v28  ;;  %v5434_v33 = vpack.c.bf16 %v5432_v16, %v5433_v35 }
 0xaef   : > { %v2667_v45 = vpack.c.bf16 %v2651_v50, %v2649_v8  ;;  %v2666_v52 = vpack.c.bf16 %v2650_v31, %v2648_v12 }
 0xaf1   : > { %2682 = vmatprep.subr.bf16.mxu1 %v2667_v45 }
 0xaf2   : > { %2683 = vmatpush1.bf16.xpose.msra.mxu1 %v2666_v52 }
 0xaf3   : > { %3016 = vmatprep.subr.bf16.mxu1 %v3617_v14 }
 0xaf9   : > { %2701 = vmatmul.mubr.bf16.vlgmr.msra.gmra.mrb[104].mxu1 %v5425_v58 }
 0xafa   : > { %2708 = vmatprep.mubr.bf16.mxu1 %v5426_v13  ;;  %3017 = vmatpush3.bf16.msra.mxu1 %v5427_v29 }
 0xafb   : > { %3018 = vmatprep.subr.bf16.mxu1 %v3617_v14 }
 0xafe   : > { %3019 = vmatpush3.bf16.msra.mxu1 %v5428_v19 }
 0xaff   : > { %3020 = vmatprep.subr.bf16.mxu1 %v3617_v14 }
 0xb01   : > { %2709 = vmatmul.mubr.bf16.gmra.mrb[108].mxu1 %v5429_v25 }
 0xb02   : > { %3021 = vmatpush3.bf16.msra.mxu1 %v5431_v59  ;;  %3032 = vmatprep.mubr.msk.bf16.mxu1 %vm3618_vm3, %v3617_v14 }
 0xb03   : > { %3022 = vmatprep.subr.bf16.mxu1 %v3617_v14 }
 0xb06   : > { %3023 = vmatpush3.bf16.msra.mxu1 %v5434_v33 }
 0xb07   : > { %3024 = vmatprep.subr.bf16.mxu1 %v3617_v14 }
 0xb0a   : > { %3025 = vmatpush3.bf16.msra.mxu1 %v2255_v56 }
 0xb0b   : > { %3026 = vmatprep.subr.bf16.mxu1 %v3617_v14 }
 0xb0e   : > { %3027 = vmatpush3.bf16.msra.mxu1 %v2256_v39 }
 0xb0f   : > { %3028 = vmatprep.subr.bf16.mxu1 %v3617_v14 }
 0xb69   : > { %v2734_v39 = vpop.permute.xlu0 %2733 }
 0xbcc   : > { %v2702_v17 = vpop.f32.mrb[104].mxu1 }
 0xbcd   : > { %v2704_v40 = vpop.f32.mrb[105].mxu1 }
 0xbce   : > { %v2705_v41 = vpop.f32.mrb[106].mxu1 }
 0xbcf   : > { %v2717_v28 = vpack.c.bf16 %v2705_v41, %v2702_v17  ;;  %v2707_v51 = vpop.f32.mrb[107].mxu1 }
 0xbd1   : > { %3029 = vmatpush3.bf16.msra.mxu1 %v2717_v28 }
 0xbd2   : > { %3030 = vmatprep.subr.bf16.mxu1 %v3617_v14 }
 0xbd4   : > { %v2710_v49 = vpop.f32.mrb[108].mxu1 }
 0xbd5   : > { %v2712_v18 = vpop.f32.mrb[109].mxu1 }
 0xbd6   : > { %v2713_v61 = vpop.f32.mrb[110].mxu1 }
 0xbd7   : > { %v2718_v56 = vpack.c.bf16 %v2713_v61, %v2710_v49  ;;  %v2715_v36 = vpop.f32.mrb[111].mxu1 }
 0xbd9   : > { %3031 = vmatpush3.bf16.msra.mxu1 %v2718_v56 }
 0xbdc   : > { %3033 = vmatmul.mubr.bf16.vlgmr.msra.gmra.mrb[112].mxu1 %v2721_v57 }
 0xcaf   : > { %v2770_v0 = vpop.f32.mrb[112].mxu1 }
 0xcb0   : > { %v3034_v7 = vpop.f32.mrb[113].mxu1  ;;  %v2771_v60 = vadd.f32 %v2770_v0, %v2734_v39 }
 0xcb1   : > { %v2773_v3 = vpop.f32.mrb[114].mxu1 }
 0xcb2   : > { %2776 = vst [vmem:[%s254_s8] sm:$0xff] %v2771_v60  ;;  %v3035_v11 = vpop.f32.mrb[115].mxu1 }
 0xcb3   : > { %3533 = shalt.err (!%p3530_p7)
}
 0xcb4   : > { %s3534_s16 = scalar_lea.hbm %s5268_s13, 128  ;;  %s3538_s30 = scalar_lea.hbm %s5326_s5, 512 }
 0xcb5   : > { %p3535_p9 = scmp.ne.s32.totalorder %s5268_s13, %s3534_s16  ;;  %p3539_p12 = scmp.lt.u32.totalorder %s5268_s13, %s5326_s5 }
 0xcb6   : > { %p3540_p13 = scmp.lt.u32.totalorder %s3538_s30, %s3534_s16  ;;  %p3542_p1 = scmp.lt.u32.totalorder %s3534_s16, %s5268_s13 }
 0xcb7   : > { %p3536_p10 = pnand %p3535_p9, %p3701_p3 }
 0xcb8   : > { %p3541_p0 = por %p3540_p13, %p3539_p12 }
 0xcb9   : > { %p3537_p11 = pneg %p3536_p10 }
 0xcba   : > { %p3543_p2 = por %p3542_p1, %p3541_p0 }
 0xcbc   : > { %p3544_p4 = pnand %p3543_p2, %p3537_p11 }
 0xcbe   : > { %3547 = shalt.err (!%p3544_p4)
}
 0xcbf   : > { %3037 = dma.vmem_to_hbm [thread:$0]  (%p3701_p3), %s5270_s9, 128, %s5268_s13, %s2778_s21  }
 0xcc0 PF: > { %p3043_p5 = scmp.ge.s32.totalorder %s3614_s25, 2  ;;  %s2805_s12 = sand.u32 1, %s3586_s18  }
 0xcc1   : > { %s2806_s22 = scalar_lea.sflag [#allocation4], %s2805_s12 }
 0xcc2   : > { %p3040_p6 = pnand %p3043_p5, %p3710_p8 }
 0xcc4   : > { %3581 = dma.done.wait (!%p3040_p6), %s2806_s22, 128  }
 0xcc5   : > { %3583 = vsyncadd (!%p3040_p6), %s2806_s22, 4294967168  ;;  %s18_s25 = sadd.s32 1, %s3614_s25   ;;  %s5435_s18 = smov %s3590_s19 }
 0xcc6   : > { %p15_p7 = scmp.ge.s32.totalorder %s18_s25, 6   ;;  %s5436_s19 = smov %s3594_s20 }
 0xcc7   : > { %s5437_s20 = smov %s3719_s11  ;;  %s5438_s21 = smov %s3606_s23 }
 0xcc8   : > { %s5439_s22 = smov %s3610_s24  ;;  %s5440_s23 = smov %s5443_s28 }
 0xcc9   : > { %s5441_s24 = smov %s5447_s29  ;;  %17 = sbr.rel (!%p15_p7) target bundleno = 5 (0x5), region = 78 }
 0xcd0   :  { %2811 = vsyncpa [#allocation4], 1 }
 0xcd1   :  { %2813 = vsyncpa [#allocation4 + $0x1], 1 }

</bundles_post_ra>
